<compile_context>
chip_gen: v5e
topology: v5e:2x2
jax: 0.10.0
libtpu: 0.0.40
codegen_flags: <defaults>
</compile_context>

<pallas_src>
import jax
import jax.numpy as jnp
from jax.experimental import pallas as pl
from jax.experimental.pallas import tpu as pltpu

B = 4        # real batch
BP = 8       # batch padded to a full sublane group
T = 8        # sequence length (small test; full MNIST rows would be T=28)
D = 28       # input_dim
H = 128      # hidden_dim (matches the PyTorch spec)
O = 10       # output_dim
OP = 128     # lane-dense padded output width
NUM_LAYERS = 2  # kernel is written for exactly 2 stacked layers


def _gate_act(g, c):
    """Gate activations; gate columns pre-permuted wrapper-side to [i, f, o, g].

    One contiguous sigmoid over 3H lanes + one tanh over H lanes (fewer EUP
    launches on the serial chain than three separate sigmoids)."""
    sig = jax.nn.sigmoid(g[:, : 3 * H])
    i = sig[:, 0 * H:1 * H]
    f = sig[:, 1 * H:2 * H]
    o = sig[:, 2 * H:3 * H]
    gg = jnp.tanh(g[:, 3 * H:4 * H])
    c_new = f * c + i * gg
    # h is only ever consumed as an MXU LHS (recurrent dot / next-layer input
    # projection / final FC), so carry it in bf16 — exactly what the MXU would
    # see anyway under default f32 matmul precision.  c / gate math stay f32.
    h_new = (o * jnp.tanh(c_new)).astype(jnp.bfloat16)
    return h_new, c_new


def lstm_kernel(x_ref,        # (T*BP, D)  bf16, time-major, batch-padded inputs
                wih0_ref,     # (D, 4H)    bf16
                whh0_ref,     # (H, 4H)    bf16
                b0_ref,       # (1, 4H)    f32, b_ih0 + b_hh0
                wih1_ref,     # (H, 4H)    bf16
                whh1_ref,     # (H, 4H)    bf16
                b1_ref,       # (1, 4H)    f32, b_ih1 + b_hh1
                wfc_ref,      # (H, OP)    bf16, zero-padded beyond O
                bfc_ref,      # (1, OP)    f32
                out_ref,      # (BP, OP)   f32
                gin_ref,      # VMEM scratch (T*BP, 4H) f32 — hoisted input proj (reused by both layers)
                h1_ref):      # VMEM scratch (T*BP, H)  bf16 — layer-0 hidden states for all t
    # ---- layer 0: input projection for ALL timesteps in one GEMM (bias folded in) ----
    gin_ref[...] = (jnp.dot(x_ref[...], wih0_ref[...],
                            preferred_element_type=jnp.float32) + b0_ref[...])

    h1 = jnp.zeros((BP, H), jnp.bfloat16)
    c1 = jnp.zeros((BP, H), jnp.float32)
    for t in range(T):  # only the recurrent matmul (K=H) on the serial chain
        g = (gin_ref[pl.ds(t * BP, BP), :]
             + jnp.dot(h1, whh0_ref[...], preferred_element_type=jnp.float32))
        h1, c1 = _gate_act(g, c1)
        h1_ref[pl.ds(t * BP, BP), :] = h1

    # ---- layer 1: input projection for ALL timesteps in one GEMM (M = T*BP = 64) ----
    gin_ref[...] = (jnp.dot(h1_ref[...], wih1_ref[...],
                            preferred_element_type=jnp.float32) + b1_ref[...])

    h2 = jnp.zeros((BP, H), jnp.bfloat16)
    c2 = jnp.zeros((BP, H), jnp.float32)
    for t in range(T):  # per-step serial K is now 128, no concatenate
        g = (gin_ref[pl.ds(t * BP, BP), :]
             + jnp.dot(h2, whh1_ref[...], preferred_element_type=jnp.float32))
        h2, c2 = _gate_act(g, c2)

    # Final Linear on the last hidden state; lane-dense (BP, 128) store.
    out_ref[...] = (jnp.dot(h2, wfc_ref[...], preferred_element_type=jnp.float32)
                    + bfc_ref[...])


def _permute_gates(w):
    """PyTorch gate column order [i, f, g, o] -> kernel order [i, f, o, g]."""
    return jnp.concatenate(
        [w[..., : 2 * H], w[..., 3 * H: 4 * H], w[..., 2 * H: 3 * H]], axis=-1)


def lstm_model_forward(x, params):
    """x: (B, T, D) float32, batch-first like the PyTorch module. Returns (B, O) logits."""
    (wih0, whh0, b0, wih1, whh1, b1, wfc, bfc) = params

    # ---- cheap wrapper-side layout prep (plain XLA) ----
    x_pad = jnp.zeros((BP, T, D), jnp.float32).at[:B].set(x)           # pad batch 4 -> 8
    x_tm = (jnp.transpose(x_pad, (1, 0, 2))
            .reshape(T * BP, D).astype(jnp.bfloat16))                  # time-major, bf16

    wih0_p = _permute_gates(wih0).astype(jnp.bfloat16)
    whh0_p = _permute_gates(whh0).astype(jnp.bfloat16)
    b0_p = _permute_gates(b0)                                          # biases stay f32
    wih1_p = _permute_gates(wih1).astype(jnp.bfloat16)
    whh1_p = _permute_gates(whh1).astype(jnp.bfloat16)
    b1_p = _permute_gates(b1)
    wfc_p = jnp.zeros((H, OP), jnp.float32).at[:, :O].set(wfc).astype(jnp.bfloat16)
    bfc_p = jnp.zeros((1, OP), jnp.float32).at[:, :O].set(bfc)

    vmem = pl.BlockSpec(memory_space=pltpu.MemorySpace.VMEM)
    out = pl.pallas_call(
        lstm_kernel,
        out_shape=jax.ShapeDtypeStruct((BP, OP), jnp.float32),
        in_specs=[vmem] * 9,
        out_specs=vmem,
        scratch_shapes=[pltpu.VMEM((T * BP, 4 * H), jnp.float32),
                        pltpu.VMEM((T * BP, H), jnp.bfloat16)],
    )(x_tm, wih0_p, whh0_p, b0_p, wih1_p, whh1_p, b1_p, wfc_p, bfc_p)
    return out[:B, :O]


def init_params(key):
    """Deterministic init mirroring PyTorch's U(-1/sqrt(H), 1/sqrt(H)) for LSTM/Linear.
    Gate columns are in PyTorch order [i, f, g, o]; the wrapper permutes for the kernel."""
    k = 1.0 / jnp.sqrt(jnp.float32(H))
    keys = jax.random.split(key, 10)
    u = lambda kk, shape: jax.random.uniform(kk, shape, jnp.float32, -k, k)

    # PyTorch stores weight_ih_l0:(4H,D); we pre-transpose to (D,4H) for x @ W.
    wih0 = u(keys[0], (D, 4 * H))
    whh0 = u(keys[1], (H, 4 * H))
    b0 = u(keys[2], (1, 4 * H)) + u(keys[3], (1, 4 * H))   # b_ih + b_hh fused
    wih1 = u(keys[4], (H, 4 * H))
    whh1 = u(keys[5], (H, 4 * H))
    b1 = u(keys[6], (1, 4 * H)) + u(keys[7], (1, 4 * H))
    # Linear: PyTorch weight (O,H); pre-transposed to (H,O).
    wfc = u(keys[8], (H, O))
    bfc = u(keys[9], (1, O))
    return (wih0, whh0, b0, wih1, whh1, b1, wfc, bfc)


def reference_forward(x, params):
    """Pure-JAX f32 reference of the same 2-layer LSTM + last-step Linear forward."""
    (wih0, whh0, b0, wih1, whh1, b1, wfc, bfc) = params
    Bx = x.shape[0]
    h1 = jnp.zeros((Bx, H), jnp.float32)
    c1 = jnp.zeros((Bx, H), jnp.float32)
    h2 = jnp.zeros((Bx, H), jnp.float32)
    c2 = jnp.zeros((Bx, H), jnp.float32)

    def cell(xt, h, c, wih, whh, b):
        g = xt @ wih + h @ whh + b
        i = jax.nn.sigmoid(g[:, 0 * H:1 * H])
        f = jax.nn.sigmoid(g[:, 1 * H:2 * H])
        gg = jnp.tanh(g[:, 2 * H:3 * H])
        o = jax.nn.sigmoid(g[:, 3 * H:4 * H])
        c = f * c + i * gg
        return o * jnp.tanh(c), c

    for t in range(T):
        h1, c1 = cell(x[:, t, :], h1, c1, wih0, whh0, b0)
        h2, c2 = cell(h1, h2, c2, wih1, whh1, b1)
    return h2 @ wfc + bfc


if __name__ == "__main__":
    key = jax.random.PRNGKey(0)
    kx, kp = jax.random.split(key)
    x = jax.random.normal(kx, (B, T, D), jnp.float32)
    params = init_params(kp)

    fwd = jax.jit(lstm_model_forward)
    out = jax.block_until_ready(fwd(x, params))
    ref = reference_forward(x, params)

    assert out.shape == (B, O)
    # Tolerance covers bf16 MXU operands (identical to default TPU f32 matmul
    # truncation) and the restructured (hoisted/fused) GEMMs vs the per-step f32
    # reference; semantic bugs produce O(0.1+) errors and would still trip this.
    assert jnp.allclose(out, ref, atol=5e-3, rtol=5e-3), "mismatch vs pure-JAX reference"

    print("KERNEL_OK")
</pallas_src>

<mosaic_0001>
module attributes {stable_mosaic.version = 11 : i64} {
  func.func @lstm_kernel(%arg0: memref<64x28xbf16, #tpu.memory_space<vmem>>, %arg1: memref<28x512xbf16, #tpu.memory_space<vmem>>, %arg2: memref<128x512xbf16, #tpu.memory_space<vmem>>, %arg3: memref<1x512xf32, #tpu.memory_space<vmem>>, %arg4: memref<128x512xbf16, #tpu.memory_space<vmem>>, %arg5: memref<128x512xbf16, #tpu.memory_space<vmem>>, %arg6: memref<1x512xf32, #tpu.memory_space<vmem>>, %arg7: memref<128x128xbf16, #tpu.memory_space<vmem>>, %arg8: memref<1x128xf32, #tpu.memory_space<vmem>>, %arg9: memref<8x128xf32, #tpu.memory_space<vmem>>, %arg10: memref<64x512xf32, #tpu.memory_space<vmem>>, %arg11: memref<64x128xbf16, #tpu.memory_space<vmem>>) attributes {dimension_semantics = [], scalar_prefetch = 0 : i64, scratch_operands = 2 : i64, tpu.core_type = #tpu.core_type<tc>} {
    %c0 = arith.constant 0 : index
    %c0_0 = arith.constant 0 : index
    %0 = vector.load %arg0[%c0, %c0_0] : memref<64x28xbf16, #tpu.memory_space<vmem>>, vector<64x28xbf16>
    %c0_1 = arith.constant 0 : index
    %c0_2 = arith.constant 0 : index
    %1 = vector.load %arg1[%c0_1, %c0_2] : memref<28x512xbf16, #tpu.memory_space<vmem>>, vector<28x512xbf16>
    %cst = arith.constant dense<0.000000e+00> : vector<64x512xf32>
    %2 = tpu.matmul %0, %1, %cst {dimension_numbers = #tpu.dot_dimension_numbers<[1], [0], [0], [1], [0, 0, 1, 1], [], []>} : vector<64x28xbf16>, vector<28x512xbf16>, vector<64x512xf32> -> vector<64x512xf32>
    %c0_3 = arith.constant 0 : index
    %c0_4 = arith.constant 0 : index
    %3 = vector.load %arg3[%c0_3, %c0_4] : memref<1x512xf32, #tpu.memory_space<vmem>>, vector<1x512xf32>
    %4 = vector.broadcast %3 : vector<1x512xf32> to vector<64x512xf32>
    %5 = arith.addf %2, %4 : vector<64x512xf32>
    %c0_5 = arith.constant 0 : index
    %c0_6 = arith.constant 0 : index
    %6 = vector.load %arg10[%c0_5, %c0_6] : memref<64x512xf32, #tpu.memory_space<vmem>>, vector<64x512xf32>
    tpu.vector_store %arg10[%c0_5, %c0_6], %5 {strides = array<i32>} : memref<64x512xf32, #tpu.memory_space<vmem>>, vector<64x512xf32>,
    %cst_7 = arith.constant 0.000000e+00 : bf16
    %7 = vector.broadcast %cst_7 : bf16 to vector<8x128xbf16>
    %cst_8 = arith.constant 0.000000e+00 : f32
    %8 = vector.broadcast %cst_8 : f32 to vector<8x128xf32>
    %c0_9 = arith.constant 0 : index
    %c0_10 = arith.constant 0 : index
    %9 = vector.load %arg10[%c0_9, %c0_10] : memref<64x512xf32, #tpu.memory_space<vmem>>, vector<8x512xf32>
    %c0_11 = arith.constant 0 : index
    %c0_12 = arith.constant 0 : index
    %10 = vector.load %arg2[%c0_11, %c0_12] : memref<128x512xbf16, #tpu.memory_space<vmem>>, vector<128x512xbf16>
    %cst_13 = arith.constant dense<0.000000e+00> : vector<8x512xf32>
    %11 = tpu.matmul %7, %10, %cst_13 {dimension_numbers = #tpu.dot_dimension_numbers<[1], [0], [0], [1], [0, 0, 1, 1], [], []>} : vector<8x128xbf16>, vector<128x512xbf16>, vector<8x512xf32> -> vector<8x512xf32>
    %12 = arith.addf %9, %11 : vector<8x512xf32>
    %13 = vector.extract_strided_slice %12 {offsets = [0, 0], sizes = [8, 384], strides = [1, 1]} : vector<8x512xf32> to vector<8x384xf32>
    %14 = arith.negf %13 : vector<8x384xf32>
    %15 = math.exp %14 : vector<8x384xf32>
    %cst_14 = arith.constant 1.000000e+00 : f32
    %16 = vector.broadcast %cst_14 : f32 to vector<8x384xf32>
    %17 = arith.addf %16, %15 : vector<8x384xf32>
    %18 = arith.divf %16, %17 : vector<8x384xf32>
    %19 = vector.extract_strided_slice %18 {offsets = [0, 0], sizes = [8, 128], strides = [1, 1]} : vector<8x384xf32> to vector<8x128xf32>
    %20 = vector.extract_strided_slice %18 {offsets = [0, 128], sizes = [8, 128], strides = [1, 1]} : vector<8x384xf32> to vector<8x128xf32>
    %21 = vector.extract_strided_slice %18 {offsets = [0, 256], sizes = [8, 128], strides = [1, 1]} : vector<8x384xf32> to vector<8x128xf32>
    %22 = vector.extract_strided_slice %12 {offsets = [0, 384], sizes = [8, 128], strides = [1, 1]} : vector<8x512xf32> to vector<8x128xf32>
    %23 = math.tanh %22 : vector<8x128xf32>
    %24 = arith.mulf %20, %8 : vector<8x128xf32>
    %25 = arith.mulf %19, %23 : vector<8x128xf32>
    %26 = arith.addf %24, %25 : vector<8x128xf32>
    %27 = math.tanh %26 : vector<8x128xf32>
    %28 = arith.mulf %21, %27 : vector<8x128xf32>
    %29 = arith.truncf %28 : vector<8x128xf32> to vector<8x128xbf16>
    %c0_15 = arith.constant 0 : index
    %c0_16 = arith.constant 0 : index
    %30 = vector.load %arg11[%c0_15, %c0_16] : memref<64x128xbf16, #tpu.memory_space<vmem>>, vector<8x128xbf16>
    tpu.vector_store %arg11[%c0_15, %c0_16], %29 {strides = array<i32>} : memref<64x128xbf16, #tpu.memory_space<vmem>>, vector<8x128xbf16>,
    %c8 = arith.constant 8 : index
    %c0_17 = arith.constant 0 : index
    %31 = vector.load %arg10[%c8, %c0_17] : memref<64x512xf32, #tpu.memory_space<vmem>>, vector<8x512xf32>
    %c0_18 = arith.constant 0 : index
    %c0_19 = arith.constant 0 : index
    %32 = vector.load %arg2[%c0_18, %c0_19] : memref<128x512xbf16, #tpu.memory_space<vmem>>, vector<128x512xbf16>
    %cst_20 = arith.constant dense<0.000000e+00> : vector<8x512xf32>
    %33 = tpu.matmul %29, %32, %cst_20 {dimension_numbers = #tpu.dot_dimension_numbers<[1], [0], [0], [1], [0, 0, 1, 1], [], []>} : vector<8x128xbf16>, vector<128x512xbf16>, vector<8x512xf32> -> vector<8x512xf32>
    %34 = arith.addf %31, %33 : vector<8x512xf32>
    %35 = vector.extract_strided_slice %34 {offsets = [0, 0], sizes = [8, 384], strides = [1, 1]} : vector<8x512xf32> to vector<8x384xf32>
    %36 = arith.negf %35 : vector<8x384xf32>
    %37 = math.exp %36 : vector<8x384xf32>
    %cst_21 = arith.constant 1.000000e+00 : f32
    %38 = vector.broadcast %cst_21 : f32 to vector<8x384xf32>
    %39 = arith.addf %38, %37 : vector<8x384xf32>
    %40 = arith.divf %38, %39 : vector<8x384xf32>
    %41 = vector.extract_strided_slice %40 {offsets = [0, 0], sizes = [8, 128], strides = [1, 1]} : vector<8x384xf32> to vector<8x128xf32>
    %42 = vector.extract_strided_slice %40 {offsets = [0, 128], sizes = [8, 128], strides = [1, 1]} : vector<8x384xf32> to vector<8x128xf32>
    %43 = vector.extract_strided_slice %40 {offsets = [0, 256], sizes = [8, 128], strides = [1, 1]} : vector<8x384xf32> to vector<8x128xf32>
    %44 = vector.extract_strided_slice %34 {offsets = [0, 384], sizes = [8, 128], strides = [1, 1]} : vector<8x512xf32> to vector<8x128xf32>
    %45 = math.tanh %44 : vector<8x128xf32>
    %46 = arith.mulf %42, %26 : vector<8x128xf32>
    %47 = arith.mulf %41, %45 : vector<8x128xf32>
    %48 = arith.addf %46, %47 : vector<8x128xf32>
    %49 = math.tanh %48 : vector<8x128xf32>
    %50 = arith.mulf %43, %49 : vector<8x128xf32>
    %51 = arith.truncf %50 : vector<8x128xf32> to vector<8x128xbf16>
    %c8_22 = arith.constant 8 : index
    %c0_23 = arith.constant 0 : index
    %52 = vector.load %arg11[%c8_22, %c0_23] : memref<64x128xbf16, #tpu.memory_space<vmem>>, vector<8x128xbf16>
    tpu.vector_store %arg11[%c8_22, %c0_23], %51 {strides = array<i32>} : memref<64x128xbf16, #tpu.memory_space<vmem>>, vector<8x128xbf16>,
    %c16 = arith.constant 16 : index
    %c0_24 = arith.constant 0 : index
    %53 = vector.load %arg10[%c16, %c0_24] : memref<64x512xf32, #tpu.memory_space<vmem>>, vector<8x512xf32>
    %c0_25 = arith.constant 0 : index
    %c0_26 = arith.constant 0 : index
    %54 = vector.load %arg2[%c0_25, %c0_26] : memref<128x512xbf16, #tpu.memory_space<vmem>>, vector<128x512xbf16>
    %cst_27 = arith.constant dense<0.000000e+00> : vector<8x512xf32>
    %55 = tpu.matmul %51, %54, %cst_27 {dimension_numbers = #tpu.dot_dimension_numbers<[1], [0], [0], [1], [0, 0, 1, 1], [], []>} : vector<8x128xbf16>, vector<128x512xbf16>, vector<8x512xf32> -> vector<8x512xf32>
    %56 = arith.addf %53, %55 : vector<8x512xf32>
    %57 = vector.extract_strided_slice %56 {offsets = [0, 0], sizes = [8, 384], strides = [1, 1]} : vector<8x512xf32> to vector<8x384xf32>
    %58 = arith.negf %57 : vector<8x384xf32>
    %59 = math.exp %58 : vector<8x384xf32>
    %cst_28 = arith.constant 1.000000e+00 : f32
    %60 = vector.broadcast %cst_28 : f32 to vector<8x384xf32>
    %61 = arith.addf %60, %59 : vector<8x384xf32>
    %62 = arith.divf %60, %61 : vector<8x384xf32>
    %63 = vector.extract_strided_slice %62 {offsets = [0, 0], sizes = [8, 128], strides = [1, 1]} : vector<8x384xf32> to vector<8x128xf32>
    %64 = vector.extract_strided_slice %62 {offsets = [0, 128], sizes = [8, 128], strides = [1, 1]} : vector<8x384xf32> to vector<8x128xf32>
    %65 = vector.extract_strided_slice %62 {offsets = [0, 256], sizes = [8, 128], strides = [1, 1]} : vector<8x384xf32> to vector<8x128xf32>
    %66 = vector.extract_strided_slice %56 {offsets = [0, 384], sizes = [8, 128], strides = [1, 1]} : vector<8x512xf32> to vector<8x128xf32>
    %67 = math.tanh %66 : vector<8x128xf32>
    %68 = arith.mulf %64, %48 : vector<8x128xf32>
    %69 = arith.mulf %63, %67 : vector<8x128xf32>
    %70 = arith.addf %68, %69 : vector<8x128xf32>
    %71 = math.tanh %70 : vector<8x128xf32>
    %72 = arith.mulf %65, %71 : vector<8x128xf32>
    %73 = arith.truncf %72 : vector<8x128xf32> to vector<8x128xbf16>
    %c16_29 = arith.constant 16 : index
    %c0_30 = arith.constant 0 : index
    %74 = vector.load %arg11[%c16_29, %c0_30] : memref<64x128xbf16, #tpu.memory_space<vmem>>, vector<8x128xbf16>
    tpu.vector_store %arg11[%c16_29, %c0_30], %73 {strides = array<i32>} : memref<64x128xbf16, #tpu.memory_space<vmem>>, vector<8x128xbf16>,
    %c24 = arith.constant 24 : index
    %c0_31 = arith.constant 0 : index
    %75 = vector.load %arg10[%c24, %c0_31] : memref<64x512xf32, #tpu.memory_space<vmem>>, vector<8x512xf32>
    %c0_32 = arith.constant 0 : index
    %c0_33 = arith.constant 0 : index
    %76 = vector.load %arg2[%c0_32, %c0_33] : memref<128x512xbf16, #tpu.memory_space<vmem>>, vector<128x512xbf16>
    %cst_34 = arith.constant dense<0.000000e+00> : vector<8x512xf32>
    %77 = tpu.matmul %73, %76, %cst_34 {dimension_numbers = #tpu.dot_dimension_numbers<[1], [0], [0], [1], [0, 0, 1, 1], [], []>} : vector<8x128xbf16>, vector<128x512xbf16>, vector<8x512xf32> -> vector<8x512xf32>
    %78 = arith.addf %75, %77 : vector<8x512xf32>
    %79 = vector.extract_strided_slice %78 {offsets = [0, 0], sizes = [8, 384], strides = [1, 1]} : vector<8x512xf32> to vector<8x384xf32>
    %80 = arith.negf %79 : vector<8x384xf32>
    %81 = math.exp %80 : vector<8x384xf32>
    %cst_35 = arith.constant 1.000000e+00 : f32
    %82 = vector.broadcast %cst_35 : f32 to vector<8x384xf32>
    %83 = arith.addf %82, %81 : vector<8x384xf32>
    %84 = arith.divf %82, %83 : vector<8x384xf32>
    %85 = vector.extract_strided_slice %84 {offsets = [0, 0], sizes = [8, 128], strides = [1, 1]} : vector<8x384xf32> to vector<8x128xf32>
    %86 = vector.extract_strided_slice %84 {offsets = [0, 128], sizes = [8, 128], strides = [1, 1]} : vector<8x384xf32> to vector<8x128xf32>
    %87 = vector.extract_strided_slice %84 {offsets = [0, 256], sizes = [8, 128], strides = [1, 1]} : vector<8x384xf32> to vector<8x128xf32>
    %88 = vector.extract_strided_slice %78 {offsets = [0, 384], sizes = [8, 128], strides = [1, 1]} : vector<8x512xf32> to vector<8x128xf32>
    %89 = math.tanh %88 : vector<8x128xf32>
    %90 = arith.mulf %86, %70 : vector<8x128xf32>
    %91 = arith.mulf %85, %89 : vector<8x128xf32>
    %92 = arith.addf %90, %91 : vector<8x128xf32>
    %93 = math.tanh %92 : vector<8x128xf32>
    %94 = arith.mulf %87, %93 : vector<8x128xf32>
    %95 = arith.truncf %94 : vector<8x128xf32> to vector<8x128xbf16>
    %c24_36 = arith.constant 24 : index
    %c0_37 = arith.constant 0 : index
    %96 = vector.load %arg11[%c24_36, %c0_37] : memref<64x128xbf16, #tpu.memory_space<vmem>>, vector<8x128xbf16>
    tpu.vector_store %arg11[%c24_36, %c0_37], %95 {strides = array<i32>} : memref<64x128xbf16, #tpu.memory_space<vmem>>, vector<8x128xbf16>,
    %c32 = arith.constant 32 : index
    %c0_38 = arith.constant 0 : index
    %97 = vector.load %arg10[%c32, %c0_38] : memref<64x512xf32, #tpu.memory_space<vmem>>, vector<8x512xf32>
    %c0_39 = arith.constant 0 : index
    %c0_40 = arith.constant 0 : index
    %98 = vector.load %arg2[%c0_39, %c0_40] : memref<128x512xbf16, #tpu.memory_space<vmem>>, vector<128x512xbf16>
    %cst_41 = arith.constant dense<0.000000e+00> : vector<8x512xf32>
    %99 = tpu.matmul %95, %98, %cst_41 {dimension_numbers = #tpu.dot_dimension_numbers<[1], [0], [0], [1], [0, 0, 1, 1], [], []>} : vector<8x128xbf16>, vector<128x512xbf16>, vector<8x512xf32> -> vector<8x512xf32>
    %100 = arith.addf %97, %99 : vector<8x512xf32>
    %101 = vector.extract_strided_slice %100 {offsets = [0, 0], sizes = [8, 384], strides = [1, 1]} : vector<8x512xf32> to vector<8x384xf32>
    %102 = arith.negf %101 : vector<8x384xf32>
    %103 = math.exp %102 : vector<8x384xf32>
    %cst_42 = arith.constant 1.000000e+00 : f32
    %104 = vector.broadcast %cst_42 : f32 to vector<8x384xf32>
    %105 = arith.addf %104, %103 : vector<8x384xf32>
    %106 = arith.divf %104, %105 : vector<8x384xf32>
    %107 = vector.extract_strided_slice %106 {offsets = [0, 0], sizes = [8, 128], strides = [1, 1]} : vector<8x384xf32> to vector<8x128xf32>
    %108 = vector.extract_strided_slice %106 {offsets = [0, 128], sizes = [8, 128], strides = [1, 1]} : vector<8x384xf32> to vector<8x128xf32>
    %109 = vector.extract_strided_slice %106 {offsets = [0, 256], sizes = [8, 128], strides = [1, 1]} : vector<8x384xf32> to vector<8x128xf32>
    %110 = vector.extract_strided_slice %100 {offsets = [0, 384], sizes = [8, 128], strides = [1, 1]} : vector<8x512xf32> to vector<8x128xf32>
    %111 = math.tanh %110 : vector<8x128xf32>
    %112 = arith.mulf %108, %92 : vector<8x128xf32>
    %113 = arith.mulf %107, %111 : vector<8x128xf32>
    %114 = arith.addf %112, %113 : vector<8x128xf32>
    %115 = math.tanh %114 : vector<8x128xf32>
    %116 = arith.mulf %109, %115 : vector<8x128xf32>
    %117 = arith.truncf %116 : vector<8x128xf32> to vector<8x128xbf16>
    %c32_43 = arith.constant 32 : index
    %c0_44 = arith.constant 0 : index
    %118 = vector.load %arg11[%c32_43, %c0_44] : memref<64x128xbf16, #tpu.memory_space<vmem>>, vector<8x128xbf16>
    tpu.vector_store %arg11[%c32_43, %c0_44], %117 {strides = array<i32>} : memref<64x128xbf16, #tpu.memory_space<vmem>>, vector<8x128xbf16>,
    %c40 = arith.constant 40 : index
    %c0_45 = arith.constant 0 : index
    %119 = vector.load %arg10[%c40, %c0_45] : memref<64x512xf32, #tpu.memory_space<vmem>>, vector<8x512xf32>
    %c0_46 = arith.constant 0 : index
    %c0_47 = arith.constant 0 : index
    %120 = vector.load %arg2[%c0_46, %c0_47] : memref<128x512xbf16, #tpu.memory_space<vmem>>, vector<128x512xbf16>
    %cst_48 = arith.constant dense<0.000000e+00> : vector<8x512xf32>
    %121 = tpu.matmul %117, %120, %cst_48 {dimension_numbers = #tpu.dot_dimension_numbers<[1], [0], [0], [1], [0, 0, 1, 1], [], []>} : vector<8x128xbf16>, vector<128x512xbf16>, vector<8x512xf32> -> vector<8x512xf32>
    %122 = arith.addf %119, %121 : vector<8x512xf32>
    %123 = vector.extract_strided_slice %122 {offsets = [0, 0], sizes = [8, 384], strides = [1, 1]} : vector<8x512xf32> to vector<8x384xf32>
    %124 = arith.negf %123 : vector<8x384xf32>
    %125 = math.exp %124 : vector<8x384xf32>
    %cst_49 = arith.constant 1.000000e+00 : f32
    %126 = vector.broadcast %cst_49 : f32 to vector<8x384xf32>
    %127 = arith.addf %126, %125 : vector<8x384xf32>
    %128 = arith.divf %126, %127 : vector<8x384xf32>
    %129 = vector.extract_strided_slice %128 {offsets = [0, 0], sizes = [8, 128], strides = [1, 1]} : vector<8x384xf32> to vector<8x128xf32>
    %130 = vector.extract_strided_slice %128 {offsets = [0, 128], sizes = [8, 128], strides = [1, 1]} : vector<8x384xf32> to vector<8x128xf32>
    %131 = vector.extract_strided_slice %128 {offsets = [0, 256], sizes = [8, 128], strides = [1, 1]} : vector<8x384xf32> to vector<8x128xf32>
    %132 = vector.extract_strided_slice %122 {offsets = [0, 384], sizes = [8, 128], strides = [1, 1]} : vector<8x512xf32> to vector<8x128xf32>
    %133 = math.tanh %132 : vector<8x128xf32>
    %134 = arith.mulf %130, %114 : vector<8x128xf32>
    %135 = arith.mulf %129, %133 : vector<8x128xf32>
    %136 = arith.addf %134, %135 : vector<8x128xf32>
    %137 = math.tanh %136 : vector<8x128xf32>
    %138 = arith.mulf %131, %137 : vector<8x128xf32>
    %139 = arith.truncf %138 : vector<8x128xf32> to vector<8x128xbf16>
    %c40_50 = arith.constant 40 : index
    %c0_51 = arith.constant 0 : index
    %140 = vector.load %arg11[%c40_50, %c0_51] : memref<64x128xbf16, #tpu.memory_space<vmem>>, vector<8x128xbf16>
    tpu.vector_store %arg11[%c40_50, %c0_51], %139 {strides = array<i32>} : memref<64x128xbf16, #tpu.memory_space<vmem>>, vector<8x128xbf16>,
    %c48 = arith.constant 48 : index
    %c0_52 = arith.constant 0 : index
    %141 = vector.load %arg10[%c48, %c0_52] : memref<64x512xf32, #tpu.memory_space<vmem>>, vector<8x512xf32>
    %c0_53 = arith.constant 0 : index
    %c0_54 = arith.constant 0 : index
    %142 = vector.load %arg2[%c0_53, %c0_54] : memref<128x512xbf16, #tpu.memory_space<vmem>>, vector<128x512xbf16>
    %cst_55 = arith.constant dense<0.000000e+00> : vector<8x512xf32>
    %143 = tpu.matmul %139, %142, %cst_55 {dimension_numbers = #tpu.dot_dimension_numbers<[1], [0], [0], [1], [0, 0, 1, 1], [], []>} : vector<8x128xbf16>, vector<128x512xbf16>, vector<8x512xf32> -> vector<8x512xf32>
    %144 = arith.addf %141, %143 : vector<8x512xf32>
    %145 = vector.extract_strided_slice %144 {offsets = [0, 0], sizes = [8, 384], strides = [1, 1]} : vector<8x512xf32> to vector<8x384xf32>
    %146 = arith.negf %145 : vector<8x384xf32>
    %147 = math.exp %146 : vector<8x384xf32>
    %cst_56 = arith.constant 1.000000e+00 : f32
    %148 = vector.broadcast %cst_56 : f32 to vector<8x384xf32>
    %149 = arith.addf %148, %147 : vector<8x384xf32>
    %150 = arith.divf %148, %149 : vector<8x384xf32>
    %151 = vector.extract_strided_slice %150 {offsets = [0, 0], sizes = [8, 128], strides = [1, 1]} : vector<8x384xf32> to vector<8x128xf32>
    %152 = vector.extract_strided_slice %150 {offsets = [0, 128], sizes = [8, 128], strides = [1, 1]} : vector<8x384xf32> to vector<8x128xf32>
    %153 = vector.extract_strided_slice %150 {offsets = [0, 256], sizes = [8, 128], strides = [1, 1]} : vector<8x384xf32> to vector<8x128xf32>
    %154 = vector.extract_strided_slice %144 {offsets = [0, 384], sizes = [8, 128], strides = [1, 1]} : vector<8x512xf32> to vector<8x128xf32>
    %155 = math.tanh %154 : vector<8x128xf32>
    %156 = arith.mulf %152, %136 : vector<8x128xf32>
    %157 = arith.mulf %151, %155 : vector<8x128xf32>
    %158 = arith.addf %156, %157 : vector<8x128xf32>
    %159 = math.tanh %158 : vector<8x128xf32>
    %160 = arith.mulf %153, %159 : vector<8x128xf32>
    %161 = arith.truncf %160 : vector<8x128xf32> to vector<8x128xbf16>
    %c48_57 = arith.constant 48 : index
    %c0_58 = arith.constant 0 : index
    %162 = vector.load %arg11[%c48_57, %c0_58] : memref<64x128xbf16, #tpu.memory_space<vmem>>, vector<8x128xbf16>
    tpu.vector_store %arg11[%c48_57, %c0_58], %161 {strides = array<i32>} : memref<64x128xbf16, #tpu.memory_space<vmem>>, vector<8x128xbf16>,
    %c56 = arith.constant 56 : index
    %c0_59 = arith.constant 0 : index
    %163 = vector.load %arg10[%c56, %c0_59] : memref<64x512xf32, #tpu.memory_space<vmem>>, vector<8x512xf32>
    %c0_60 = arith.constant 0 : index
    %c0_61 = arith.constant 0 : index
    %164 = vector.load %arg2[%c0_60, %c0_61] : memref<128x512xbf16, #tpu.memory_space<vmem>>, vector<128x512xbf16>
    %cst_62 = arith.constant dense<0.000000e+00> : vector<8x512xf32>
    %165 = tpu.matmul %161, %164, %cst_62 {dimension_numbers = #tpu.dot_dimension_numbers<[1], [0], [0], [1], [0, 0, 1, 1], [], []>} : vector<8x128xbf16>, vector<128x512xbf16>, vector<8x512xf32> -> vector<8x512xf32>
    %166 = arith.addf %163, %165 : vector<8x512xf32>
    %167 = vector.extract_strided_slice %166 {offsets = [0, 0], sizes = [8, 384], strides = [1, 1]} : vector<8x512xf32> to vector<8x384xf32>
    %168 = arith.negf %167 : vector<8x384xf32>
    %169 = math.exp %168 : vector<8x384xf32>
    %cst_63 = arith.constant 1.000000e+00 : f32
    %170 = vector.broadcast %cst_63 : f32 to vector<8x384xf32>
    %171 = arith.addf %170, %169 : vector<8x384xf32>
    %172 = arith.divf %170, %171 : vector<8x384xf32>
    %173 = vector.extract_strided_slice %172 {offsets = [0, 0], sizes = [8, 128], strides = [1, 1]} : vector<8x384xf32> to vector<8x128xf32>
    %174 = vector.extract_strided_slice %172 {offsets = [0, 128], sizes = [8, 128], strides = [1, 1]} : vector<8x384xf32> to vector<8x128xf32>
    %175 = vector.extract_strided_slice %172 {offsets = [0, 256], sizes = [8, 128], strides = [1, 1]} : vector<8x384xf32> to vector<8x128xf32>
    %176 = vector.extract_strided_slice %166 {offsets = [0, 384], sizes = [8, 128], strides = [1, 1]} : vector<8x512xf32> to vector<8x128xf32>
    %177 = math.tanh %176 : vector<8x128xf32>
    %178 = arith.mulf %174, %158 : vector<8x128xf32>
    %179 = arith.mulf %173, %177 : vector<8x128xf32>
    %180 = arith.addf %178, %179 : vector<8x128xf32>
    %181 = math.tanh %180 : vector<8x128xf32>
    %182 = arith.mulf %175, %181 : vector<8x128xf32>
    %183 = arith.truncf %182 : vector<8x128xf32> to vector<8x128xbf16>
    %c56_64 = arith.constant 56 : index
    %c0_65 = arith.constant 0 : index
    %184 = vector.load %arg11[%c56_64, %c0_65] : memref<64x128xbf16, #tpu.memory_space<vmem>>, vector<8x128xbf16>
    tpu.vector_store %arg11[%c56_64, %c0_65], %183 {strides = array<i32>} : memref<64x128xbf16, #tpu.memory_space<vmem>>, vector<8x128xbf16>,
    %c0_66 = arith.constant 0 : index
    %c0_67 = arith.constant 0 : index
    %185 = vector.load %arg11[%c0_66, %c0_67] : memref<64x128xbf16, #tpu.memory_space<vmem>>, vector<64x128xbf16>
    %c0_68 = arith.constant 0 : index
    %c0_69 = arith.constant 0 : index
    %186 = vector.load %arg4[%c0_68, %c0_69] : memref<128x512xbf16, #tpu.memory_space<vmem>>, vector<128x512xbf16>
    %cst_70 = arith.constant dense<0.000000e+00> : vector<64x512xf32>
    %187 = tpu.matmul %185, %186, %cst_70 {dimension_numbers = #tpu.dot_dimension_numbers<[1], [0], [0], [1], [0, 0, 1, 1], [], []>} : vector<64x128xbf16>, vector<128x512xbf16>, vector<64x512xf32> -> vector<64x512xf32>
    %c0_71 = arith.constant 0 : index
    %c0_72 = arith.constant 0 : index
    %188 = vector.load %arg6[%c0_71, %c0_72] : memref<1x512xf32, #tpu.memory_space<vmem>>, vector<1x512xf32>
    %189 = vector.broadcast %188 : vector<1x512xf32> to vector<64x512xf32>
    %190 = arith.addf %187, %189 : vector<64x512xf32>
    %c0_73 = arith.constant 0 : index
    %c0_74 = arith.constant 0 : index
    %191 = vector.load %arg10[%c0_73, %c0_74] : memref<64x512xf32, #tpu.memory_space<vmem>>, vector<64x512xf32>
    tpu.vector_store %arg10[%c0_73, %c0_74], %190 {strides = array<i32>} : memref<64x512xf32, #tpu.memory_space<vmem>>, vector<64x512xf32>,
    %cst_75 = arith.constant 0.000000e+00 : bf16
    %192 = vector.broadcast %cst_75 : bf16 to vector<8x128xbf16>
    %cst_76 = arith.constant 0.000000e+00 : f32
    %193 = vector.broadcast %cst_76 : f32 to vector<8x128xf32>
    %c0_77 = arith.constant 0 : index
    %c0_78 = arith.constant 0 : index
    %194 = vector.load %arg10[%c0_77, %c0_78] : memref<64x512xf32, #tpu.memory_space<vmem>>, vector<8x512xf32>
    %c0_79 = arith.constant 0 : index
    %c0_80 = arith.constant 0 : index
    %195 = vector.load %arg5[%c0_79, %c0_80] : memref<128x512xbf16, #tpu.memory_space<vmem>>, vector<128x512xbf16>
    %cst_81 = arith.constant dense<0.000000e+00> : vector<8x512xf32>
    %196 = tpu.matmul %192, %195, %cst_81 {dimension_numbers = #tpu.dot_dimension_numbers<[1], [0], [0], [1], [0, 0, 1, 1], [], []>} : vector<8x128xbf16>, vector<128x512xbf16>, vector<8x512xf32> -> vector<8x512xf32>
    %197 = arith.addf %194, %196 : vector<8x512xf32>
    %198 = vector.extract_strided_slice %197 {offsets = [0, 0], sizes = [8, 384], strides = [1, 1]} : vector<8x512xf32> to vector<8x384xf32>
    %199 = arith.negf %198 : vector<8x384xf32>
    %200 = math.exp %199 : vector<8x384xf32>
    %cst_82 = arith.constant 1.000000e+00 : f32
    %201 = vector.broadcast %cst_82 : f32 to vector<8x384xf32>
    %202 = arith.addf %201, %200 : vector<8x384xf32>
    %203 = arith.divf %201, %202 : vector<8x384xf32>
    %204 = vector.extract_strided_slice %203 {offsets = [0, 0], sizes = [8, 128], strides = [1, 1]} : vector<8x384xf32> to vector<8x128xf32>
    %205 = vector.extract_strided_slice %203 {offsets = [0, 128], sizes = [8, 128], strides = [1, 1]} : vector<8x384xf32> to vector<8x128xf32>
    %206 = vector.extract_strided_slice %203 {offsets = [0, 256], sizes = [8, 128], strides = [1, 1]} : vector<8x384xf32> to vector<8x128xf32>
    %207 = vector.extract_strided_slice %197 {offsets = [0, 384], sizes = [8, 128], strides = [1, 1]} : vector<8x512xf32> to vector<8x128xf32>
    %208 = math.tanh %207 : vector<8x128xf32>
    %209 = arith.mulf %205, %193 : vector<8x128xf32>
    %210 = arith.mulf %204, %208 : vector<8x128xf32>
    %211 = arith.addf %209, %210 : vector<8x128xf32>
    %212 = math.tanh %211 : vector<8x128xf32>
    %213 = arith.mulf %206, %212 : vector<8x128xf32>
    %214 = arith.truncf %213 : vector<8x128xf32> to vector<8x128xbf16>
    %c8_83 = arith.constant 8 : index
    %c0_84 = arith.constant 0 : index
    %215 = vector.load %arg10[%c8_83, %c0_84] : memref<64x512xf32, #tpu.memory_space<vmem>>, vector<8x512xf32>
    %c0_85 = arith.constant 0 : index
    %c0_86 = arith.constant 0 : index
    %216 = vector.load %arg5[%c0_85, %c0_86] : memref<128x512xbf16, #tpu.memory_space<vmem>>, vector<128x512xbf16>
    %cst_87 = arith.constant dense<0.000000e+00> : vector<8x512xf32>
    %217 = tpu.matmul %214, %216, %cst_87 {dimension_numbers = #tpu.dot_dimension_numbers<[1], [0], [0], [1], [0, 0, 1, 1], [], []>} : vector<8x128xbf16>, vector<128x512xbf16>, vector<8x512xf32> -> vector<8x512xf32>
    %218 = arith.addf %215, %217 : vector<8x512xf32>
    %219 = vector.extract_strided_slice %218 {offsets = [0, 0], sizes = [8, 384], strides = [1, 1]} : vector<8x512xf32> to vector<8x384xf32>
    %220 = arith.negf %219 : vector<8x384xf32>
    %221 = math.exp %220 : vector<8x384xf32>
    %cst_88 = arith.constant 1.000000e+00 : f32
    %222 = vector.broadcast %cst_88 : f32 to vector<8x384xf32>
    %223 = arith.addf %222, %221 : vector<8x384xf32>
    %224 = arith.divf %222, %223 : vector<8x384xf32>
    %225 = vector.extract_strided_slice %224 {offsets = [0, 0], sizes = [8, 128], strides = [1, 1]} : vector<8x384xf32> to vector<8x128xf32>
    %226 = vector.extract_strided_slice %224 {offsets = [0, 128], sizes = [8, 128], strides = [1, 1]} : vector<8x384xf32> to vector<8x128xf32>
    %227 = vector.extract_strided_slice %224 {offsets = [0, 256], sizes = [8, 128], strides = [1, 1]} : vector<8x384xf32> to vector<8x128xf32>
    %228 = vector.extract_strided_slice %218 {offsets = [0, 384], sizes = [8, 128], strides = [1, 1]} : vector<8x512xf32> to vector<8x128xf32>
    %229 = math.tanh %228 : vector<8x128xf32>
    %230 = arith.mulf %226, %211 : vector<8x128xf32>
    %231 = arith.mulf %225, %229 : vector<8x128xf32>
    %232 = arith.addf %230, %231 : vector<8x128xf32>
    %233 = math.tanh %232 : vector<8x128xf32>
    %234 = arith.mulf %227, %233 : vector<8x128xf32>
    %235 = arith.truncf %234 : vector<8x128xf32> to vector<8x128xbf16>
    %c16_89 = arith.constant 16 : index
    %c0_90 = arith.constant 0 : index
    %236 = vector.load %arg10[%c16_89, %c0_90] : memref<64x512xf32, #tpu.memory_space<vmem>>, vector<8x512xf32>
    %c0_91 = arith.constant 0 : index
    %c0_92 = arith.constant 0 : index
    %237 = vector.load %arg5[%c0_91, %c0_92] : memref<128x512xbf16, #tpu.memory_space<vmem>>, vector<128x512xbf16>
    %cst_93 = arith.constant dense<0.000000e+00> : vector<8x512xf32>
    %238 = tpu.matmul %235, %237, %cst_93 {dimension_numbers = #tpu.dot_dimension_numbers<[1], [0], [0], [1], [0, 0, 1, 1], [], []>} : vector<8x128xbf16>, vector<128x512xbf16>, vector<8x512xf32> -> vector<8x512xf32>
    %239 = arith.addf %236, %238 : vector<8x512xf32>
    %240 = vector.extract_strided_slice %239 {offsets = [0, 0], sizes = [8, 384], strides = [1, 1]} : vector<8x512xf32> to vector<8x384xf32>
    %241 = arith.negf %240 : vector<8x384xf32>
    %242 = math.exp %241 : vector<8x384xf32>
    %cst_94 = arith.constant 1.000000e+00 : f32
    %243 = vector.broadcast %cst_94 : f32 to vector<8x384xf32>
    %244 = arith.addf %243, %242 : vector<8x384xf32>
    %245 = arith.divf %243, %244 : vector<8x384xf32>
    %246 = vector.extract_strided_slice %245 {offsets = [0, 0], sizes = [8, 128], strides = [1, 1]} : vector<8x384xf32> to vector<8x128xf32>
    %247 = vector.extract_strided_slice %245 {offsets = [0, 128], sizes = [8, 128], strides = [1, 1]} : vector<8x384xf32> to vector<8x128xf32>
    %248 = vector.extract_strided_slice %245 {offsets = [0, 256], sizes = [8, 128], strides = [1, 1]} : vector<8x384xf32> to vector<8x128xf32>
    %249 = vector.extract_strided_slice %239 {offsets = [0, 384], sizes = [8, 128], strides = [1, 1]} : vector<8x512xf32> to vector<8x128xf32>
    %250 = math.tanh %249 : vector<8x128xf32>
    %251 = arith.mulf %247, %232 : vector<8x128xf32>
    %252 = arith.mulf %246, %250 : vector<8x128xf32>
    %253 = arith.addf %251, %252 : vector<8x128xf32>
    %254 = math.tanh %253 : vector<8x128xf32>
    %255 = arith.mulf %248, %254 : vector<8x128xf32>
    %256 = arith.truncf %255 : vector<8x128xf32> to vector<8x128xbf16>
    %c24_95 = arith.constant 24 : index
    %c0_96 = arith.constant 0 : index
    %257 = vector.load %arg10[%c24_95, %c0_96] : memref<64x512xf32, #tpu.memory_space<vmem>>, vector<8x512xf32>
    %c0_97 = arith.constant 0 : index
    %c0_98 = arith.constant 0 : index
    %258 = vector.load %arg5[%c0_97, %c0_98] : memref<128x512xbf16, #tpu.memory_space<vmem>>, vector<128x512xbf16>
    %cst_99 = arith.constant dense<0.000000e+00> : vector<8x512xf32>
    %259 = tpu.matmul %256, %258, %cst_99 {dimension_numbers = #tpu.dot_dimension_numbers<[1], [0], [0], [1], [0, 0, 1, 1], [], []>} : vector<8x128xbf16>, vector<128x512xbf16>, vector<8x512xf32> -> vector<8x512xf32>
    %260 = arith.addf %257, %259 : vector<8x512xf32>
    %261 = vector.extract_strided_slice %260 {offsets = [0, 0], sizes = [8, 384], strides = [1, 1]} : vector<8x512xf32> to vector<8x384xf32>
    %262 = arith.negf %261 : vector<8x384xf32>
    %263 = math.exp %262 : vector<8x384xf32>
    %cst_100 = arith.constant 1.000000e+00 : f32
    %264 = vector.broadcast %cst_100 : f32 to vector<8x384xf32>
    %265 = arith.addf %264, %263 : vector<8x384xf32>
    %266 = arith.divf %264, %265 : vector<8x384xf32>
    %267 = vector.extract_strided_slice %266 {offsets = [0, 0], sizes = [8, 128], strides = [1, 1]} : vector<8x384xf32> to vector<8x128xf32>
    %268 = vector.extract_strided_slice %266 {offsets = [0, 128], sizes = [8, 128], strides = [1, 1]} : vector<8x384xf32> to vector<8x128xf32>
    %269 = vector.extract_strided_slice %266 {offsets = [0, 256], sizes = [8, 128], strides = [1, 1]} : vector<8x384xf32> to vector<8x128xf32>
    %270 = vector.extract_strided_slice %260 {offsets = [0, 384], sizes = [8, 128], strides = [1, 1]} : vector<8x512xf32> to vector<8x128xf32>
    %271 = math.tanh %270 : vector<8x128xf32>
    %272 = arith.mulf %268, %253 : vector<8x128xf32>
    %273 = arith.mulf %267, %271 : vector<8x128xf32>
    %274 = arith.addf %272, %273 : vector<8x128xf32>
    %275 = math.tanh %274 : vector<8x128xf32>
    %276 = arith.mulf %269, %275 : vector<8x128xf32>
    %277 = arith.truncf %276 : vector<8x128xf32> to vector<8x128xbf16>
    %c32_101 = arith.constant 32 : index
    %c0_102 = arith.constant 0 : index
    %278 = vector.load %arg10[%c32_101, %c0_102] : memref<64x512xf32, #tpu.memory_space<vmem>>, vector<8x512xf32>
    %c0_103 = arith.constant 0 : index
    %c0_104 = arith.constant 0 : index
    %279 = vector.load %arg5[%c0_103, %c0_104] : memref<128x512xbf16, #tpu.memory_space<vmem>>, vector<128x512xbf16>
    %cst_105 = arith.constant dense<0.000000e+00> : vector<8x512xf32>
    %280 = tpu.matmul %277, %279, %cst_105 {dimension_numbers = #tpu.dot_dimension_numbers<[1], [0], [0], [1], [0, 0, 1, 1], [], []>} : vector<8x128xbf16>, vector<128x512xbf16>, vector<8x512xf32> -> vector<8x512xf32>
    %281 = arith.addf %278, %280 : vector<8x512xf32>
    %282 = vector.extract_strided_slice %281 {offsets = [0, 0], sizes = [8, 384], strides = [1, 1]} : vector<8x512xf32> to vector<8x384xf32>
    %283 = arith.negf %282 : vector<8x384xf32>
    %284 = math.exp %283 : vector<8x384xf32>
    %cst_106 = arith.constant 1.000000e+00 : f32
    %285 = vector.broadcast %cst_106 : f32 to vector<8x384xf32>
    %286 = arith.addf %285, %284 : vector<8x384xf32>
    %287 = arith.divf %285, %286 : vector<8x384xf32>
    %288 = vector.extract_strided_slice %287 {offsets = [0, 0], sizes = [8, 128], strides = [1, 1]} : vector<8x384xf32> to vector<8x128xf32>
    %289 = vector.extract_strided_slice %287 {offsets = [0, 128], sizes = [8, 128], strides = [1, 1]} : vector<8x384xf32> to vector<8x128xf32>
    %290 = vector.extract_strided_slice %287 {offsets = [0, 256], sizes = [8, 128], strides = [1, 1]} : vector<8x384xf32> to vector<8x128xf32>
    %291 = vector.extract_strided_slice %281 {offsets = [0, 384], sizes = [8, 128], strides = [1, 1]} : vector<8x512xf32> to vector<8x128xf32>
    %292 = math.tanh %291 : vector<8x128xf32>
    %293 = arith.mulf %289, %274 : vector<8x128xf32>
    %294 = arith.mulf %288, %292 : vector<8x128xf32>
    %295 = arith.addf %293, %294 : vector<8x128xf32>
    %296 = math.tanh %295 : vector<8x128xf32>
    %297 = arith.mulf %290, %296 : vector<8x128xf32>
    %298 = arith.truncf %297 : vector<8x128xf32> to vector<8x128xbf16>
    %c40_107 = arith.constant 40 : index
    %c0_108 = arith.constant 0 : index
    %299 = vector.load %arg10[%c40_107, %c0_108] : memref<64x512xf32, #tpu.memory_space<vmem>>, vector<8x512xf32>
    %c0_109 = arith.constant 0 : index
    %c0_110 = arith.constant 0 : index
    %300 = vector.load %arg5[%c0_109, %c0_110] : memref<128x512xbf16, #tpu.memory_space<vmem>>, vector<128x512xbf16>
    %cst_111 = arith.constant dense<0.000000e+00> : vector<8x512xf32>
    %301 = tpu.matmul %298, %300, %cst_111 {dimension_numbers = #tpu.dot_dimension_numbers<[1], [0], [0], [1], [0, 0, 1, 1], [], []>} : vector<8x128xbf16>, vector<128x512xbf16>, vector<8x512xf32> -> vector<8x512xf32>
    %302 = arith.addf %299, %301 : vector<8x512xf32>
    %303 = vector.extract_strided_slice %302 {offsets = [0, 0], sizes = [8, 384], strides = [1, 1]} : vector<8x512xf32> to vector<8x384xf32>
    %304 = arith.negf %303 : vector<8x384xf32>
    %305 = math.exp %304 : vector<8x384xf32>
    %cst_112 = arith.constant 1.000000e+00 : f32
    %306 = vector.broadcast %cst_112 : f32 to vector<8x384xf32>
    %307 = arith.addf %306, %305 : vector<8x384xf32>
    %308 = arith.divf %306, %307 : vector<8x384xf32>
    %309 = vector.extract_strided_slice %308 {offsets = [0, 0], sizes = [8, 128], strides = [1, 1]} : vector<8x384xf32> to vector<8x128xf32>
    %310 = vector.extract_strided_slice %308 {offsets = [0, 128], sizes = [8, 128], strides = [1, 1]} : vector<8x384xf32> to vector<8x128xf32>
    %311 = vector.extract_strided_slice %308 {offsets = [0, 256], sizes = [8, 128], strides = [1, 1]} : vector<8x384xf32> to vector<8x128xf32>
    %312 = vector.extract_strided_slice %302 {offsets = [0, 384], sizes = [8, 128], strides = [1, 1]} : vector<8x512xf32> to vector<8x128xf32>
    %313 = math.tanh %312 : vector<8x128xf32>
    %314 = arith.mulf %310, %295 : vector<8x128xf32>
    %315 = arith.mulf %309, %313 : vector<8x128xf32>
    %316 = arith.addf %314, %315 : vector<8x128xf32>
    %317 = math.tanh %316 : vector<8x128xf32>
    %318 = arith.mulf %311, %317 : vector<8x128xf32>
    %319 = arith.truncf %318 : vector<8x128xf32> to vector<8x128xbf16>
    %c48_113 = arith.constant 48 : index
    %c0_114 = arith.constant 0 : index
    %320 = vector.load %arg10[%c48_113, %c0_114] : memref<64x512xf32, #tpu.memory_space<vmem>>, vector<8x512xf32>
    %c0_115 = arith.constant 0 : index
    %c0_116 = arith.constant 0 : index
    %321 = vector.load %arg5[%c0_115, %c0_116] : memref<128x512xbf16, #tpu.memory_space<vmem>>, vector<128x512xbf16>
    %cst_117 = arith.constant dense<0.000000e+00> : vector<8x512xf32>
    %322 = tpu.matmul %319, %321, %cst_117 {dimension_numbers = #tpu.dot_dimension_numbers<[1], [0], [0], [1], [0, 0, 1, 1], [], []>} : vector<8x128xbf16>, vector<128x512xbf16>, vector<8x512xf32> -> vector<8x512xf32>
    %323 = arith.addf %320, %322 : vector<8x512xf32>
    %324 = vector.extract_strided_slice %323 {offsets = [0, 0], sizes = [8, 384], strides = [1, 1]} : vector<8x512xf32> to vector<8x384xf32>
    %325 = arith.negf %324 : vector<8x384xf32>
    %326 = math.exp %325 : vector<8x384xf32>
    %cst_118 = arith.constant 1.000000e+00 : f32
    %327 = vector.broadcast %cst_118 : f32 to vector<8x384xf32>
    %328 = arith.addf %327, %326 : vector<8x384xf32>
    %329 = arith.divf %327, %328 : vector<8x384xf32>
    %330 = vector.extract_strided_slice %329 {offsets = [0, 0], sizes = [8, 128], strides = [1, 1]} : vector<8x384xf32> to vector<8x128xf32>
    %331 = vector.extract_strided_slice %329 {offsets = [0, 128], sizes = [8, 128], strides = [1, 1]} : vector<8x384xf32> to vector<8x128xf32>
    %332 = vector.extract_strided_slice %329 {offsets = [0, 256], sizes = [8, 128], strides = [1, 1]} : vector<8x384xf32> to vector<8x128xf32>
    %333 = vector.extract_strided_slice %323 {offsets = [0, 384], sizes = [8, 128], strides = [1, 1]} : vector<8x512xf32> to vector<8x128xf32>
    %334 = math.tanh %333 : vector<8x128xf32>
    %335 = arith.mulf %331, %316 : vector<8x128xf32>
    %336 = arith.mulf %330, %334 : vector<8x128xf32>
    %337 = arith.addf %335, %336 : vector<8x128xf32>
    %338 = math.tanh %337 : vector<8x128xf32>
    %339 = arith.mulf %332, %338 : vector<8x128xf32>
    %340 = arith.truncf %339 : vector<8x128xf32> to vector<8x128xbf16>
    %c56_119 = arith.constant 56 : index
    %c0_120 = arith.constant 0 : index
    %341 = vector.load %arg10[%c56_119, %c0_120] : memref<64x512xf32, #tpu.memory_space<vmem>>, vector<8x512xf32>
    %c0_121 = arith.constant 0 : index
    %c0_122 = arith.constant 0 : index
    %342 = vector.load %arg5[%c0_121, %c0_122] : memref<128x512xbf16, #tpu.memory_space<vmem>>, vector<128x512xbf16>
    %cst_123 = arith.constant dense<0.000000e+00> : vector<8x512xf32>
    %343 = tpu.matmul %340, %342, %cst_123 {dimension_numbers = #tpu.dot_dimension_numbers<[1], [0], [0], [1], [0, 0, 1, 1], [], []>} : vector<8x128xbf16>, vector<128x512xbf16>, vector<8x512xf32> -> vector<8x512xf32>
    %344 = arith.addf %341, %343 : vector<8x512xf32>
    %345 = vector.extract_strided_slice %344 {offsets = [0, 0], sizes = [8, 384], strides = [1, 1]} : vector<8x512xf32> to vector<8x384xf32>
    %346 = arith.negf %345 : vector<8x384xf32>
    %347 = math.exp %346 : vector<8x384xf32>
    %cst_124 = arith.constant 1.000000e+00 : f32
    %348 = vector.broadcast %cst_124 : f32 to vector<8x384xf32>
    %349 = arith.addf %348, %347 : vector<8x384xf32>
    %350 = arith.divf %348, %349 : vector<8x384xf32>
    %351 = vector.extract_strided_slice %350 {offsets = [0, 0], sizes = [8, 128], strides = [1, 1]} : vector<8x384xf32> to vector<8x128xf32>
    %352 = vector.extract_strided_slice %350 {offsets = [0, 128], sizes = [8, 128], strides = [1, 1]} : vector<8x384xf32> to vector<8x128xf32>
    %353 = vector.extract_strided_slice %350 {offsets = [0, 256], sizes = [8, 128], strides = [1, 1]} : vector<8x384xf32> to vector<8x128xf32>
    %354 = vector.extract_strided_slice %344 {offsets = [0, 384], sizes = [8, 128], strides = [1, 1]} : vector<8x512xf32> to vector<8x128xf32>
    %355 = math.tanh %354 : vector<8x128xf32>
    %356 = arith.mulf %352, %337 : vector<8x128xf32>
    %357 = arith.mulf %351, %355 : vector<8x128xf32>
    %358 = arith.addf %356, %357 : vector<8x128xf32>
    %359 = math.tanh %358 : vector<8x128xf32>
    %360 = arith.mulf %353, %359 : vector<8x128xf32>
    %361 = arith.truncf %360 : vector<8x128xf32> to vector<8x128xbf16>
    %c0_125 = arith.constant 0 : index
    %c0_126 = arith.constant 0 : index
    %362 = vector.load %arg7[%c0_125, %c0_126] : memref<128x128xbf16, #tpu.memory_space<vmem>>, vector<128x128xbf16>
    %cst_127 = arith.constant dense<0.000000e+00> : vector<8x128xf32>
    %363 = tpu.matmul %361, %362, %cst_127 {dimension_numbers = #tpu.dot_dimension_numbers<[1], [0], [0], [1], [0, 0, 1, 1], [], []>} : vector<8x128xbf16>, vector<128x128xbf16>, vector<8x128xf32> -> vector<8x128xf32>
    %c0_128 = arith.constant 0 : index
    %c0_129 = arith.constant 0 : index
    %364 = vector.load %arg8[%c0_128, %c0_129] : memref<1x128xf32, #tpu.memory_space<vmem>>, vector<1x128xf32>
    %365 = vector.broadcast %364 : vector<1x128xf32> to vector<8x128xf32>
    %366 = arith.addf %363, %365 : vector<8x128xf32>
    %c0_130 = arith.constant 0 : index
    %c0_131 = arith.constant 0 : index
    %367 = vector.load %arg9[%c0_130, %c0_131] : memref<8x128xf32, #tpu.memory_space<vmem>>, vector<8x128xf32>
    tpu.vector_store %arg9[%c0_130, %c0_131], %366 {strides = array<i32>} : memref<8x128xf32, #tpu.memory_space<vmem>>, vector<8x128xf32>,
    return
  }
}

</mosaic_0001>

<bundles_post_ra>
// kernel: lstm_model_forward.1
= control target key start
LH: loop header
LB: loop body
LE: loop exit
PB: predicated region body
PF: predicated region fallthrough
CT: control target
= control target key end

     0   :  { %vm128_vm0 = vcmask 1045504   ;;  %vm115_vm1 = vcmask 228352   ;;  %s9402_s1 = inlined_call_operand.vmem [shape: bf16[28,512], index: 1, kind: input, shape index: {}]   ;;  %s9403_s0 = inlined_call_operand.vmem [shape: bf16[64,28], index: 0, kind: input, shape index: {}]   ;;  %s9404_s2 = inlined_call_operand.vmem [shape: bf16[128,512], index: 2, kind: input, shape index: {}]   ;;  %s9405_s3 = inlined_call_operand.vmem [shape: f32[1,512], index: 3, kind: input, shape index: {}]   ;;  %s9406_s4 = inlined_call_operand.vmem [shape: bf16[128,512], index: 4, kind: input, shape index: {}]   ;;  %s9407_s5 = inlined_call_operand.vmem [shape: bf16[128,512], index: 5, kind: input, shape index: {}]   ;;  %s9408_s6 = inlined_call_operand.vmem [shape: f32[1,512], index: 6, kind: input, shape index: {}]   ;;  %s9409_s8 = inlined_call_operand.vmem [shape: f32[1,128], index: 8, kind: input, shape index: {}]   ;;  %s9410_s7 = inlined_call_operand.vmem [shape: bf16[128,128], index: 7, kind: input, shape index: {}]   ;;  %s9411_s9 = inlined_call_operand.vmem [shape: f32[8,128], index: 9, kind: output, shape index: {}]  }
   0x1   :  { %v4511_v0 = vld [vmem:[%s9402_s1 + $0x20] sm:$0xf]  ;;  %v5927_v1 = vld [vmem:[%s9402_s1 + $0x2c] sm:$0x30]  ;;  %v4519_v2 = vld [vmem:[%s9402_s1 + $0x28] sm:$0xf] }
   0x2   :  { %v4512_v3 = vor.u32 %v5927_v1, %v4511_v0  ;;  %v5928_v4 = vld [vmem:[%s9402_s1 + $0x34] sm:$0x30]  ;;  %v5926_v5 = vld [vmem:[%s9402_s1 + $0x2c] sm:$0xf]  ;;  %v4521_v6 = vld [vmem:[%s9402_s1 + $0x38] sm:$0x30] }
   0x3   :  { %v4520_v7 = vor.u32 %v5928_v4, %v4519_v2  ;;  %v4524_v8 = vor.u32 %v5926_v5, %v4521_v6  ;;  %v4495_v9 = vld [vmem:[%s9402_s1] sm:$0xf]  ;;  %v5923_v10 = vld [vmem:[%s9402_s1 + $0xc] sm:$0xf0]  ;;  %v4503_v11 = vld [vmem:[%s9402_s1 + $0x8] sm:$0xf] }
   0x4   :  { %v130_v12 = vsel %vm128_vm0, %v4512_v3, 0  ;;  %v5924_v13 = vld [vmem:[%s9402_s1 + $0x14] sm:$0xf0]  ;;  %v5922_v14 = vld [vmem:[%s9402_s1 + $0xc] sm:$0xf]  ;;  %v4496_v17 = vor.u32 %v5923_v10, %v4495_v9  ;;  %v6614_v21 = vld [vmem:[%s9403_s0] sm:$0xff] }
   0x5   :  { %147 = vmatpush.bf16.msra.mxu0 %v130_v12  ;;  %6261 = vmatpush.bf16.msra.mxu1 %v130_v12  ;;  %v136_v15 = vsel %vm128_vm0, %v4520_v7, 0  ;;  %v139_v16 = vsel %vm128_vm0, %v4524_v8, 0  ;;  %v4505_v18 = vld [vmem:[%s9402_s1 + $0x18] sm:$0xf0]  ;;  %v4504_v19 = vor.u32 %v5924_v13, %v4503_v11  ;;  %v5925_v23 = vld [vmem:[%s9402_s1 + $0x24] sm:$0xf] }
   0x6   :  { %205 = vmatpush.bf16.msra.mxu2 %v136_v15  ;;  %234 = vmatpush.bf16.msra.mxu3 %v139_v16  ;;  %v4508_v20 = vor.u32 %v5922_v14, %v4505_v18  ;;  %v6619_v22 = vld [vmem:[%s9403_s0 + $0x18] sm:$0xff]  ;;  %v4513_v24 = vld [vmem:[%s9402_s1 + $0x30] sm:$0x30]  ;;  %v5921_v25 = vld [vmem:[%s9402_s1 + $0x4] sm:$0xf] }
   0x7   :  { %v4516_v26 = vor.u32 %v5925_v23, %v4513_v24  ;;  %v4497_v27 = vld [vmem:[%s9402_s1 + $0x10] sm:$0xf0]  ;;  %v5957_v28 = vld [vmem:[%s9404_s2 + $0xe4] sm:$0xf]  ;;  %v4655_v30 = vld [vmem:[%s9404_s2 + $0xe0] sm:$0xf] }
   0x8   :  { %v4657_v29 = vld [vmem:[%s9404_s2 + $0xf0] sm:$0xf0]  ;;  %v5959_v31 = vld [vmem:[%s9404_s2 + $0xec] sm:$0xf0]  ;;  %v4639_v32 = vld [vmem:[%s9404_s2 + $0xc0] sm:$0xf]  ;;  %v4500_v38 = vor.u32 %v5921_v25, %v4497_v27 }
   0x9   :  { %148 = vmatpush.bf16.msra.mxu0 %v4496_v17  ;;  %6262 = vmatpush.bf16.msra.mxu1 %v4496_v17  ;;  %v133_v33 = vsel %vm128_vm0, %v4516_v26, 0  ;;  %v4656_v34 = vor.u32 %v5959_v31, %v4655_v30  ;;  %v5955_v35 = vld [vmem:[%s9404_s2 + $0xcc] sm:$0xf0]  ;;  %v4663_v36 = vld [vmem:[%s9404_s2 + $0xe8] sm:$0xf]  ;;  %v4660_v43 = vor.u32 %v5957_v28, %v4657_v29 }
   0xa   :  { %206 = vmatpush.bf16.msra.mxu2 %v4504_v19  ;;  %235 = vmatpush.bf16.msra.mxu3 %v4508_v20  ;;  %v5960_v37 = vld [vmem:[%s9404_s2 + $0xf4] sm:$0xf0]  ;;  %v4640_v39 = vor.u32 %v5955_v35, %v4639_v32  ;;  %v5953_v41 = vld [vmem:[%s9404_s2 + $0xc4] sm:$0xf]  ;;  %v4623_v42 = vld [vmem:[%s9404_s2 + $0xa0] sm:$0xf] }
   0xb   :  { %v4664_v40 = vor.u32 %v5960_v37, %v4663_v36  ;;  %v5951_v44 = vld [vmem:[%s9404_s2 + $0xac] sm:$0xf0]  ;;  %v4647_v45 = vld [vmem:[%s9404_s2 + $0xc8] sm:$0xf]  ;;  %v5956_v46 = vld [vmem:[%s9404_s2 + $0xd4] sm:$0xf0] }
   0xc   :  { %4525 = vmatmul.msk.bf16.vlgmr.msra.gmra.mxu0 %vm115_vm1, %v6614_v21  ;;  %4528 = vmatmul.msk.bf16.vlgmr.msra.gmra.mxu1 %vm115_vm1, %v6619_v22  ;;  %v4641_v47 = vld [vmem:[%s9404_s2 + $0xd0] sm:$0xf0]  ;;  %v5958_v48 = vld [vmem:[%s9404_s2 + $0xec] sm:$0xf]  ;;  %v4665_v49 = vld [vmem:[%s9404_s2 + $0xf8] sm:$0xf0]  ;;  %v4648_v50 = vor.u32 %v5956_v46, %v4647_v45  ;;  %v4624_v52 = vor.u32 %v5951_v44, %v4623_v42 }
   0xd   :  { %176 = vmatpush.bf16.msrb.mxu1 %v133_v33  ;;  %485 = vmatpush.bf16.msrb.mxu0 %v4656_v34  ;;  %v4668_v51 = vor.u32 %v5958_v48, %v4665_v49  ;;  %v4607_v53 = vld [vmem:[%s9404_s2 + $0x80] sm:$0xf]  ;;  %v5947_v54 = vld [vmem:[%s9404_s2 + $0x8c] sm:$0xf0]  ;;  %v4631_v55 = vld [vmem:[%s9404_s2 + $0xa8] sm:$0xf]  ;;  %v4644_v56 = vor.u32 %v5953_v41, %v4641_v47 }
   0xe   :  { %4533 = vmatmul.msk.bf16.vlgmr.msra.gmra.mxu2 %vm115_vm1, %v6614_v21  ;;  %4537 = vmatmul.msk.bf16.vlgmr.msra.gmra.mxu3 %vm115_vm1, %v6614_v21  ;;  %v5952_v57 = vld [vmem:[%s9404_s2 + $0xb4] sm:$0xf0]  ;;  %v5954_v58 = vld [vmem:[%s9404_s2 + $0xcc] sm:$0xf]  ;;  %v4649_v59 = vld [vmem:[%s9404_s2 + $0xd8] sm:$0xf0]  ;;  %v4608_v2 = vor.u32 %v5947_v54, %v4607_v53 }
   0xf   :  { %511 = vmatpush.bf16.msrb.mxu2 %v4664_v40  ;;  %524 = vmatpush.bf16.msrb.mxu3 %v4668_v51  ;;  %v5949_v60 = vld [vmem:[%s9404_s2 + $0xa4] sm:$0xf]  ;;  %v4625_v61 = vld [vmem:[%s9404_s2 + $0xb0] sm:$0xf0]  ;;  %v4652_v62 = vor.u32 %v5954_v58, %v4649_v59  ;;  %v4632_v63 = vor.u32 %v5952_v57, %v4631_v55  ;;  %v5950_v0 = vld [vmem:[%s9404_s2 + $0xac] sm:$0xf] }
  0x10   :  { %v4633_v1 = vld [vmem:[%s9404_s2 + $0xb8] sm:$0xf0]  ;;  %v4615_v3 = vld [vmem:[%s9404_s2 + $0x88] sm:$0xf]  ;;  %v4628_v4 = vor.u32 %v5949_v60, %v4625_v61  ;;  %v4591_v5 = vld [vmem:[%s9404_s2 + $0x60] sm:$0xf] }
  0x11   :  { %177 = vmatpush.bf16.msrb.mxu1 %v4500_v38  ;;  %486 = vmatpush.bf16.msrb.mxu0 %v4640_v39  ;;  %v5943_v6 = vld [vmem:[%s9404_s2 + $0x6c] sm:$0xf0]  ;;  %v4636_v7 = vor.u32 %v5950_v0, %v4633_v1  ;;  %v5948_v8 = vld [vmem:[%s9404_s2 + $0x94] sm:$0xf0]  ;;  %v5945_v9 = vld [vmem:[%s9404_s2 + $0x84] sm:$0xf] }
  0x12   :  { %v4616_v10 = vor.u32 %v5948_v8, %v4615_v3  ;;  %v4592_v11 = vor.u32 %v5943_v6, %v4591_v5  ;;  %v4609_v12 = vld [vmem:[%s9404_s2 + $0x90] sm:$0xf0]  ;;  %v5946_v13 = vld [vmem:[%s9404_s2 + $0x8c] sm:$0xf]  ;;  %v4617_v14 = vld [vmem:[%s9404_s2 + $0x98] sm:$0xf0] }
  0x13   :  { %512 = vmatpush.bf16.msrb.mxu2 %v4648_v50  ;;  %525 = vmatpush.bf16.msrb.mxu3 %v4652_v62  ;;  %v6747_v15 = vld [vmem:[%s9403_s0 + $0x8] sm:$0xff]  ;;  %v4575_v16 = vld [vmem:[%s9404_s2 + $0x40] sm:$0xf]  ;;  %v5939_v17 = vld [vmem:[%s9404_s2 + $0x4c] sm:$0xf0]  ;;  %v4612_v18 = vor.u32 %v5945_v9, %v4609_v12  ;;  %v4620_v19 = vor.u32 %v5946_v13, %v4617_v14  ;;  %v6521_v1 = vmov 0  }
  0x14   :  { %v4576_v20 = vor.u32 %v5939_v17, %v4575_v16  ;;  %v4599_v23 = vld [vmem:[%s9404_s2 + $0x68] sm:$0xf]  ;;  %v5944_v24 = vld [vmem:[%s9404_s2 + $0x74] sm:$0xf0]  ;;  %v5942_v25 = vld [vmem:[%s9404_s2 + $0x6c] sm:$0xf] }
  0x15   :  { %498 = vmatpush.bf16.msra.mxu1 %v4660_v43  ;;  %487 = vmatpush.bf16.msrb.mxu0 %v4624_v52  ;;  %v4559_v26 = vld [vmem:[%s9404_s2 + $0x20] sm:$0xf]  ;;  %v5935_v27 = vld [vmem:[%s9404_s2 + $0x2c] sm:$0xf0]  ;;  %v4600_v28 = vor.u32 %v5944_v24, %v4599_v23  ;;  %v4601_v29 = vld [vmem:[%s9404_s2 + $0x78] sm:$0xf0] }
  0x16   :  { %v4593_v30 = vld [vmem:[%s9404_s2 + $0x70] sm:$0xf0]  ;;  %v4583_v31 = vld [vmem:[%s9404_s2 + $0x48] sm:$0xf]  ;;  %v4543_v32 = vld [vmem:[%s9404_s2] sm:$0xf]  ;;  %v4604_v34 = vor.u32 %v5942_v25, %v4601_v29  ;;  %v4560_v37 = vor.u32 %v5935_v27, %v4559_v26 }
  0x17   :  { %513 = vmatpush.bf16.msrb.mxu2 %v4632_v63  ;;  %526 = vmatpush.bf16.msrb.mxu3 %v4636_v7  ;;  %v5940_v35 = vld [vmem:[%s9404_s2 + $0x54] sm:$0xf0]  ;;  %v5938_v36 = vld [vmem:[%s9404_s2 + $0x4c] sm:$0xf]  ;;  %v4585_v39 = vld [vmem:[%s9404_s2 + $0x58] sm:$0xf0] }
  0x18   :  { %v4584_v38 = vor.u32 %v5940_v35, %v4583_v31  ;;  %v5937_v40 = vld [vmem:[%s9404_s2 + $0x44] sm:$0xf]  ;;  %v4577_v41 = vld [vmem:[%s9404_s2 + $0x50] sm:$0xf0]  ;;  %v5931_v42 = vld [vmem:[%s9404_s2 + $0xc] sm:$0xf0]  ;;  %v4588_v45 = vor.u32 %v5938_v36, %v4585_v39 }
  0x19   :  { %499 = vmatpush.bf16.msra.mxu1 %v4644_v56  ;;  %488 = vmatpush.bf16.msrb.mxu0 %v4608_v2  ;;  %v4567_v43 = vld [vmem:[%s9404_s2 + $0x28] sm:$0xf]  ;;  %v5936_v44 = vld [vmem:[%s9404_s2 + $0x34] sm:$0xf0]  ;;  %v4580_v46 = vor.u32 %v5937_v40, %v4577_v41  ;;  %v4544_v47 = vor.u32 %v5931_v42, %v4543_v32  ;;  %v5934_v49 = vld [vmem:[%s9404_s2 + $0x2c] sm:$0xf] }
  0x1a   :  { %v4568_v48 = vor.u32 %v5936_v44, %v4567_v43  ;;  %v4569_v50 = vld [vmem:[%s9404_s2 + $0x38] sm:$0xf0]  ;;  %v4551_v51 = vld [vmem:[%s9404_s2 + $0x8] sm:$0xf]  ;;  %v5932_v52 = vld [vmem:[%s9404_s2 + $0x14] sm:$0xf0] }
  0x1b   :  { %514 = vmatpush.bf16.msrb.mxu2 %v4616_v10  ;;  %527 = vmatpush.bf16.msrb.mxu3 %v4620_v19  ;;  %v4572_v53 = vor.u32 %v5934_v49, %v4569_v50  ;;  %v4552_v54 = vor.u32 %v5932_v52, %v4551_v51  ;;  %v5930_v55 = vld [vmem:[%s9404_s2 + $0xc] sm:$0xf]  ;;  %v4553_v56 = vld [vmem:[%s9404_s2 + $0x18] sm:$0xf0]  ;;  %v5919_v57 = vld [vmem:[%s9403_s0 + $0x10] sm:$0xff] }
  0x1c   :  { %4526 = vmatmul.msk.bf16.gmra.mxu0 %vm115_vm1, %v6747_v15  ;;  %4529 = vmatmul.msk.bf16.vlgmr.msrb.gmra.mxu1 %vm115_vm1, %v6614_v21  ;;  %v5941_v21 = vld [vmem:[%s9404_s2 + $0x64] sm:$0xf]  ;;  %v4556_v58 = vor.u32 %v5930_v55, %v4553_v56  ;;  %v4561_v60 = vld [vmem:[%s9404_s2 + $0x30] sm:$0xf0]  ;;  %v49_v2 = vld [vmem:[%s9405_s3] sm:$0xf] }
  0x1d   :  { %500 = vmatpush.bf16.msra.mxu1 %v4628_v4  ;;  %489 = vmatpush.bf16.msrb.mxu0 %v4592_v11  ;;  %v4596_v33 = vor.u32 %v5941_v21, %v4593_v30  ;;  %v5933_v59 = vld [vmem:[%s9404_s2 + $0x24] sm:$0xf]  ;;  %v4545_v63 = vld [vmem:[%s9404_s2 + $0x10] sm:$0xf0]  ;;  %v6869_v3 = vperm.slane %v49_v2, 0  ;;  %v6893_v16 = vperm.slane %v49_v2, 3 }
  0x1e   :  { %4534 = vmatmul.msk.bf16.gmra.mxu2 %vm115_vm1, %v6747_v15  ;;  %4538 = vmatmul.msk.bf16.gmra.mxu3 %vm115_vm1, %v6747_v15  ;;  %v4564_v61 = vor.u32 %v5933_v59, %v4561_v60  ;;  %v5929_v62 = vld [vmem:[%s9404_s2 + $0x4] sm:$0xf]  ;;  %v6905_v25 = vperm.slane %v49_v2, 1  ;;  %v4788_v56 = vld [vmem:[%s9404_s2 + $0xf0] sm:$0xf0] }
  0x1f   :  { %515 = vmatpush.bf16.msrb.mxu2 %v4600_v28  ;;  %528 = vmatpush.bf16.msrb.mxu3 %v4604_v34  ;;  %v4548_v0 = vor.u32 %v5929_v62, %v4545_v63  ;;  %v5989_v55 = vld [vmem:[%s9404_s2 + $0xe4] sm:$0xf]  ;;  %v5992_v62 = vld [vmem:[%s9404_s2 + $0xf4] sm:$0xf0]  ;;  %v5990_v63 = vld [vmem:[%s9404_s2 + $0xec] sm:$0xf] }
  0x20   :  { %v4791_v60 = vor.u32 %v5989_v55, %v4788_v56 }
  0x21   :  { %501 = vmatpush.bf16.msra.mxu1 %v4612_v18  ;;  %490 = vmatpush.bf16.msrb.mxu0 %v4576_v20 }
  0x23   :  { %516 = vmatpush.bf16.msrb.mxu2 %v4584_v38  ;;  %529 = vmatpush.bf16.msrb.mxu3 %v4588_v45 }
  0x25   :  { %502 = vmatpush.bf16.msra.mxu1 %v4596_v33  ;;  %491 = vmatpush.bf16.msrb.mxu0 %v4560_v37 }
  0x27   :  { %517 = vmatpush.bf16.msrb.mxu2 %v4568_v48  ;;  %530 = vmatpush.bf16.msrb.mxu3 %v4572_v53  ;;  %v4786_v53 = vld [vmem:[%s9404_s2 + $0xe0] sm:$0xf] }
  0x29   :  { %503 = vmatpush.bf16.msra.mxu1 %v4580_v46  ;;  %492 = vmatpush.bf16.msrb.mxu0 %v4544_v47 }
  0x2b   :  { %518 = vmatpush.bf16.msrb.mxu2 %v4552_v54  ;;  %531 = vmatpush.bf16.msrb.mxu3 %v4556_v58  ;;  %v5991_v54 = vld [vmem:[%s9404_s2 + $0xec] sm:$0xf0] }
  0x2c   :  { %4527 = vmatmul.msk.bf16.gmra.mxu0 %vm115_vm1, %v5919_v57  ;;  %4530 = vmatmul.msk.bf16.gmra.mxu1 %vm115_vm1, %v6747_v15  ;;  %v6891_v15 = vperm.slane %v49_v2, 2  ;;  %v4787_v59 = vor.u32 %v5991_v54, %v4786_v53  ;;  %v4796_v2 = vld [vmem:[%s9404_s2 + $0xf8] sm:$0xf0]  ;;  %v5983_v53 = vld [vmem:[%s9404_s2 + $0xac] sm:$0xf0] }
  0x2d   :  { %504 = vmatpush.bf16.msra.mxu1 %v4564_v61  ;;  %v4794_v61 = vld [vmem:[%s9404_s2 + $0xe8] sm:$0xf]  ;;  %v5981_v54 = vld [vmem:[%s9404_s2 + $0xa4] sm:$0xf] }
  0x2e   :  { %4535 = vmatmul.msk.bf16.gmra.mxu2 %vm115_vm1, %v5919_v57  ;;  %4539 = vmatmul.msk.bf16.gmra.mxu3 %vm115_vm1, %v5919_v57 }
  0x2f   :  { %802 = vmatpush.bf16.msra.mxu0 %v4787_v59 }
  0x31   :  { %505 = vmatpush.bf16.msra.mxu1 %v4548_v0 }
  0x35   :  { %815 = vmatpush.bf16.msrb.mxu1 %v4791_v60 }
  0x3c   :  { %4531 = vmatmul.msk.bf16.gmra.mxu1 %vm115_vm1, %v5919_v57  ;;  %493 = vmatmul.bf16.vlgmr.msrb.gmra.mxu0 %v6521_v1 }
  0x3e   :  { %4536 = vmatmul.msk.bf16.gmra.mxu2 %vm115_vm1, %v6619_v22  ;;  %4540 = vmatmul.msk.bf16.gmra.mxu3 %vm115_vm1, %v6619_v22 }
  0x4c   :  { %4532 = vmatmul.msk.bf16.gmra.mxu1 %vm115_vm1, %v6619_v22 }
  0x4e   :  { %519 = vmatmul.bf16.vlgmr.msrb.gmra.mxu2 %v6521_v1  ;;  %532 = vmatmul.bf16.vlgmr.msrb.gmra.mxu3 %v6521_v1 }
  0x5c   :  { %506 = vmatmul.bf16.vlgmr.msra.gmra.mxu1 %v6521_v1 }
  0x89   :  { %v150_v4 = vpop.f32.mrf.mxu0  ;;  %v165_v5 = vpop.f32.mrf.mxu1 }
  0x8a   :  { %v6872_v6 = vadd.f32 %v165_v5, %v6869_v3  ;;  %v151_v37 = vadd.f32 %v150_v4, %v6869_v3  ;;  %v4795_v5 = vor.u32 %v5992_v62, %v4794_v61  ;;  %v4756_v61 = vld [vmem:[%s9404_s2 + $0xb0] sm:$0xf0]  ;;  %v4762_v62 = vld [vmem:[%s9404_s2 + $0xa8] sm:$0xf] }
  0x8c   :  { %828 = vmatpush.bf16.msra.mxu2 %v4795_v5  ;;  %v5982_v5 = vld [vmem:[%s9404_s2 + $0xac] sm:$0xf] }
  0x91   :  { %v6874_v7 = vpop.f32.mrf.mxu2  ;;  %v6876_v22 = vpop.f32.mrf.mxu3 }
  0x92   :  { %v6878_v8 = vpop.f32.mrf.mxu0  ;;  %v6880_v9 = vpop.f32.mrf.mxu1  ;;  %v209_v55 = vadd.f32 %v6874_v7, %v6891_v15  ;;  %v238_v56 = vadd.f32 %v6876_v22, %v6893_v16  ;;  %v4759_v7 = vor.u32 %v5981_v54, %v4756_v61  ;;  %v5984_v22 = vld [vmem:[%s9404_s2 + $0xb4] sm:$0xf0] }
  0x99   :  { %v6882_v10 = vpop.f32.mrf.mxu2  ;;  %v6884_v11 = vpop.f32.mrf.mxu3 }
  0x9a   :  { %v155_v12 = vpop.f32.mrf.mxu0  ;;  %v6886_v13 = vpop.f32.mrf.mxu1 }
  0x9b   :  { %v6889_v14 = vadd.f32 %v155_v12, %v6869_v3  ;;  %v4799_v12 = vor.u32 %v5990_v63, %v4796_v2 }
  0x9d   :  { %841 = vmatpush.bf16.msra.mxu3 %v4799_v12 }
  0xa1   :  { %v213_v17 = vpop.f32.mrf.mxu2  ;;  %v242_v18 = vpop.f32.mrf.mxu3 }
  0xa2   :  { %v6896_v19 = vadd.f32 %v213_v17, %v6891_v15  ;;  %v6899_v20 = vadd.f32 %v242_v18, %v6893_v16  ;;  %v6901_v23 = vpop.f32.mrf.mxu0  ;;  %v6903_v24 = vpop.f32.mrf.mxu1  ;;  %v4770_v17 = vld [vmem:[%s9404_s2 + $0xc0] sm:$0xf]  ;;  %v5987_v18 = vld [vmem:[%s9404_s2 + $0xcc] sm:$0xf0] }
  0xa9   :  { %v6907_v26 = vpop.f32.mrf.mxu2  ;;  %v6909_v27 = vpop.f32.mrf.mxu3 }
  0xaa   :  { %v160_v28 = vpop.f32.mrf.mxu0  ;;  %v184_v29 = vpop.f32.mrf.mxu1 }
  0xab   :  { %v6912_v21 = vadd.f32 %v160_v28, %v6869_v3  ;;  %v6915_v30 = vadd.f32 %v184_v29, %v6905_v25  ;;  %v5985_v28 = vld [vmem:[%s9404_s2 + $0xc4] sm:$0xf]  ;;  %v4771_v29 = vor.u32 %v5987_v18, %v4770_v17 }
  0xad   :  { %803 = vmatpush.bf16.msra.mxu0 %v4771_v29  ;;  %v4763_v29 = vor.u32 %v5984_v22, %v4762_v62 }
  0xb1   :  { %v218_v31 = vpop.f32.mrf.mxu2  ;;  %v247_v32 = vpop.f32.mrf.mxu3 }
  0xb2   :  { %v6918_v33 = vadd.f32 %v218_v31, %v6891_v15  ;;  %v6921_v34 = vadd.f32 %v247_v32, %v6893_v16  ;;  %v6923_v35 = vpop.f32.mrf.mxu0  ;;  %v6925_v36 = vpop.f32.mrf.mxu1  ;;  %v4772_v31 = vld [vmem:[%s9404_s2 + $0xd0] sm:$0xf0]  ;;  %v4778_v32 = vld [vmem:[%s9404_s2 + $0xc8] sm:$0xf] }
  0xb9   :  { %v6928_v38 = vpop.f32.mrf.mxu2  ;;  %v6930_v39 = vpop.f32.mrf.mxu3 }
  0xba   :  { %v189_v40 = vpop.f32.mrf.mxu1  ;;  %v494_v41 = vpop.f32.mrf.mxu0 }
  0xbb   :  { %v6933_v42 = vadd.f32 %v189_v40, %v6905_v25  ;;  %v537_v43 = vadd.f32 %v494_v41, %v151_v37  ;;  %v5988_v37 = vld [vmem:[%s9404_s2 + $0xd4] sm:$0xf0]  ;;  %v4775_v40 = vor.u32 %v5985_v28, %v4772_v31  ;;  %v4764_v31 = vld [vmem:[%s9404_s2 + $0xb8] sm:$0xf0] }
  0xbc   :  { %v4779_v41 = vor.u32 %v5988_v37, %v4778_v32  ;;  %v4767_v37 = vor.u32 %v5982_v5, %v4764_v31 }
  0xbd   :  { %v4669_v44 = vmul.f32 -1.442695, %v537_v43  ;;  %v5986_v43 = vld [vmem:[%s9404_s2 + $0xcc] sm:$0xf]  ;;  %816 = vmatpush.bf16.msrb.mxu1 %v4775_v40  ;;  %v4738_v40 = vld [vmem:[%s9404_s2 + $0x80] sm:$0xf] }
  0xbe   :  { %829 = vmatpush.bf16.msra.mxu2 %v4779_v41  ;;  %v5979_v41 = vld [vmem:[%s9404_s2 + $0x8c] sm:$0xf0] }
  0xbf   :  { %6265 = vpow2.f32 %v4669_v44  ;;  %v4780_v44 = vld [vmem:[%s9404_s2 + $0xd8] sm:$0xf0] }
  0xc1   :  { %v223_v45 = vpop.f32.mrf.mxu2  ;;  %v252_v46 = vpop.f32.mrf.mxu3  ;;  %817 = vmatpush.bf16.msrb.mxu1 %v4759_v7  ;;  %v5973_v7 = vld [vmem:[%s9404_s2 + $0x64] sm:$0xf] }
  0xc2   :  { %v6936_v47 = vadd.f32 %v223_v45, %v6891_v15  ;;  %v6939_v48 = vadd.f32 %v252_v46, %v6893_v16  ;;  %v6941_v49 = vpop.f32.mrf.mxu1  ;;  %v496_v50 = vpop.f32.mrf.mxu0  ;;  %v4783_v46 = vor.u32 %v5986_v43, %v4780_v44  ;;  %v5977_v43 = vld [vmem:[%s9404_s2 + $0x84] sm:$0xf]  ;;  %830 = vmatpush.bf16.msra.mxu2 %v4763_v29 }
  0xc4   :  { %842 = vmatpush.bf16.msra.mxu3 %v4783_v46  ;;  %v4739_v46 = vor.u32 %v5979_v41, %v4738_v40  ;;  %v5974_v40 = vld [vmem:[%s9404_s2 + $0x6c] sm:$0xf]  ;;  %v4732_v41 = vld [vmem:[%s9404_s2 + $0x78] sm:$0xf0] }
  0xc5   :  { %v6266_v51 = vpop.eup %6265 }
  0xc6   :  { %v6943_v52 = vadd.f32 1.0, %v6266_v51  ;;  %v4754_v51 = vld [vmem:[%s9404_s2 + $0xa0] sm:$0xf] }
  0xc7   :  { %v4755_v60 = vor.u32 %v5983_v53, %v4754_v51  ;;  %v4746_v51 = vld [vmem:[%s9404_s2 + $0x88] sm:$0xf] }
  0xc8   :  { %6267 = vrcp.f32 %v6943_v52  ;;  %v562_v59 = vand.u32 2147483647, %v6943_v52  ;;  %v564_v18 = vand.u32 2147483648, %v6943_v52  ;;  %vm558_vm4 = vweird.f32 %v6943_v52  ;;  %843 = vmatpush.bf16.msra.mxu3 %v4767_v37 }
  0xc9   :  { %v6958_v57 = vpop.f32.mrf.mxu2  ;;  %v6960_v58 = vpop.f32.mrf.mxu3  ;;  %804 = vmatpush.bf16.msra.mxu0 %v4755_v60 }
  0xca   :  { %v194_v0 = vpop.f32.mrf.mxu1  ;;  %vm7043_vm3 = vcmp.eq.f32.partialorder %v562_v59, 8.507059e+37  ;;  %v4748_v59 = vld [vmem:[%s9404_s2 + $0x98] sm:$0xf0]  ;;  %v565_v61 = vor.u32 1.1754944e-38, %v564_v18  ;;  %v180_v18 = vadd.f32 %v6886_v13, %v6905_v25 }
  0xcb   :  { %v6975_v4 = vadd.f32 %v194_v0, %v6905_v25 }
  0xcd   :  { %805 = vmatpush.bf16.msra.mxu0 %v4739_v46  ;;  %v4735_v46 = vor.u32 %v5974_v40, %v4732_v41  ;;  %v4700_v40 = vld [vmem:[%s9404_s2 + $0x38] sm:$0xf0] }
  0xce   :  { %v6268_v45 = vpop.eup %6267 }
  0xcf   :  { %v554_v50 = vmul.f32 %v6268_v45, %v6943_v52  ;;  %vm559_vm2 = vweird.f32 %v6268_v45 }
  0xd0   :  { %vm560_vm5 = vmor %vm558_vm4, %vm559_vm2 }
  0xd1   :  { %v555_v63 = vsub.f32 1.0, %v554_v50  ;;  %v520_v0 = vpop.f32.mrf.mxu2  ;;  %v533_v2 = vpop.f32.mrf.mxu3  ;;  %v4740_v50 = vld [vmem:[%s9404_s2 + $0x90] sm:$0xf0] }
  0xd2   :  { %v539_v12 = vadd.f32 %v520_v0, %v209_v55  ;;  %v540_v17 = vadd.f32 %v533_v2, %v238_v56  ;;  %v7029_v28 = vpop.f32.mrf.mxu1  ;;  %v4743_v54 = vor.u32 %v5977_v43, %v4740_v50  ;;  %v5980_v55 = vld [vmem:[%s9404_s2 + $0x94] sm:$0xf0]  ;;  %v5978_v56 = vld [vmem:[%s9404_s2 + $0x8c] sm:$0xf]  ;;  %v4722_v0 = vld [vmem:[%s9404_s2 + $0x60] sm:$0xf] }
  0xd3   :  { %v556_v32 = vmul.f32 %v6268_v45, %v555_v63  ;;  %v4747_v52 = vor.u32 %v5980_v55, %v4746_v51  ;;  %v4751_v62 = vor.u32 %v5978_v56, %v4748_v59  ;;  %v5975_v2 = vld [vmem:[%s9404_s2 + $0x6c] sm:$0xf0]  ;;  %v4706_v51 = vld [vmem:[%s9404_s2 + $0x40] sm:$0xf]  ;;  %v4708_v56 = vld [vmem:[%s9404_s2 + $0x50] sm:$0xf0] }
  0xd4   :  { %6269 = vtanh.f32 %v540_v17  ;;  %v4671_v60 = vmul.f32 -1.442695, %v539_v12  ;;  %818 = vmatpush.bf16.msrb.mxu1 %v4743_v54  ;;  %v4723_v5 = vor.u32 %v5975_v2, %v4722_v0  ;;  %v4730_v12 = vld [vmem:[%s9404_s2 + $0x68] sm:$0xf]  ;;  %v5976_v17 = vld [vmem:[%s9404_s2 + $0x74] sm:$0xf0] }
  0xd5   :  { %v557_v53 = vadd.f32 %v6268_v45, %v556_v32  ;;  %831 = vmatpush.bf16.msra.mxu2 %v4747_v52  ;;  %844 = vmatpush.bf16.msra.mxu3 %v4751_v62  ;;  %v4731_v37 = vor.u32 %v5976_v17, %v4730_v12  ;;  %v5969_v54 = vld [vmem:[%s9404_s2 + $0x44] sm:$0xf]  ;;  %v4714_v59 = vld [vmem:[%s9404_s2 + $0x48] sm:$0xf]  ;;  %v4716_v0 = vld [vmem:[%s9404_s2 + $0x58] sm:$0xf0] }
  0xd6   :  { %6271 = vpow2.f32 %v4671_v60  ;;  %806 = vmatpush.bf16.msra.mxu0 %v4723_v5  ;;  %v5972_v60 = vld [vmem:[%s9404_s2 + $0x54] sm:$0xf0]  ;;  %v4711_v52 = vor.u32 %v5969_v54, %v4708_v56  ;;  %v4690_v2 = vld [vmem:[%s9404_s2 + $0x20] sm:$0xf]  ;;  %v4692_v12 = vld [vmem:[%s9404_s2 + $0x30] sm:$0xf0] }
  0xd7   :  { %v561_v63 = vsel %vm560_vm5, %v6268_v45, %v557_v53  ;;  %v4724_v45 = vld [vmem:[%s9404_s2 + $0x70] sm:$0xf0]  ;;  %v5971_v53 = vld [vmem:[%s9404_s2 + $0x4c] sm:$0xf0]  ;;  %v4715_v62 = vor.u32 %v5972_v60, %v4714_v59  ;;  %v4698_v17 = vld [vmem:[%s9404_s2 + $0x28] sm:$0xf] }
  0xd8   :  { %v566_v22 = vsel %vm7043_vm3, %v565_v61, %v561_v63  ;;  %v4727_v32 = vor.u32 %v5973_v7, %v4724_v45  ;;  %v4707_v55 = vor.u32 %v5971_v53, %v4706_v51  ;;  %v5970_v63 = vld [vmem:[%s9404_s2 + $0x4c] sm:$0xf]  ;;  %v5967_v7 = vld [vmem:[%s9404_s2 + $0x2c] sm:$0xf0]  ;;  %v4676_v53 = vld [vmem:[%s9404_s2 + $0x10] sm:$0xf0] }
  0xd9   :  { %v522_v29 = vpop.f32.mrf.mxu2  ;;  %v535_v31 = vpop.f32.mrf.mxu3  ;;  %832 = vmatpush.bf16.msra.mxu2 %v4731_v37  ;;  %845 = vmatpush.bf16.msra.mxu3 %v4735_v46  ;;  %v4719_v5 = vor.u32 %v5970_v63, %v4716_v0  ;;  %v4691_v45 = vor.u32 %v5967_v7, %v4690_v2  ;;  %v5966_v37 = vld [vmem:[%s9404_s2 + $0x2c] sm:$0xf]  ;;  %v5963_v46 = vld [vmem:[%s9404_s2 + $0xc] sm:$0xf0]  ;;  %v4682_v54 = vld [vmem:[%s9404_s2 + $0x8] sm:$0xf] }
  0xda   :  { %v6270_v43 = vpop.eup %6269  ;;  %v507_v44 = vpop.f32.mrf.mxu1  ;;  %819 = vmatpush.bf16.msrb.mxu1 %v4727_v32  ;;  %807 = vmatpush.bf16.msra.mxu0 %v4707_v55  ;;  %v5964_v55 = vld [vmem:[%s9404_s2 + $0x14] sm:$0xf0]  ;;  %v5962_v60 = vld [vmem:[%s9404_s2 + $0xc] sm:$0xf] }
  0xdb   :  { %v7092_v50 = vmul.f32 %v6270_v43, %v566_v22  ;;  %v538_v13 = vadd.f32 %v507_v44, %v180_v18  ;;  %v5965_v22 = vld [vmem:[%s9404_s2 + $0x24] sm:$0xf]  ;;  %v5968_v18 = vld [vmem:[%s9404_s2 + $0x34] sm:$0xf0]  ;;  %v4703_v43 = vor.u32 %v5966_v37, %v4700_v40  ;;  %v4674_v44 = vld [vmem:[%s9404_s2] sm:$0xf] }
  0xdc   :  { %v6272_v29 = vpop.eup %6271  ;;  %v4695_v31 = vor.u32 %v5965_v22, %v4692_v12  ;;  %v4699_v32 = vor.u32 %v5968_v18, %v4698_v17  ;;  %v4675_v51 = vor.u32 %v5963_v46, %v4674_v44 }
  0xdd   :  { %v4670_v61 = vmul.f32 -1.442695, %v538_v13  ;;  %833 = vmatpush.bf16.msra.mxu2 %v4715_v62  ;;  %846 = vmatpush.bf16.msra.mxu3 %v4719_v5  ;;  %v5961_v13 = vld [vmem:[%s9404_s2 + $0x4] sm:$0xf]  ;;  %v552_v56 = vadd.f32 1.0, %v6272_v29 }
  0xde   :  { %820 = vmatpush.bf16.msrb.mxu1 %v4711_v52  ;;  %808 = vmatpush.bf16.msra.mxu0 %v4691_v45  ;;  %v4679_v59 = vor.u32 %v5961_v13, %v4676_v53  ;;  %v4683_v52 = vor.u32 %v5964_v55, %v4682_v54 }
  0xdf   :  { %6273 = vpow2.f32 %v4670_v61  ;;  %v4684_v61 = vld [vmem:[%s9404_s2 + $0x18] sm:$0xf0]  ;;  %v594_v13 = vand.u32 2147483648, %v552_v56  ;;  %vm588_vm11 = vweird.f32 %v552_v56 }
  0xe0   :  { %v4687_v63 = vor.u32 %v5962_v60, %v4684_v61  ;;  %6275 = vrcp.f32 %v552_v56 }
  0xe1   :  { %834 = vmatpush.bf16.msra.mxu2 %v4699_v32  ;;  %847 = vmatpush.bf16.msra.mxu3 %v4703_v43  ;;  %v595_v54 = vor.u32 1.1754944e-38, %v594_v13  ;;  %v4911_v13 = vld [vmem:[%s9404_s2 + $0xd8] sm:$0xf0] }
  0xe2   :  { %v509_v41 = vpop.f32.mrf.mxu1  ;;  %821 = vmatpush.bf16.msrb.mxu1 %v4695_v31  ;;  %809 = vmatpush.bf16.msra.mxu0 %v4675_v51  ;;  %v592_v51 = vand.u32 2147483647, %v552_v56 }
  0xe4   :  { %vm593_vm13 = vcmp.eq.f32.partialorder %v592_v51, 8.507059e+37 }
  0xe5   :  { %v6274_v62 = vpop.eup %6273  ;;  %835 = vmatpush.bf16.msra.mxu2 %v4683_v52  ;;  %848 = vmatpush.bf16.msra.mxu3 %v4687_v63  ;;  %v6021_v52 = vld [vmem:[%s9404_s2 + $0xe4] sm:$0xf]  ;;  %v4919_v63 = vld [vmem:[%s9404_s2 + $0xf0] sm:$0xf0] }
  0xe6   :  { %v551_v0 = vadd.f32 1.0, %v6274_v62  ;;  %822 = vmatpush.bf16.msrb.mxu1 %v4679_v59  ;;  %v6276_v2 = vpop.eup %6275 }
  0xe7   :  { %v584_v5 = vmul.f32 %v6276_v2, %v552_v56  ;;  %vm589_vm10 = vweird.f32 %v6276_v2  ;;  %v6023_v56 = vld [vmem:[%s9404_s2 + $0xec] sm:$0xf0] }
  0xe8   :  { %6277 = vrcp.f32 %v551_v0  ;;  %v579_v12 = vand.u32 2147483648, %v551_v0  ;;  %v577_v18 = vand.u32 2147483647, %v551_v0  ;;  %vm573_vm7 = vweird.f32 %v551_v0  ;;  %vm590_vm12 = vmor %vm588_vm11, %vm589_vm10 }
  0xe9   :  { %v585_v29 = vsub.f32 1.0, %v584_v5  ;;  %v6022_v5 = vld [vmem:[%s9404_s2 + $0xec] sm:$0xf] }
  0xea   :  { %v580_v32 = vor.u32 1.1754944e-38, %v579_v12  ;;  %vm578_vm9 = vcmp.eq.f32.partialorder %v577_v18, 8.507059e+37  ;;  %v6019_v18 = vld [vmem:[%s9404_s2 + $0xcc] sm:$0xf0] }
  0xeb   :  { %v586_v40 = vmul.f32 %v6276_v2, %v585_v29  ;;  %v6017_v29 = vld [vmem:[%s9404_s2 + $0xc4] sm:$0xf] }
  0xed   :  { %v587_v46 = vadd.f32 %v6276_v2, %v586_v40  ;;  %v6020_v40 = vld [vmem:[%s9404_s2 + $0xd4] sm:$0xf0] }
  0xee   :  { %v6278_v7 = vpop.eup %6277 }
  0xef   :  { %v569_v22 = vmul.f32 %v6278_v7, %v551_v0  ;;  %vm574_vm6 = vweird.f32 %v6278_v7  ;;  %v591_v53 = vsel %vm590_vm12, %v6276_v2, %v587_v46  ;;  %v4925_v0 = vld [vmem:[%s9404_s2 + $0xe8] sm:$0xf]  ;;  %v6024_v2 = vld [vmem:[%s9404_s2 + $0xf4] sm:$0xf0]  ;;  %v6018_v46 = vld [vmem:[%s9404_s2 + $0xcc] sm:$0xf] }
  0xf0   :  { %vm575_vm8 = vmor %vm573_vm7, %vm574_vm6  ;;  %v596_v59 = vsel %vm593_vm13, %v595_v54, %v591_v53  ;;  %v4914_v51 = vor.u32 %v6018_v46, %v4911_v13  ;;  %v4885_v53 = vld [vmem:[%s9404_s2 + $0xa0] sm:$0xf]  ;;  %v6015_v54 = vld [vmem:[%s9404_s2 + $0xac] sm:$0xf0]  ;;  %v153_v46 = vadd.f32 %v6878_v8, %v6869_v3  ;;  %v182_v13 = vadd.f32 %v6903_v24, %v6905_v25 }
  0xf1   :  { %v570_v45 = vsub.f32 1.0, %v569_v22  ;;  %v4926_v22 = vor.u32 %v6024_v2, %v4925_v0  ;;  %v4869_v2 = vld [vmem:[%s9404_s2 + $0x80] sm:$0xf]  ;;  %v6006_v24 = vld [vmem:[%s9404_s2 + $0x6c] sm:$0xf] }
  0xf3   :  { %v571_v17 = vmul.f32 %v6278_v7, %v570_v45  ;;  %v4927_v45 = vld [vmem:[%s9404_s2 + $0xf8] sm:$0xf0]  ;;  %1145 = vmatpush.bf16.msrb.mxu2 %v4926_v22  ;;  %v6009_v22 = vld [vmem:[%s9404_s2 + $0x84] sm:$0xf] }
  0xf4   :  { %v4930_v12 = vor.u32 %v6022_v5, %v4927_v45  ;;  %v4871_v45 = vld [vmem:[%s9404_s2 + $0x90] sm:$0xf0] }
  0xf5   :  { %v572_v31 = vadd.f32 %v6278_v7, %v571_v17  ;;  %v4901_v17 = vld [vmem:[%s9404_s2 + $0xc0] sm:$0xf] }
  0xf6   :  { %1158 = vmatpush.bf16.msrb.mxu3 %v4930_v12  ;;  %v4877_v12 = vld [vmem:[%s9404_s2 + $0x88] sm:$0xf] }
  0xf7   :  { %v576_v37 = vsel %vm575_vm8, %v6278_v7, %v572_v31  ;;  %v4922_v7 = vor.u32 %v6021_v52, %v4919_v63  ;;  %v4902_v31 = vor.u32 %v6019_v18, %v4901_v17  ;;  %v4895_v63 = vld [vmem:[%s9404_s2 + $0xb8] sm:$0xf0]  ;;  %v6012_v17 = vld [vmem:[%s9404_s2 + $0x94] sm:$0xf0]  ;;  %v4874_v18 = vor.u32 %v6009_v22, %v4871_v45  ;;  %v4839_v45 = vld [vmem:[%s9404_s2 + $0x50] sm:$0xf0] }
  0xf8   :  { %v581_v41 = vsel %vm578_vm9, %v580_v32, %v576_v37  ;;  %v4903_v32 = vld [vmem:[%s9404_s2 + $0xd0] sm:$0xf0]  ;;  %v4909_v37 = vld [vmem:[%s9404_s2 + $0xc8] sm:$0xf] }
  0xf9   :  { %v599_v43 = vmul.f32 0.0, %v581_v41  ;;  %1132 = vmatpush.bf16.msra.mxu1 %v4922_v7  ;;  %v4906_v41 = vor.u32 %v6017_v29, %v4903_v32  ;;  %v6011_v7 = vld [vmem:[%s9404_s2 + $0x8c] sm:$0xf0]  ;;  %v4878_v29 = vor.u32 %v6012_v17, %v4877_v12  ;;  %v4879_v32 = vld [vmem:[%s9404_s2 + $0x98] sm:$0xf0] }
  0xfa   :  { %1159 = vmatpush.bf16.msrb.mxu3 %v4914_v51  ;;  %v4870_v5 = vor.u32 %v6011_v7, %v4869_v2  ;;  %v6001_v2 = vld [vmem:[%s9404_s2 + $0x44] sm:$0xf]  ;;  %v4845_v17 = vld [vmem:[%s9404_s2 + $0x48] sm:$0xf] }
  0xfb   :  { %v7167_v44 = vadd.f32 %v7092_v50, %v599_v43  ;;  %v4917_v50 = vld [vmem:[%s9404_s2 + $0xe0] sm:$0xf]  ;;  %v4910_v43 = vor.u32 %v6020_v40, %v4909_v37  ;;  %v4842_v12 = vor.u32 %v6001_v2, %v4839_v45 }
  0xfc   :  { %v4918_v62 = vor.u32 %v6023_v56, %v4917_v50  ;;  %v6016_v50 = vld [vmem:[%s9404_s2 + $0xb4] sm:$0xf0]  ;;  %v4853_v40 = vld [vmem:[%s9404_s2 + $0x60] sm:$0xf] }
  0xfd   :  { %6279 = vtanh.f32 %v7167_v44  ;;  %1133 = vmatpush.bf16.msra.mxu1 %v4906_v41  ;;  %1146 = vmatpush.bf16.msrb.mxu2 %v4910_v43  ;;  %v6007_v41 = vld [vmem:[%s9404_s2 + $0x6c] sm:$0xf0]  ;;  %v6005_v43 = vld [vmem:[%s9404_s2 + $0x64] sm:$0xf] }
  0xfe   :  { %1119 = vmatpush.bf16.msrb.mxu0 %v4918_v62  ;;  %v6014_v62 = vld [vmem:[%s9404_s2 + $0xac] sm:$0xf]  ;;  %v4854_v51 = vor.u32 %v6007_v41, %v4853_v40  ;;  %v5999_v40 = vld [vmem:[%s9404_s2 + $0x2c] sm:$0xf0]  ;;  %v211_v41 = vadd.f32 %v6882_v10, %v6891_v15 }
  0xff   :  { %v4898_v0 = vor.u32 %v6014_v62, %v4895_v63  ;;  %v4837_v63 = vld [vmem:[%s9404_s2 + $0x40] sm:$0xf] }
 0x101   :  { %1160 = vmatpush.bf16.msrb.mxu3 %v4898_v0  ;;  %v6003_v0 = vld [vmem:[%s9404_s2 + $0x4c] sm:$0xf0] }
 0x102   :  { %1120 = vmatpush.bf16.msrb.mxu0 %v4902_v31  ;;  %v6010_v31 = vld [vmem:[%s9404_s2 + $0x8c] sm:$0xf] }
 0x103   :  { %v6280_v55 = vpop.eup %6279  ;;  %v4882_v37 = vor.u32 %v6010_v31, %v4879_v32  ;;  %v4847_v32 = vld [vmem:[%s9404_s2 + $0x58] sm:$0xf0] }
 0x104   :  { %v603_v60 = vmul.f32 %v6280_v55, %v596_v59  ;;  %v6013_v55 = vld [vmem:[%s9404_s2 + $0xa4] sm:$0xf]  ;;  %v4886_v59 = vor.u32 %v6015_v54, %v4885_v53  ;;  %v4855_v53 = vld [vmem:[%s9404_s2 + $0x70] sm:$0xf0]  ;;  %v4861_v54 = vld [vmem:[%s9404_s2 + $0x68] sm:$0xf] }
 0x105   :  { %1161 = vmatpush.bf16.msrb.mxu3 %v4882_v37  ;;  %v4858_v8 = vor.u32 %v6005_v43, %v4855_v53  ;;  %v4821_v37 = vld [vmem:[%s9404_s2 + $0x20] sm:$0xf]  ;;  %v4829_v53 = vld [vmem:[%s9404_s2 + $0x28] sm:$0xf] }
 0x106   :  { %v604_v61 = vpack.c.bf16 %v603_v60, %v603_v60  ;;  %v4887_v60 = vld [vmem:[%s9404_s2 + $0xb0] sm:$0xf0]  ;;  %1121 = vmatpush.bf16.msrb.mxu0 %v4886_v59 }
 0x107   :  { %v4890_v56 = vor.u32 %v6013_v55, %v4887_v60  ;;  %v6008_v55 = vld [vmem:[%s9404_s2 + $0x74] sm:$0xf0] }
 0x108   :  { %605 = vst [vmem:[#allocation3] sm:$0xf] %v604_v61  ;;  %810 = vmatmul.bf16.vlgmr.msra.gmra.mxu0 %v604_v61  ;;  %823 = vmatmul.bf16.vlgmr.msrb.gmra.mxu1 %v604_v61 }
 0x109   :  { %836 = vmatmul.bf16.vlgmr.msra.gmra.mxu2 %v604_v61  ;;  %849 = vmatmul.bf16.vlgmr.msra.gmra.mxu3 %v604_v61  ;;  %v4893_v61 = vld [vmem:[%s9404_s2 + $0xa8] sm:$0xf] }
 0x10a   :  { %v4894_v52 = vor.u32 %v6016_v50, %v4893_v61  ;;  %1134 = vmatpush.bf16.msra.mxu1 %v4890_v56  ;;  %1122 = vmatpush.bf16.msrb.mxu0 %v4870_v5  ;;  %v4862_v61 = vor.u32 %v6008_v55, %v4861_v54  ;;  %v4863_v50 = vld [vmem:[%s9404_s2 + $0x78] sm:$0xf0]  ;;  %v4838_v5 = vor.u32 %v6003_v0, %v4837_v63  ;;  %v5995_v63 = vld [vmem:[%s9404_s2 + $0xc] sm:$0xf0]  ;;  %v5993_v0 = vld [vmem:[%s9404_s2 + $0x4] sm:$0xf] }
 0x10b   :  { %v4866_v62 = vor.u32 %v6006_v24, %v4863_v50 }
 0x10c   :  { %1147 = vmatpush.bf16.msrb.mxu2 %v4894_v52 }
 0x10d   :  { %1162 = vmatpush.bf16.msrb.mxu3 %v4866_v62  ;;  %v4805_v62 = vld [vmem:[%s9404_s2] sm:$0xf] }
 0x10e   :  { %1135 = vmatpush.bf16.msra.mxu1 %v4874_v18  ;;  %1123 = vmatpush.bf16.msrb.mxu0 %v4854_v51  ;;  %v6004_v18 = vld [vmem:[%s9404_s2 + $0x54] sm:$0xf0]  ;;  %v4823_v51 = vld [vmem:[%s9404_s2 + $0x30] sm:$0xf0]  ;;  %v4806_v2 = vor.u32 %v5995_v63, %v4805_v62 }
 0x10f   :  { %v4846_v31 = vor.u32 %v6004_v18, %v4845_v17  ;;  %v5994_v17 = vld [vmem:[%s9404_s2 + $0xc] sm:$0xf]  ;;  %v4815_v18 = vld [vmem:[%s9404_s2 + $0x18] sm:$0xf0] }
 0x110   :  { %1148 = vmatpush.bf16.msrb.mxu2 %v4878_v29  ;;  %v6002_v29 = vld [vmem:[%s9404_s2 + $0x4c] sm:$0xf] }
 0x111   :  { %v4850_v43 = vor.u32 %v6002_v29, %v4847_v32 }
 0x112   :  { %1136 = vmatpush.bf16.msra.mxu1 %v4858_v8  ;;  %1124 = vmatpush.bf16.msrb.mxu0 %v4838_v5  ;;  %v4831_v8 = vld [vmem:[%s9404_s2 + $0x38] sm:$0xf0]  ;;  %v5996_v5 = vld [vmem:[%s9404_s2 + $0x14] sm:$0xf0] }
 0x113   :  { %1163 = vmatpush.bf16.msrb.mxu3 %v4850_v43 }
 0x114   :  { %1149 = vmatpush.bf16.msrb.mxu2 %v4862_v61 }
 0x116   :  { %1137 = vmatpush.bf16.msra.mxu1 %v4842_v12 }
 0x118   :  { %1150 = vmatpush.bf16.msrb.mxu2 %v4846_v31 }
 0x185   :  { %v811_v59 = vpop.f32.mrf.mxu0  ;;  %v824_v60 = vpop.f32.mrf.mxu1 }
 0x186   :  { %v854_v56 = vadd.f32 %v811_v59, %v153_v46  ;;  %v855_v52 = vadd.f32 %v824_v60, %v182_v13  ;;  %v4822_v46 = vor.u32 %v5999_v40, %v4821_v37  ;;  %v5997_v13 = vld [vmem:[%s9404_s2 + $0x24] sm:$0xf]  ;;  %v6000_v59 = vld [vmem:[%s9404_s2 + $0x34] sm:$0xf0]  ;;  %v5998_v60 = vld [vmem:[%s9404_s2 + $0x2c] sm:$0xf]  ;;  %v4818_v40 = vor.u32 %v5994_v17, %v4815_v18 }
 0x187   :  { %v4826_v10 = vor.u32 %v5997_v13, %v4823_v51  ;;  %v240_v51 = vadd.f32 %v6884_v11, %v6893_v16 }
 0x188   :  { %v4800_v7 = vmul.f32 -1.442695, %v854_v56  ;;  %v4801_v22 = vmul.f32 -1.442695, %v855_v52  ;;  %v4830_v56 = vor.u32 %v6000_v59, %v4829_v53  ;;  %v4834_v52 = vor.u32 %v5998_v60, %v4831_v8  ;;  %1125 = vmatpush.bf16.msrb.mxu0 %v4822_v46 }
 0x189   :  { %1138 = vmatpush.bf16.msra.mxu1 %v4826_v10 }
 0x18a   :  { %6281 = vpow2.f32 %v4800_v7  ;;  %v4807_v7 = vld [vmem:[%s9404_s2 + $0x10] sm:$0xf0]  ;;  %1151 = vmatpush.bf16.msrb.mxu2 %v4830_v56  ;;  %1164 = vmatpush.bf16.msrb.mxu3 %v4834_v52 }
 0x18b   :  { %6283 = vpow2.f32 %v4801_v22  ;;  %v4813_v22 = vld [vmem:[%s9404_s2 + $0x8] sm:$0xf]  ;;  %v4810_v12 = vor.u32 %v5993_v0, %v4807_v7 }
 0x18c   :  { %v837_v54 = vpop.f32.mrf.mxu2  ;;  %v850_v55 = vpop.f32.mrf.mxu3  ;;  %v4814_v31 = vor.u32 %v5996_v5, %v4813_v22  ;;  %1126 = vmatpush.bf16.msrb.mxu0 %v4806_v2 }
 0x18d   :  { %v856_v61 = vadd.f32 %v837_v54, %v211_v41  ;;  %v813_v24 = vpop.f32.mrf.mxu0  ;;  %v826_v50 = vpop.f32.mrf.mxu1  ;;  %1139 = vmatpush.bf16.msra.mxu1 %v4810_v12  ;;  %v857_v10 = vadd.f32 %v850_v55, %v240_v51 }
 0x18e   :  { %1152 = vmatpush.bf16.msrb.mxu2 %v4814_v31  ;;  %1165 = vmatpush.bf16.msrb.mxu3 %v4818_v40 }
 0x18f   :  { %v4802_v45 = vmul.f32 -1.442695, %v856_v61 }
 0x190   :  { %v6282_v29 = vpop.eup %6281 }
 0x191   :  { %v6284_v32 = vpop.eup %6283  ;;  %v867_v37 = vadd.f32 1.0, %v6282_v29  ;;  %6285 = vpow2.f32 %v4802_v45 }
 0x192   :  { %v868_v41 = vadd.f32 1.0, %v6284_v32 }
 0x193   :  { %6287 = vrcp.f32 %v867_v37  ;;  %v881_v50 = vand.u32 2147483648, %v867_v37  ;;  %v879_v62 = vand.u32 2147483647, %v867_v37  ;;  %vm875_vm0 = vweird.f32 %v867_v37 }
 0x194   :  { %6289 = vrcp.f32 %v868_v41  ;;  %v839_v43 = vpop.f32.mrf.mxu2  ;;  %v852_v46 = vpop.f32.mrf.mxu3  ;;  %v896_v56 = vand.u32 2147483648, %v868_v41  ;;  %v894_v0 = vand.u32 2147483647, %v868_v41  ;;  %vm890_vm1 = vweird.f32 %v868_v41 }
 0x195   :  { %v882_v7 = vor.u32 1.1754944e-38, %v881_v50  ;;  %vm880_vm4 = vcmp.eq.f32.partialorder %v879_v62, 8.507059e+37  ;;  %v5050_v50 = vld [vmem:[%s9404_s2 + $0xf0] sm:$0xf0] }
 0x196   :  { %v897_v5 = vor.u32 1.1754944e-38, %v896_v56  ;;  %vm895_vm5 = vcmp.eq.f32.partialorder %v894_v0, 8.507059e+37  ;;  %v5056_v56 = vld [vmem:[%s9404_s2 + $0xe8] sm:$0xf]  ;;  %v6054_v0 = vld [vmem:[%s9404_s2 + $0xec] sm:$0xf] }
 0x197   :  { %v6286_v13 = vpop.eup %6285 }
 0x198   :  { %v869_v53 = vadd.f32 1.0, %v6286_v13 }
 0x199   :  { %v6288_v54 = vpop.eup %6287 }
 0x19a   :  { %v6290_v59 = vpop.eup %6289  ;;  %v871_v60 = vmul.f32 %v6288_v54, %v867_v37  ;;  %6291 = vrcp.f32 %v869_v53  ;;  %vm876_vm14 = vweird.f32 %v6288_v54  ;;  %v911_v46 = vand.u32 2147483648, %v869_v53 }
 0x19b   :  { %v886_v8 = vmul.f32 %v6290_v59, %v868_v41  ;;  %6293 = vtanh.f32 %v857_v10  ;;  %vm891_vm15 = vweird.f32 %v6290_v59  ;;  %vm877_vm2 = vmor %vm875_vm0, %vm876_vm14  ;;  %vm905_vm7 = vweird.f32 %v869_v53 }
 0x19c   :  { %v872_v61 = vsub.f32 1.0, %v871_v60  ;;  %vm892_vm3 = vmor %vm890_vm1, %vm891_vm15  ;;  %v909_v13 = vand.u32 2147483647, %v869_v53 }
 0x19d   :  { %v887_v24 = vsub.f32 1.0, %v886_v8 }
 0x19e   :  { %v873_v52 = vmul.f32 %v6288_v54, %v872_v61  ;;  %vm910_vm9 = vcmp.eq.f32.partialorder %v909_v13, 8.507059e+37  ;;  %v6053_v61 = vld [vmem:[%s9404_s2 + $0xe4] sm:$0xf] }
 0x19f   :  { %v888_v63 = vmul.f32 %v6290_v59, %v887_v24  ;;  %v5053_v62 = vor.u32 %v6053_v61, %v5050_v50  ;;  %v5000_v61 = vld [vmem:[%s9404_s2 + $0x80] sm:$0xf]  ;;  %v6041_v50 = vld [vmem:[%s9404_s2 + $0x84] sm:$0xf] }
 0x1a0   :  { %v6292_v2 = vpop.eup %6291  ;;  %v874_v11 = vadd.f32 %v6288_v54, %v873_v52  ;;  %v6056_v52 = vld [vmem:[%s9404_s2 + $0xf4] sm:$0xf0] }
 0x1a1   :  { %v901_v55 = vmul.f32 %v6292_v2, %v869_v53  ;;  %v889_v22 = vadd.f32 %v6290_v59, %v888_v63  ;;  %v6294_v12 = vpop.eup %6293  ;;  %vm906_vm6 = vweird.f32 %v6292_v2  ;;  %v6055_v53 = vld [vmem:[%s9404_s2 + $0xec] sm:$0xf0]  ;;  %v5057_v63 = vor.u32 %v6056_v52, %v5056_v56  ;;  %1449 = vmatpush.bf16.msrb.mxu1 %v5053_v62  ;;  %v5002_v52 = vld [vmem:[%s9404_s2 + $0x90] sm:$0xf0]  ;;  %v5008_v62 = vld [vmem:[%s9404_s2 + $0x88] sm:$0xf] }
 0x1a2   :  { %v878_v45 = vsel %vm877_vm2, %v6288_v54, %v874_v11  ;;  %vm907_vm8 = vmor %vm905_vm7, %vm906_vm6  ;;  %v912_v54 = vor.u32 1.1754944e-38, %v911_v46  ;;  %v6045_v46 = vld [vmem:[%s9404_s2 + $0xa4] sm:$0xf] }
 0x1a3   :  { %v902_v17 = vsub.f32 1.0, %v901_v55  ;;  %v883_v18 = vsel %vm880_vm4, %v882_v7, %v878_v45  ;;  %v893_v29 = vsel %vm892_vm3, %v6290_v59, %v889_v22  ;;  %1462 = vmatpush.bf16.msra.mxu2 %v5057_v63  ;;  %v5032_v55 = vld [vmem:[%s9404_s2 + $0xc0] sm:$0xf]  ;;  %v6051_v7 = vld [vmem:[%s9404_s2 + $0xcc] sm:$0xf0] }
 0x1a4   :  { %v898_v31 = vsel %vm895_vm5, %v897_v5, %v893_v29  ;;  %v917_v32 = vmul.f32 %v6294_v12, %v883_v18  ;;  %v6049_v22 = vld [vmem:[%s9404_s2 + $0xc4] sm:$0xf]  ;;  %v5033_v5 = vor.u32 %v6051_v7, %v5032_v55  ;;  %v5034_v45 = vld [vmem:[%s9404_s2 + $0xd0] sm:$0xf0]  ;;  %v5040_v12 = vld [vmem:[%s9404_s2 + $0xc8] sm:$0xf] }
 0x1a5   :  { %v903_v40 = vmul.f32 %v6292_v2, %v902_v17  ;;  %v916_v43 = vmul.f32 %v898_v31, %v7167_v44  ;;  %v5048_v44 = vld [vmem:[%s9404_s2 + $0xe0] sm:$0xf]  ;;  %v6052_v17 = vld [vmem:[%s9404_s2 + $0xd4] sm:$0xf0]  ;;  %v5037_v18 = vor.u32 %v6049_v22, %v5034_v45  ;;  %v6050_v31 = vld [vmem:[%s9404_s2 + $0xcc] sm:$0xf] }
 0x1a6   :  { %v5049_v24 = vor.u32 %v6055_v53, %v5048_v44  ;;  %v5041_v29 = vor.u32 %v6052_v17, %v5040_v12  ;;  %v5026_v44 = vld [vmem:[%s9404_s2 + $0xb8] sm:$0xf0]  ;;  %v6044_v63 = vld [vmem:[%s9404_s2 + $0x94] sm:$0xf0]  ;;  %v4984_v22 = vld [vmem:[%s9404_s2 + $0x60] sm:$0xf] }
 0x1a7   :  { %v7371_v37 = vadd.f32 %v917_v32, %v916_v43  ;;  %v904_v41 = vadd.f32 %v6292_v2, %v903_v40  ;;  %v5042_v32 = vld [vmem:[%s9404_s2 + $0xd8] sm:$0xf0]  ;;  %1450 = vmatpush.bf16.msrb.mxu1 %v5037_v18  ;;  %v5016_v43 = vld [vmem:[%s9404_s2 + $0xa0] sm:$0xf]  ;;  %v6037_v45 = vld [vmem:[%s9404_s2 + $0x64] sm:$0xf] }
 0x1a8   :  { %1436 = vmatpush.bf16.msra.mxu0 %v5049_v24  ;;  %v5045_v40 = vor.u32 %v6050_v31, %v5042_v32  ;;  %1463 = vmatpush.bf16.msra.mxu2 %v5041_v29  ;;  %v6043_v24 = vld [vmem:[%s9404_s2 + $0x8c] sm:$0xf0]  ;;  %v5010_v55 = vld [vmem:[%s9404_s2 + $0x98] sm:$0xf0]  ;;  %v4986_v17 = vld [vmem:[%s9404_s2 + $0x70] sm:$0xf0] }
 0x1a9   :  { %6295 = vtanh.f32 %v7371_v37  ;;  %v908_v51 = vsel %vm907_vm8, %v6292_v2, %v904_v41  ;;  %v5058_v2 = vld [vmem:[%s9404_s2 + $0xf8] sm:$0xf0]  ;;  %v6047_v41 = vld [vmem:[%s9404_s2 + $0xac] sm:$0xf0]  ;;  %v5001_v56 = vor.u32 %v6043_v24, %v5000_v61  ;;  %v4992_v18 = vld [vmem:[%s9404_s2 + $0x68] sm:$0xf] }
 0x1aa   :  { %v913_v59 = vsel %vm910_vm9, %v912_v54, %v908_v51  ;;  %v5061_v11 = vor.u32 %v6054_v0, %v5058_v2  ;;  %v5017_v13 = vor.u32 %v6047_v41, %v5016_v43  ;;  %v5018_v51 = vld [vmem:[%s9404_s2 + $0xb0] sm:$0xf0]  ;;  %v5024_v54 = vld [vmem:[%s9404_s2 + $0xa8] sm:$0xf]  ;;  %v5005_v0 = vor.u32 %v6041_v50, %v5002_v52  ;;  %v6040_v29 = vld [vmem:[%s9404_s2 + $0x74] sm:$0xf0] }
 0x1ab   :  { %v5009_v2 = vor.u32 %v6044_v63, %v5008_v62  ;;  %v4993_v43 = vor.u32 %v6040_v29, %v4992_v18  ;;  %v6038_v41 = vld [vmem:[%s9404_s2 + $0x6c] sm:$0xf]  ;;  %v4976_v61 = vld [vmem:[%s9404_s2 + $0x48] sm:$0xf]  ;;  %v6036_v24 = vld [vmem:[%s9404_s2 + $0x54] sm:$0xf0] }
 0x1ac   :  { %1475 = vmatpush.bf16.msra.mxu3 %v5061_v11  ;;  %1437 = vmatpush.bf16.msra.mxu0 %v5033_v5  ;;  %v6042_v11 = vld [vmem:[%s9404_s2 + $0x8c] sm:$0xf]  ;;  %v6039_v5 = vld [vmem:[%s9404_s2 + $0x6c] sm:$0xf0]  ;;  %v4978_v52 = vld [vmem:[%s9404_s2 + $0x58] sm:$0xf0] }
 0x1ad   :  { %v5013_v7 = vor.u32 %v6042_v11, %v5010_v55  ;;  %v4985_v12 = vor.u32 %v6039_v5, %v4984_v22  ;;  %v6034_v50 = vld [vmem:[%s9404_s2 + $0x4c] sm:$0xf]  ;;  %v4952_v62 = vld [vmem:[%s9404_s2 + $0x20] sm:$0xf]  ;;  %v6031_v63 = vld [vmem:[%s9404_s2 + $0x2c] sm:$0xf0] }
 0x1ae   :  { %v6029_v11 = vld [vmem:[%s9404_s2 + $0x24] sm:$0xf]  ;;  %v4954_v55 = vld [vmem:[%s9404_s2 + $0x30] sm:$0xf0]  ;;  %v4962_v18 = vld [vmem:[%s9404_s2 + $0x38] sm:$0xf0] }
 0x1af   :  { %v6296_v10 = vpop.eup %6295 }
 0x1b0   :  { %v920_v60 = vmul.f32 %v6296_v10, %v913_v59  ;;  %1476 = vmatpush.bf16.msra.mxu3 %v5045_v40  ;;  %v6048_v10 = vld [vmem:[%s9404_s2 + $0xb4] sm:$0xf0]  ;;  %v5021_v59 = vor.u32 %v6045_v46, %v5018_v51  ;;  %1438 = vmatpush.bf16.msra.mxu0 %v5017_v13  ;;  %v4989_v40 = vor.u32 %v6037_v45, %v4986_v17  ;;  %v4994_v46 = vld [vmem:[%s9404_s2 + $0x78] sm:$0xf0]  ;;  %v6030_v17 = vld [vmem:[%s9404_s2 + $0x2c] sm:$0xf] }
 0x1b1   :  { %v4957_v45 = vor.u32 %v6029_v11, %v4954_v55 }
 0x1b2   :  { %v921_v8 = vpack.c.bf16 %v920_v60, %v920_v60  ;;  %v5025_v60 = vor.u32 %v6048_v10, %v5024_v54  ;;  %1451 = vmatpush.bf16.msrb.mxu1 %v5021_v59  ;;  %v4997_v54 = vor.u32 %v6038_v41, %v4994_v46  ;;  %v4968_v10 = vld [vmem:[%s9404_s2 + $0x40] sm:$0xf]  ;;  %v6035_v59 = vld [vmem:[%s9404_s2 + $0x4c] sm:$0xf0] }
 0x1b3   :  { %v4936_v41 = vld [vmem:[%s9404_s2] sm:$0xf]  ;;  %v6027_v46 = vld [vmem:[%s9404_s2 + $0xc] sm:$0xf0] }
 0x1b4   :  { %922 = vst [vmem:[#allocation3 + $0x4] sm:$0xf] %v921_v8  ;;  %1127 = vmatmul.bf16.vlgmr.msrb.gmra.mxu0 %v921_v8  ;;  %1140 = vmatmul.bf16.vlgmr.msra.gmra.mxu1 %v921_v8 }
 0x1b5   :  { %1153 = vmatmul.bf16.vlgmr.msrb.gmra.mxu2 %v921_v8  ;;  %1166 = vmatmul.bf16.vlgmr.msrb.gmra.mxu3 %v921_v8  ;;  %v6046_v8 = vld [vmem:[%s9404_s2 + $0xac] sm:$0xf] }
 0x1b6   :  { %v5029_v53 = vor.u32 %v6046_v8, %v5026_v44  ;;  %1464 = vmatpush.bf16.msra.mxu2 %v5025_v60  ;;  %1439 = vmatpush.bf16.msra.mxu0 %v5001_v56  ;;  %v6033_v60 = vld [vmem:[%s9404_s2 + $0x44] sm:$0xf]  ;;  %v4970_v44 = vld [vmem:[%s9404_s2 + $0x50] sm:$0xf0]  ;;  %v4977_v56 = vor.u32 %v6036_v24, %v4976_v61 }
 0x1b7   :  { %1452 = vmatpush.bf16.msrb.mxu1 %v5005_v0  ;;  %v4981_v0 = vor.u32 %v6034_v50, %v4978_v52 }
 0x1b8   :  { %1477 = vmatpush.bf16.msra.mxu3 %v5029_v53  ;;  %v4973_v53 = vor.u32 %v6033_v60, %v4970_v44 }
 0x1ba   :  { %1465 = vmatpush.bf16.msra.mxu2 %v5009_v2  ;;  %1440 = vmatpush.bf16.msra.mxu0 %v4985_v12  ;;  %v4953_v2 = vor.u32 %v6031_v63, %v4952_v62  ;;  %v6032_v12 = vld [vmem:[%s9404_s2 + $0x34] sm:$0xf0] }
 0x1bb   :  { %1453 = vmatpush.bf16.msrb.mxu1 %v4989_v40 }
 0x1bc   :  { %1478 = vmatpush.bf16.msra.mxu3 %v5013_v7  ;;  %v4960_v7 = vld [vmem:[%s9404_s2 + $0x28] sm:$0xf] }
 0x1bd   :  { %v4961_v40 = vor.u32 %v6032_v12, %v4960_v7 }
 0x1be   :  { %1466 = vmatpush.bf16.msra.mxu2 %v4993_v43  ;;  %v4965_v43 = vor.u32 %v6030_v17, %v4962_v18 }
 0x1bf   :  { %1454 = vmatpush.bf16.msrb.mxu1 %v4973_v53 }
 0x1c0   :  { %1479 = vmatpush.bf16.msra.mxu3 %v4997_v54  ;;  %v4944_v54 = vld [vmem:[%s9404_s2 + $0x8] sm:$0xf] }
 0x1c2   :  { %1467 = vmatpush.bf16.msra.mxu2 %v4977_v56 }
 0x1c3   :  { %1455 = vmatpush.bf16.msrb.mxu1 %v4957_v45 }
 0x1c4   :  { %1480 = vmatpush.bf16.msra.mxu3 %v4981_v0 }
 0x1c6   :  { %1468 = vmatpush.bf16.msra.mxu2 %v4961_v40 }
 0x1c8   :  { %1481 = vmatpush.bf16.msra.mxu3 %v4965_v43 }
 0x231   :  { %v1128_v31 = vpop.f32.mrf.mxu0  ;;  %v1141_v32 = vpop.f32.mrf.mxu1 }
 0x232   :  { %v1171_v13 = vadd.f32 %v1128_v31, %v6889_v14  ;;  %v1172_v51 = vadd.f32 %v1141_v32, %v6915_v30  ;;  %v4969_v30 = vor.u32 %v6035_v59, %v4968_v10  ;;  %v6028_v10 = vld [vmem:[%s9404_s2 + $0x14] sm:$0xf0] }
 0x233   :  { %v4945_v44 = vor.u32 %v6028_v10, %v4944_v54 }
 0x234   :  { %v4931_v8 = vmul.f32 -1.442695, %v1171_v13  ;;  %v4932_v14 = vmul.f32 -1.442695, %v1172_v51  ;;  %1441 = vmatpush.bf16.msra.mxu0 %v4969_v30  ;;  %v6025_v13 = vld [vmem:[%s9404_s2 + $0x4] sm:$0xf]  ;;  %v4937_v51 = vor.u32 %v6027_v46, %v4936_v41 }
 0x235   :  { %1469 = vmatpush.bf16.msra.mxu2 %v4945_v44 }
 0x236   :  { %6297 = vpow2.f32 %v4931_v8  ;;  %v6026_v8 = vld [vmem:[%s9404_s2 + $0xc] sm:$0xf] }
 0x237   :  { %6299 = vpow2.f32 %v4932_v14  ;;  %v4946_v14 = vld [vmem:[%s9404_s2 + $0x18] sm:$0xf0] }
 0x238   :  { %v1154_v22 = vpop.f32.mrf.mxu2  ;;  %v1167_v5 = vpop.f32.mrf.mxu3  ;;  %1442 = vmatpush.bf16.msra.mxu0 %v4953_v2  ;;  %v4949_v24 = vor.u32 %v6026_v8, %v4946_v14 }
 0x239   :  { %v1173_v29 = vadd.f32 %v1154_v22, %v6896_v19  ;;  %v1130_v31 = vpop.f32.mrf.mxu0  ;;  %v1143_v32 = vpop.f32.mrf.mxu1  ;;  %v4938_v19 = vld [vmem:[%s9404_s2 + $0x10] sm:$0xf0]  ;;  %v1174_v2 = vadd.f32 %v1167_v5, %v6899_v20 }
 0x23a   :  { %v4941_v60 = vor.u32 %v6025_v13, %v4938_v19  ;;  %1482 = vmatpush.bf16.msra.mxu3 %v4949_v24 }
 0x23b   :  { %v4933_v59 = vmul.f32 -1.442695, %v1173_v29 }
 0x23c   :  { %v6298_v30 = vpop.eup %6297  ;;  %1443 = vmatpush.bf16.msra.mxu0 %v4937_v51  ;;  %1456 = vmatpush.bf16.msrb.mxu1 %v4941_v60 }
 0x23d   :  { %v6300_v53 = vpop.eup %6299  ;;  %v1184_v61 = vadd.f32 1.0, %v6298_v30  ;;  %6301 = vpow2.f32 %v4933_v59 }
 0x23e   :  { %v1185_v50 = vadd.f32 1.0, %v6300_v53 }
 0x23f   :  { %6303 = vrcp.f32 %v1184_v61  ;;  %v1198_v12 = vand.u32 2147483648, %v1184_v61  ;;  %v1196_v29 = vand.u32 2147483647, %v1184_v61  ;;  %vm1192_vm12 = vweird.f32 %v1184_v61 }
 0x240   :  { %6305 = vrcp.f32 %v1185_v50  ;;  %v1156_v56 = vpop.f32.mrf.mxu2  ;;  %v1169_v52 = vpop.f32.mrf.mxu3  ;;  %v1213_v17 = vand.u32 2147483648, %v1185_v50  ;;  %v1211_v32 = vand.u32 2147483647, %v1185_v50  ;;  %vm1207_vm13 = vweird.f32 %v1185_v50 }
 0x241   :  { %v1199_v5 = vor.u32 1.1754944e-38, %v1198_v12  ;;  %vm1197_vm0 = vcmp.eq.f32.partialorder %v1196_v29, 8.507059e+37 }
 0x242   :  { %v1214_v46 = vor.u32 1.1754944e-38, %v1213_v17  ;;  %vm1212_vm1 = vcmp.eq.f32.partialorder %v1211_v32, 8.507059e+37  ;;  %v6086_v17 = vld [vmem:[%s9404_s2 + $0xec] sm:$0xf]  ;;  %v6083_v32 = vld [vmem:[%s9404_s2 + $0xcc] sm:$0xf0] }
 0x243   :  { %v6302_v62 = vpop.eup %6301 }
 0x244   :  { %v1186_v63 = vadd.f32 1.0, %v6302_v62 }
 0x245   :  { %v6304_v0 = vpop.eup %6303 }
 0x246   :  { %v6306_v11 = vpop.eup %6305  ;;  %v1188_v55 = vmul.f32 %v6304_v0, %v1184_v61  ;;  %6307 = vrcp.f32 %v1186_v63  ;;  %vm1193_vm10 = vweird.f32 %v6304_v0  ;;  %v1228_v53 = vand.u32 2147483648, %v1186_v63 }
 0x247   :  { %v1203_v7 = vmul.f32 %v6306_v11, %v1185_v50  ;;  %6309 = vtanh.f32 %v1174_v2  ;;  %vm1208_vm11 = vweird.f32 %v6306_v11  ;;  %vm1194_vm14 = vmor %vm1192_vm12, %vm1193_vm10  ;;  %vm1222_vm3 = vweird.f32 %v1186_v63  ;;  %v6085_v2 = vld [vmem:[%s9404_s2 + $0xe4] sm:$0xf] }
 0x248   :  { %v1189_v22 = vsub.f32 1.0, %v1188_v55  ;;  %vm1209_vm15 = vmor %vm1207_vm13, %vm1208_vm11  ;;  %v1226_v61 = vand.u32 2147483647, %v1186_v63  ;;  %v1229_v50 = vor.u32 1.1754944e-38, %v1228_v53  ;;  %v5181_v55 = vld [vmem:[%s9404_s2 + $0xf0] sm:$0xf0] }
 0x249   :  { %v1204_v45 = vsub.f32 1.0, %v1203_v7  ;;  %v5187_v7 = vld [vmem:[%s9404_s2 + $0xe8] sm:$0xf]  ;;  %v6080_v53 = vld [vmem:[%s9404_s2 + $0xb4] sm:$0xf0] }
 0x24a   :  { %v1190_v18 = vmul.f32 %v6304_v0, %v1189_v22  ;;  %vm1227_vm5 = vcmp.eq.f32.partialorder %v1226_v61, 8.507059e+37  ;;  %v6088_v22 = vld [vmem:[%s9404_s2 + $0xf4] sm:$0xf0] }
 0x24b   :  { %v1205_v31 = vmul.f32 %v6306_v11, %v1204_v45  ;;  %v5184_v45 = vor.u32 %v6085_v2, %v5181_v55  ;;  %v5188_v12 = vor.u32 %v6088_v22, %v5187_v7  ;;  %v5133_v2 = vld [vmem:[%s9404_s2 + $0x90] sm:$0xf0]  ;;  %v6076_v55 = vld [vmem:[%s9404_s2 + $0x94] sm:$0xf0] }
 0x24c   :  { %v6308_v40 = vpop.eup %6307  ;;  %v1191_v43 = vadd.f32 %v6304_v0, %v1190_v18  ;;  %v5189_v18 = vld [vmem:[%s9404_s2 + $0xf8] sm:$0xf0] }
 0x24d   :  { %v1218_v20 = vmul.f32 %v6308_v40, %v1186_v63  ;;  %v1206_v41 = vadd.f32 %v6306_v11, %v1205_v31  ;;  %v6310_v51 = vpop.eup %6309  ;;  %vm1223_vm2 = vweird.f32 %v6308_v40  ;;  %v6087_v63 = vld [vmem:[%s9404_s2 + $0xec] sm:$0xf0]  ;;  %v5192_v29 = vor.u32 %v6086_v17, %v5189_v18  ;;  %1766 = vmatpush.bf16.msra.mxu1 %v5184_v45  ;;  %1779 = vmatpush.bf16.msrb.mxu2 %v5188_v12  ;;  %v5163_v31 = vld [vmem:[%s9404_s2 + $0xc0] sm:$0xf]  ;;  %v6074_v45 = vld [vmem:[%s9404_s2 + $0x8c] sm:$0xf] }
 0x24e   :  { %v1195_v13 = vsel %vm1194_vm14, %v6304_v0, %v1191_v43  ;;  %vm1224_vm4 = vmor %vm1222_vm3, %vm1223_vm2  ;;  %v5164_v43 = vor.u32 %v6083_v32, %v5163_v31  ;;  %v5141_v12 = vld [vmem:[%s9404_s2 + $0x98] sm:$0xf0]  ;;  %v5115_v18 = vld [vmem:[%s9404_s2 + $0x60] sm:$0xf]  ;;  %v158_v32 = vadd.f32 %v6901_v23, %v6869_v3 }
 0x24f   :  { %v1219_v19 = vsub.f32 1.0, %v1218_v20  ;;  %v1200_v54 = vsel %vm1197_vm0, %v1199_v5, %v1195_v13  ;;  %v1210_v10 = vsel %vm1209_vm15, %v6306_v11, %v1206_v41  ;;  %1792 = vmatpush.bf16.msrb.mxu3 %v5192_v29  ;;  %v5165_v20 = vld [vmem:[%s9404_s2 + $0xd0] sm:$0xf0]  ;;  %v5171_v5 = vld [vmem:[%s9404_s2 + $0xc8] sm:$0xf]  ;;  %v5144_v17 = vor.u32 %v6074_v45, %v5141_v12 }
 0x250   :  { %v1215_v59 = vsel %vm1212_vm1, %v1214_v46, %v1210_v10  ;;  %v1234_v60 = vmul.f32 %v6310_v51, %v1200_v54  ;;  %v6084_v41 = vld [vmem:[%s9404_s2 + $0xd4] sm:$0xf0]  ;;  %v6082_v51 = vld [vmem:[%s9404_s2 + $0xcc] sm:$0xf]  ;;  %v5147_v10 = vld [vmem:[%s9404_s2 + $0xa0] sm:$0xf] }
 0x251   :  { %v1220_v8 = vmul.f32 %v6308_v40, %v1219_v19  ;;  %v1233_v14 = vmul.f32 %v1215_v59, %v7371_v37  ;;  %v5179_v37 = vld [vmem:[%s9404_s2 + $0xe0] sm:$0xf]  ;;  %v5172_v13 = vor.u32 %v6084_v41, %v5171_v5  ;;  %v5173_v19 = vld [vmem:[%s9404_s2 + $0xd8] sm:$0xf0]  ;;  %v6079_v59 = vld [vmem:[%s9404_s2 + $0xac] sm:$0xf0] }
 0x252   :  { %v5180_v11 = vor.u32 %v6087_v63, %v5179_v37  ;;  %v5176_v54 = vor.u32 %v6082_v51, %v5173_v19  ;;  %v6073_v37 = vld [vmem:[%s9404_s2 + $0x84] sm:$0xf]  ;;  %v6071_v29 = vld [vmem:[%s9404_s2 + $0x6c] sm:$0xf0]  ;;  %v5123_v5 = vld [vmem:[%s9404_s2 + $0x68] sm:$0xf] }
 0x253   :  { %v7571_v30 = vadd.f32 %v1234_v60, %v1233_v14  ;;  %v1221_v44 = vadd.f32 %v6308_v40, %v1220_v8  ;;  %1780 = vmatpush.bf16.msrb.mxu2 %v5172_v13  ;;  %v6077_v60 = vld [vmem:[%s9404_s2 + $0xa4] sm:$0xf]  ;;  %v5148_v8 = vor.u32 %v6079_v59, %v5147_v10  ;;  %v5149_v14 = vld [vmem:[%s9404_s2 + $0xb0] sm:$0xf0]  ;;  %v5136_v7 = vor.u32 %v6073_v37, %v5133_v2  ;;  %v6072_v41 = vld [vmem:[%s9404_s2 + $0x74] sm:$0xf0] }
 0x254   :  { %1753 = vmatpush.bf16.msrb.mxu0 %v5180_v11  ;;  %1793 = vmatpush.bf16.msrb.mxu3 %v5176_v54  ;;  %v5152_v61 = vor.u32 %v6077_v60, %v5149_v14  ;;  %v5139_v11 = vld [vmem:[%s9404_s2 + $0x88] sm:$0xf]  ;;  %v6069_v31 = vld [vmem:[%s9404_s2 + $0x64] sm:$0xf]  ;;  %v5124_v51 = vor.u32 %v6072_v41, %v5123_v5  ;;  %v5125_v19 = vld [vmem:[%s9404_s2 + $0x78] sm:$0xf0] }
 0x255   :  { %6311 = vtanh.f32 %v7571_v30  ;;  %v1225_v24 = vsel %vm1224_vm4, %v6308_v40, %v1221_v44  ;;  %v6081_v40 = vld [vmem:[%s9404_s2 + $0xc4] sm:$0xf]  ;;  %v5155_v44 = vld [vmem:[%s9404_s2 + $0xa8] sm:$0xf]  ;;  %v5140_v22 = vor.u32 %v6076_v55, %v5139_v11  ;;  %v5099_v60 = vld [vmem:[%s9404_s2 + $0x40] sm:$0xf]  ;;  %v216_v11 = vadd.f32 %v6907_v26, %v6891_v15 }
 0x256   :  { %v1230_v52 = vsel %vm1227_vm5, %v1229_v50, %v1225_v24  ;;  %v5168_v46 = vor.u32 %v6081_v40, %v5165_v20  ;;  %v5156_v24 = vor.u32 %v6080_v53, %v5155_v44  ;;  %v6078_v50 = vld [vmem:[%s9404_s2 + $0xac] sm:$0xf]  ;;  %v187_v40 = vadd.f32 %v6925_v36, %v6905_v25  ;;  %v5117_v20 = vld [vmem:[%s9404_s2 + $0x70] sm:$0xf0]  ;;  %v6065_v14 = vld [vmem:[%s9404_s2 + $0x44] sm:$0xf] }
 0x257   :  { %v5120_v23 = vor.u32 %v6069_v31, %v5117_v20  ;;  %v6070_v36 = vld [vmem:[%s9404_s2 + $0x6c] sm:$0xf]  ;;  %v5109_v37 = vld [vmem:[%s9404_s2 + $0x58] sm:$0xf0]  ;;  %v6063_v2 = vld [vmem:[%s9404_s2 + $0x2c] sm:$0xf0] }
 0x258   :  { %1754 = vmatpush.bf16.msrb.mxu0 %v5164_v43  ;;  %1767 = vmatpush.bf16.msra.mxu1 %v5168_v46  ;;  %v5116_v43 = vor.u32 %v6071_v29, %v5115_v18  ;;  %v5128_v59 = vor.u32 %v6070_v36, %v5125_v19  ;;  %v5085_v45 = vld [vmem:[%s9404_s2 + $0x30] sm:$0xf0]  ;;  %v5091_v12 = vld [vmem:[%s9404_s2 + $0x28] sm:$0xf]  ;;  %v6064_v29 = vld [vmem:[%s9404_s2 + $0x34] sm:$0xf0] }
 0x259   :  { %1781 = vmatpush.bf16.msrb.mxu2 %v5156_v24  ;;  %v5101_v24 = vld [vmem:[%s9404_s2 + $0x50] sm:$0xf0]  ;;  %v6062_v31 = vld [vmem:[%s9404_s2 + $0x2c] sm:$0xf]  ;;  %v5092_v5 = vor.u32 %v6064_v29, %v5091_v12  ;;  %v5075_v19 = vld [vmem:[%s9404_s2 + $0x8] sm:$0xf] }
 0x25a   :  { %v5069_v36 = vld [vmem:[%s9404_s2 + $0x10] sm:$0xf0] }
 0x25b   :  { %v6312_v56 = vpop.eup %6311 }
 0x25c   :  { %v1237_v62 = vmul.f32 %v6312_v56, %v1230_v52  ;;  %v5157_v56 = vld [vmem:[%s9404_s2 + $0xb8] sm:$0xf0]  ;;  %1755 = vmatpush.bf16.msrb.mxu0 %v5148_v8  ;;  %1768 = vmatpush.bf16.msra.mxu1 %v5152_v61  ;;  %v6067_v8 = vld [vmem:[%s9404_s2 + $0x4c] sm:$0xf0] }
 0x25d   :  { %v5160_v52 = vor.u32 %v6078_v50, %v5157_v56  ;;  %1782 = vmatpush.bf16.msrb.mxu2 %v5140_v22  ;;  %v5100_v61 = vor.u32 %v6067_v8, %v5099_v60  ;;  %v5104_v50 = vor.u32 %v6065_v14, %v5101_v24  ;;  %v5107_v56 = vld [vmem:[%s9404_s2 + $0x48] sm:$0xf]  ;;  %v6061_v22 = vld [vmem:[%s9404_s2 + $0x24] sm:$0xf]  ;;  %v6058_v60 = vld [vmem:[%s9404_s2 + $0xc] sm:$0xf] }
 0x25e   :  { %v1238_v0 = vpack.c.bf16 %v1237_v62, %v1237_v62  ;;  %v5131_v62 = vld [vmem:[%s9404_s2 + $0x80] sm:$0xf]  ;;  %v5088_v26 = vor.u32 %v6061_v22, %v5085_v45  ;;  %v5077_v8 = vld [vmem:[%s9404_s2 + $0x18] sm:$0xf0] }
 0x25f   :  { %1794 = vmatpush.bf16.msrb.mxu3 %v5160_v52  ;;  %v6068_v52 = vld [vmem:[%s9404_s2 + $0x54] sm:$0xf0]  ;;  %v5080_v24 = vor.u32 %v6058_v60, %v5077_v8 }
 0x260   :  { %1239 = vst [vmem:[#allocation3 + $0x8] sm:$0xf] %v1238_v0  ;;  %1444 = vmatmul.bf16.vlgmr.msra.gmra.mxu0 %v1238_v0  ;;  %1457 = vmatmul.bf16.vlgmr.msrb.gmra.mxu1 %v1238_v0 }
 0x261   :  { %1470 = vmatmul.bf16.vlgmr.msra.gmra.mxu2 %v1238_v0  ;;  %1483 = vmatmul.bf16.vlgmr.msra.gmra.mxu3 %v1238_v0  ;;  %v6075_v0 = vld [vmem:[%s9404_s2 + $0x8c] sm:$0xf0] }
 0x262   :  { %v5132_v63 = vor.u32 %v6075_v0, %v5131_v62  ;;  %1769 = vmatpush.bf16.msra.mxu1 %v5136_v7  ;;  %1783 = vmatpush.bf16.msrb.mxu2 %v5124_v51  ;;  %v6066_v62 = vld [vmem:[%s9404_s2 + $0x4c] sm:$0xf]  ;;  %v5108_v0 = vor.u32 %v6068_v52, %v5107_v56 }
 0x263   :  { %1795 = vmatpush.bf16.msrb.mxu3 %v5144_v17  ;;  %v5112_v55 = vor.u32 %v6066_v62, %v5109_v37 }
 0x264   :  { %1756 = vmatpush.bf16.msrb.mxu0 %v5132_v63  ;;  %v5083_v63 = vld [vmem:[%s9404_s2 + $0x20] sm:$0xf] }
 0x265   :  { %v5084_v7 = vor.u32 %v6063_v2, %v5083_v63 }
 0x266   :  { %1770 = vmatpush.bf16.msra.mxu1 %v5120_v23  ;;  %1784 = vmatpush.bf16.msrb.mxu2 %v5108_v0  ;;  %v6057_v23 = vld [vmem:[%s9404_s2 + $0x4] sm:$0xf]  ;;  %v245_v0 = vadd.f32 %v6909_v27, %v6893_v16 }
 0x267   :  { %1796 = vmatpush.bf16.msrb.mxu3 %v5128_v59  ;;  %v5072_v59 = vor.u32 %v6057_v23, %v5069_v36 }
 0x268   :  { %1757 = vmatpush.bf16.msrb.mxu0 %v5116_v43 }
 0x26a   :  { %1771 = vmatpush.bf16.msra.mxu1 %v5104_v50  ;;  %1785 = vmatpush.bf16.msrb.mxu2 %v5092_v5 }
 0x26b   :  { %1797 = vmatpush.bf16.msrb.mxu3 %v5112_v55 }
 0x26c   :  { %1758 = vmatpush.bf16.msrb.mxu0 %v5100_v61 }
 0x26e   :  { %1772 = vmatpush.bf16.msra.mxu1 %v5088_v26 }
 0x270   :  { %1759 = vmatpush.bf16.msrb.mxu0 %v5084_v7 }
 0x272   :  { %1773 = vmatpush.bf16.msra.mxu1 %v5072_v59 }
 0x2dd   :  { %v1445_v46 = vpop.f32.mrf.mxu0  ;;  %v1458_v13 = vpop.f32.mrf.mxu1 }
 0x2de   :  { %v1488_v54 = vadd.f32 %v1445_v46, %v158_v32  ;;  %v1489_v10 = vadd.f32 %v1458_v13, %v187_v40  ;;  %v5093_v32 = vld [vmem:[%s9404_s2 + $0x38] sm:$0xf0]  ;;  %v5067_v46 = vld [vmem:[%s9404_s2] sm:$0xf]  ;;  %v6059_v13 = vld [vmem:[%s9404_s2 + $0xc] sm:$0xf0] }
 0x2df   :  { %v5096_v41 = vor.u32 %v6062_v31, %v5093_v32  ;;  %v5068_v51 = vor.u32 %v6059_v13, %v5067_v46 }
 0x2e0   :  { %v5062_v44 = vmul.f32 -1.442695, %v1488_v54  ;;  %v5063_v53 = vmul.f32 -1.442695, %v1489_v10  ;;  %v6060_v54 = vld [vmem:[%s9404_s2 + $0x14] sm:$0xf0] }
 0x2e1   :  { %1798 = vmatpush.bf16.msrb.mxu3 %v5096_v41  ;;  %1760 = vmatpush.bf16.msrb.mxu0 %v5068_v51 }
 0x2e2   :  { %6313 = vpow2.f32 %v5062_v44  ;;  %v5076_v44 = vor.u32 %v6060_v54, %v5075_v19 }
 0x2e3   :  { %6315 = vpow2.f32 %v5063_v53 }
 0x2e4   :  { %v1471_v17 = vpop.f32.mrf.mxu2  ;;  %v1484_v18 = vpop.f32.mrf.mxu3  ;;  %1786 = vmatpush.bf16.msrb.mxu2 %v5076_v44 }
 0x2e5   :  { %v1490_v40 = vadd.f32 %v1471_v17, %v216_v11  ;;  %v1447_v43 = vpop.f32.mrf.mxu0  ;;  %v1460_v20 = vpop.f32.mrf.mxu1  ;;  %1799 = vmatpush.bf16.msrb.mxu3 %v5080_v24  ;;  %v1491_v2 = vadd.f32 %v1484_v18, %v245_v0 }
 0x2e7   :  { %v5064_v10 = vmul.f32 -1.442695, %v1490_v40 }
 0x2e8   :  { %v6314_v14 = vpop.eup %6313 }
 0x2e9   :  { %v6316_v53 = vpop.eup %6315  ;;  %v1501_v61 = vadd.f32 1.0, %v6314_v14  ;;  %6317 = vpow2.f32 %v5064_v10 }
 0x2ea   :  { %v1502_v50 = vadd.f32 1.0, %v6316_v53 }
 0x2eb   :  { %6319 = vrcp.f32 %v1501_v61  ;;  %v1515_v12 = vand.u32 2147483648, %v1501_v61  ;;  %v1513_v29 = vand.u32 2147483647, %v1501_v61  ;;  %vm1509_vm8 = vweird.f32 %v1501_v61 }
 0x2ec   :  { %6321 = vrcp.f32 %v1502_v50  ;;  %v1473_v56 = vpop.f32.mrf.mxu2  ;;  %v1486_v52 = vpop.f32.mrf.mxu3  ;;  %v1530_v17 = vand.u32 2147483648, %v1502_v50  ;;  %v1528_v32 = vand.u32 2147483647, %v1502_v50  ;;  %vm1524_vm9 = vweird.f32 %v1502_v50 }
 0x2ed   :  { %v1516_v43 = vor.u32 1.1754944e-38, %v1515_v12  ;;  %vm1514_vm12 = vcmp.eq.f32.partialorder %v1513_v29, 8.507059e+37  ;;  %v6119_v52 = vld [vmem:[%s9404_s2 + $0xec] sm:$0xf0]  ;;  %v5294_v12 = vld [vmem:[%s9404_s2 + $0xc0] sm:$0xf] }
 0x2ee   :  { %v1531_v5 = vor.u32 1.1754944e-38, %v1530_v17  ;;  %vm1529_vm13 = vcmp.eq.f32.partialorder %v1528_v32, 8.507059e+37  ;;  %v6115_v17 = vld [vmem:[%s9404_s2 + $0xcc] sm:$0xf0]  ;;  %v5302_v32 = vld [vmem:[%s9404_s2 + $0xc8] sm:$0xf] }
 0x2ef   :  { %v6318_v62 = vpop.eup %6317  ;;  %v5295_v29 = vor.u32 %v6115_v17, %v5294_v12  ;;  %v6104_v12 = vld [vmem:[%s9404_s2 + $0x74] sm:$0xf0] }
 0x2f0   :  { %v1503_v37 = vadd.f32 1.0, %v6318_v62  ;;  %v6117_v62 = vld [vmem:[%s9404_s2 + $0xe4] sm:$0xf] }
 0x2f1   :  { %v6320_v63 = vpop.eup %6319 }
 0x2f2   :  { %v6322_v11 = vpop.eup %6321  ;;  %v1505_v55 = vmul.f32 %v6320_v63, %v1501_v61  ;;  %6323 = vrcp.f32 %v1503_v37  ;;  %vm1510_vm6 = vweird.f32 %v6320_v63  ;;  %v1545_v8 = vand.u32 2147483648, %v1503_v37 }
 0x2f3   :  { %v1520_v7 = vmul.f32 %v6322_v11, %v1502_v50  ;;  %6325 = vtanh.f32 %v1491_v2  ;;  %vm1525_vm7 = vweird.f32 %v6322_v11  ;;  %vm1511_vm10 = vmor %vm1509_vm8, %vm1510_vm6  ;;  %vm1539_vm15 = vweird.f32 %v1503_v37  ;;  %v6120_v2 = vld [vmem:[%s9404_s2 + $0xf4] sm:$0xf0] }
 0x2f4   :  { %v1506_v22 = vsub.f32 1.0, %v1505_v55  ;;  %vm1526_vm11 = vmor %vm1524_vm9, %vm1525_vm7  ;;  %v1543_v14 = vand.u32 2147483647, %v1503_v37  ;;  %v1546_v53 = vor.u32 1.1754944e-38, %v1545_v8  ;;  %v5288_v8 = vld [vmem:[%s9404_s2 + $0xb8] sm:$0xf0] }
 0x2f5   :  { %v1521_v45 = vsub.f32 1.0, %v1520_v7  ;;  %v6118_v7 = vld [vmem:[%s9404_s2 + $0xec] sm:$0xf] }
 0x2f6   :  { %v1507_v26 = vmul.f32 %v6320_v63, %v1506_v22  ;;  %vm1544_vm1 = vcmp.eq.f32.partialorder %v1543_v14, 8.507059e+37  ;;  %v5320_v22 = vld [vmem:[%s9404_s2 + $0xf8] sm:$0xf0] }
 0x2f7   :  { %v1522_v31 = vmul.f32 %v6322_v11, %v1521_v45  ;;  %v5323_v45 = vor.u32 %v6118_v7, %v5320_v22  ;;  %v5248_v22 = vld [vmem:[%s9404_s2 + $0x70] sm:$0xf0] }
 0x2f8   :  { %v6324_v40 = vpop.eup %6323  ;;  %v1508_v27 = vadd.f32 %v6320_v63, %v1507_v26  ;;  %v6113_v26 = vld [vmem:[%s9404_s2 + $0xc4] sm:$0xf] }
 0x2f9   :  { %v1535_v18 = vmul.f32 %v6324_v40, %v1503_v37  ;;  %v1523_v20 = vadd.f32 %v6322_v11, %v1522_v31  ;;  %v6326_v46 = vpop.eup %6325  ;;  %vm1540_vm14 = vweird.f32 %v6324_v40  ;;  %v5312_v37 = vld [vmem:[%s9404_s2 + $0xf0] sm:$0xf0]  ;;  %2109 = vmatpush.bf16.msra.mxu3 %v5323_v45  ;;  %v5254_v45 = vld [vmem:[%s9404_s2 + $0x68] sm:$0xf] }
 0x2fa   :  { %v1512_v41 = vsel %vm1511_vm10, %v6320_v63, %v1508_v27  ;;  %vm1541_vm0 = vmor %vm1539_vm15, %vm1540_vm14  ;;  %v5318_v63 = vld [vmem:[%s9404_s2 + $0xe8] sm:$0xf]  ;;  %v5296_v31 = vld [vmem:[%s9404_s2 + $0xd0] sm:$0xf0] }
 0x2fb   :  { %v1536_v13 = vsub.f32 1.0, %v1535_v18  ;;  %v1517_v23 = vsel %vm1514_vm12, %v1516_v43, %v1512_v41  ;;  %v1527_v51 = vsel %vm1526_vm11, %v6322_v11, %v1523_v20  ;;  %v5315_v11 = vor.u32 %v6117_v62, %v5312_v37  ;;  %v6114_v43 = vld [vmem:[%s9404_s2 + $0xcc] sm:$0xf]  ;;  %v5304_v20 = vld [vmem:[%s9404_s2 + $0xd8] sm:$0xf0] }
 0x2fc   :  { %v1532_v36 = vsel %vm1529_vm13, %v1531_v5, %v1527_v51  ;;  %v1551_v19 = vmul.f32 %v6326_v46, %v1517_v23  ;;  %v5319_v55 = vor.u32 %v6120_v2, %v5318_v63  ;;  %v5299_v27 = vor.u32 %v6113_v26, %v5296_v31  ;;  %v5278_v41 = vld [vmem:[%s9404_s2 + $0xa0] sm:$0xf]  ;;  %v6111_v46 = vld [vmem:[%s9404_s2 + $0xac] sm:$0xf0]  ;;  %v5280_v51 = vld [vmem:[%s9404_s2 + $0xb0] sm:$0xf0] }
 0x2fd   :  { %v1537_v54 = vmul.f32 %v6324_v40, %v1536_v13  ;;  %v1550_v10 = vmul.f32 %v1532_v36, %v7571_v30  ;;  %v5310_v30 = vld [vmem:[%s9404_s2 + $0xe0] sm:$0xf]  ;;  %2083 = vmatpush.bf16.msrb.mxu1 %v5315_v11  ;;  %v5307_v5 = vor.u32 %v6114_v43, %v5304_v20  ;;  %v6109_v13 = vld [vmem:[%s9404_s2 + $0xa4] sm:$0xf]  ;;  %v5279_v23 = vor.u32 %v6111_v46, %v5278_v41  ;;  %v5286_v36 = vld [vmem:[%s9404_s2 + $0xa8] sm:$0xf] }
 0x2fe   :  { %v5311_v0 = vor.u32 %v6119_v52, %v5310_v30  ;;  %2096 = vmatpush.bf16.msra.mxu2 %v5319_v55  ;;  %v6108_v30 = vld [vmem:[%s9404_s2 + $0x94] sm:$0xf0]  ;;  %v5272_v37 = vld [vmem:[%s9404_s2 + $0x98] sm:$0xf0]  ;;  %v5246_v2 = vld [vmem:[%s9404_s2 + $0x60] sm:$0xf]  ;;  %v5255_v31 = vor.u32 %v6104_v12, %v5254_v45 }
 0x2ff   :  { %v7775_v59 = vadd.f32 %v1551_v19, %v1550_v10  ;;  %v1538_v60 = vadd.f32 %v6324_v40, %v1537_v54  ;;  %2110 = vmatpush.bf16.msra.mxu3 %v5307_v5  ;;  %v6112_v19 = vld [vmem:[%s9404_s2 + $0xb4] sm:$0xf0]  ;;  %v5283_v54 = vor.u32 %v6109_v13, %v5280_v51  ;;  %v6103_v11 = vld [vmem:[%s9404_s2 + $0x6c] sm:$0xf0]  ;;  %v6101_v55 = vld [vmem:[%s9404_s2 + $0x64] sm:$0xf] }
 0x300   :  { %2070 = vmatpush.bf16.msra.mxu0 %v5311_v0  ;;  %v5287_v10 = vor.u32 %v6112_v19, %v5286_v36  ;;  %v6106_v0 = vld [vmem:[%s9404_s2 + $0x8c] sm:$0xf]  ;;  %v5247_v7 = vor.u32 %v6103_v11, %v5246_v2  ;;  %v5230_v20 = vld [vmem:[%s9404_s2 + $0x40] sm:$0xf]  ;;  %v6099_v5 = vld [vmem:[%s9404_s2 + $0x4c] sm:$0xf0] }
 0x301   :  { %6327 = vtanh.f32 %v7775_v59  ;;  %v1542_v44 = vsel %vm1541_vm0, %v6324_v40, %v1538_v60  ;;  %v6116_v40 = vld [vmem:[%s9404_s2 + $0xd4] sm:$0xf0]  ;;  %2084 = vmatpush.bf16.msrb.mxu1 %v5299_v27  ;;  %v6110_v60 = vld [vmem:[%s9404_s2 + $0xac] sm:$0xf]  ;;  %v5275_v63 = vor.u32 %v6106_v0, %v5272_v37  ;;  %v6097_v41 = vld [vmem:[%s9404_s2 + $0x44] sm:$0xf] }
 0x302   :  { %v1547_v24 = vsel %vm1544_vm1, %v1546_v53, %v1542_v44  ;;  %v5303_v18 = vor.u32 %v6116_v40, %v5302_v32  ;;  %v5291_v14 = vor.u32 %v6110_v60, %v5288_v8  ;;  %v5262_v44 = vld [vmem:[%s9404_s2 + $0x80] sm:$0xf]  ;;  %v6107_v53 = vld [vmem:[%s9404_s2 + $0x8c] sm:$0xf0]  ;;  %v6102_v32 = vld [vmem:[%s9404_s2 + $0x6c] sm:$0xf] }
 0x303   :  { %v5256_v40 = vld [vmem:[%s9404_s2 + $0x78] sm:$0xf0]  ;;  %v5232_v13 = vld [vmem:[%s9404_s2 + $0x50] sm:$0xf0]  ;;  %v5238_v51 = vld [vmem:[%s9404_s2 + $0x48] sm:$0xf] }
 0x304   :  { %2071 = vmatpush.bf16.msra.mxu0 %v5295_v29  ;;  %2097 = vmatpush.bf16.msra.mxu2 %v5303_v18  ;;  %v5251_v29 = vor.u32 %v6101_v55, %v5248_v22  ;;  %v5259_v43 = vor.u32 %v6102_v32, %v5256_v40  ;;  %v6100_v36 = vld [vmem:[%s9404_s2 + $0x54] sm:$0xf0]  ;;  %v6098_v19 = vld [vmem:[%s9404_s2 + $0x4c] sm:$0xf]  ;;  %v5214_v60 = vld [vmem:[%s9404_s2 + $0x20] sm:$0xf] }
 0x305   :  { %2085 = vmatpush.bf16.msrb.mxu1 %v5283_v54  ;;  %2111 = vmatpush.bf16.msra.mxu3 %v5291_v14  ;;  %v5239_v54 = vor.u32 %v6100_v36, %v5238_v51  ;;  %v6095_v8 = vld [vmem:[%s9404_s2 + $0x2c] sm:$0xf0]  ;;  %v5224_v0 = vld [vmem:[%s9404_s2 + $0x38] sm:$0xf0]  ;;  %v6089_v45 = vld [vmem:[%s9404_s2 + $0x4] sm:$0xf] }
 0x306   :  { %v6091_v22 = vld [vmem:[%s9404_s2 + $0xc] sm:$0xf0]  ;;  %v6090_v32 = vld [vmem:[%s9404_s2 + $0xc] sm:$0xf]  ;;  %v5208_v40 = vld [vmem:[%s9404_s2 + $0x18] sm:$0xf0] }
 0x307   :  { %v6328_v61 = vpop.eup %6327 }
 0x308   :  { %v1554_v50 = vmul.f32 %v6328_v61, %v1547_v24  ;;  %2072 = vmatpush.bf16.msra.mxu0 %v5279_v23  ;;  %2098 = vmatpush.bf16.msra.mxu2 %v5287_v10  ;;  %v6105_v61 = vld [vmem:[%s9404_s2 + $0x84] sm:$0xf]  ;;  %v5263_v24 = vor.u32 %v6107_v53, %v5262_v44  ;;  %v5235_v23 = vor.u32 %v6097_v41, %v5232_v13  ;;  %v5240_v10 = vld [vmem:[%s9404_s2 + $0x58] sm:$0xf0] }
 0x309   :  { %2112 = vmatpush.bf16.msra.mxu3 %v5275_v63  ;;  %v5243_v14 = vor.u32 %v6098_v19, %v5240_v10  ;;  %v5215_v44 = vor.u32 %v6095_v8, %v5214_v60  ;;  %v6093_v53 = vld [vmem:[%s9404_s2 + $0x24] sm:$0xf] }
 0x30a   :  { %v1555_v56 = vpack.c.bf16 %v1554_v50, %v1554_v50  ;;  %v5264_v50 = vld [vmem:[%s9404_s2 + $0x90] sm:$0xf0] }
 0x30b   :  { %v5267_v52 = vor.u32 %v6105_v61, %v5264_v50  ;;  %v5216_v61 = vld [vmem:[%s9404_s2 + $0x30] sm:$0xf0] }
 0x30c   :  { %1556 = vst [vmem:[#allocation3 + $0xc] sm:$0xf] %v1555_v56  ;;  %1761 = vmatmul.bf16.vlgmr.msrb.gmra.mxu0 %v1555_v56  ;;  %1774 = vmatmul.bf16.vlgmr.msra.gmra.mxu1 %v1555_v56 }
 0x30d   :  { %1787 = vmatmul.bf16.vlgmr.msrb.gmra.mxu2 %v1555_v56  ;;  %1800 = vmatmul.bf16.vlgmr.msrb.gmra.mxu3 %v1555_v56  ;;  %v5270_v56 = vld [vmem:[%s9404_s2 + $0x88] sm:$0xf] }
 0x30e   :  { %v5271_v62 = vor.u32 %v6108_v30, %v5270_v56  ;;  %2073 = vmatpush.bf16.msra.mxu0 %v5263_v24  ;;  %2086 = vmatpush.bf16.msrb.mxu1 %v5267_v52  ;;  %v5222_v24 = vld [vmem:[%s9404_s2 + $0x28] sm:$0xf]  ;;  %v5219_v30 = vor.u32 %v6093_v53, %v5216_v61  ;;  %v6096_v52 = vld [vmem:[%s9404_s2 + $0x34] sm:$0xf0] }
 0x30f   :  { %2113 = vmatpush.bf16.msra.mxu3 %v5259_v43  ;;  %v5223_v11 = vor.u32 %v6096_v52, %v5222_v24 }
 0x310   :  { %2099 = vmatpush.bf16.msra.mxu2 %v5271_v62  ;;  %v6094_v62 = vld [vmem:[%s9404_s2 + $0x2c] sm:$0xf] }
 0x311   :  { %v5227_v55 = vor.u32 %v6094_v62, %v5224_v0 }
 0x312   :  { %2074 = vmatpush.bf16.msra.mxu0 %v5247_v7  ;;  %2087 = vmatpush.bf16.msrb.mxu1 %v5251_v29  ;;  %v5198_v7 = vld [vmem:[%s9404_s2] sm:$0xf] }
 0x313   :  { %2114 = vmatpush.bf16.msra.mxu3 %v5243_v14  ;;  %v5199_v12 = vor.u32 %v6091_v22, %v5198_v7 }
 0x314   :  { %2100 = vmatpush.bf16.msra.mxu2 %v5255_v31 }
 0x316   :  { %2088 = vmatpush.bf16.msrb.mxu1 %v5235_v23 }
 0x317   :  { %2115 = vmatpush.bf16.msra.mxu3 %v5227_v55 }
 0x318   :  { %2101 = vmatpush.bf16.msra.mxu2 %v5239_v54 }
 0x31a   :  { %2089 = vmatpush.bf16.msrb.mxu1 %v5219_v30 }
 0x31c   :  { %2102 = vmatpush.bf16.msra.mxu2 %v5223_v11 }
 0x389   :  { %v1762_v17 = vpop.f32.mrf.mxu0  ;;  %v1775_v26 = vpop.f32.mrf.mxu1 }
 0x38a   :  { %v1805_v27 = vadd.f32 %v1762_v17, %v6912_v21  ;;  %v1806_v18 = vadd.f32 %v1775_v26, %v6933_v42  ;;  %v5231_v42 = vor.u32 %v6099_v5, %v5230_v20  ;;  %v5206_v17 = vld [vmem:[%s9404_s2 + $0x8] sm:$0xf]  ;;  %v6092_v26 = vld [vmem:[%s9404_s2 + $0x14] sm:$0xf0]  ;;  %v5211_v5 = vor.u32 %v6090_v32, %v5208_v40 }
 0x38c   :  { %v5193_v46 = vmul.f32 -1.442695, %v1805_v27  ;;  %v5194_v21 = vmul.f32 -1.442695, %v1806_v18  ;;  %2075 = vmatpush.bf16.msra.mxu0 %v5231_v42  ;;  %v5207_v18 = vor.u32 %v6092_v26, %v5206_v17  ;;  %2116 = vmatpush.bf16.msra.mxu3 %v5211_v5 }
 0x38e   :  { %6329 = vpow2.f32 %v5193_v46  ;;  %2103 = vmatpush.bf16.msra.mxu2 %v5207_v18 }
 0x38f   :  { %6331 = vpow2.f32 %v5194_v21 }
 0x390   :  { %v1788_v50 = vpop.f32.mrf.mxu2  ;;  %v1801_v56 = vpop.f32.mrf.mxu3  ;;  %2076 = vmatpush.bf16.msra.mxu0 %v5215_v44 }
 0x391   :  { %v1807_v37 = vadd.f32 %v1788_v50, %v6918_v33  ;;  %v1764_v63 = vpop.f32.mrf.mxu0  ;;  %v1777_v2 = vpop.f32.mrf.mxu1  ;;  %v5200_v33 = vld [vmem:[%s9404_s2 + $0x10] sm:$0xf0]  ;;  %v1808_v51 = vadd.f32 %v1801_v56, %v6921_v34 }
 0x392   :  { %v5203_v31 = vor.u32 %v6089_v45, %v5200_v33 }
 0x393   :  { %v5195_v29 = vmul.f32 -1.442695, %v1807_v37 }
 0x394   :  { %v6330_v27 = vpop.eup %6329  ;;  %2077 = vmatpush.bf16.msra.mxu0 %v5199_v12  ;;  %2090 = vmatpush.bf16.msrb.mxu1 %v5203_v31 }
 0x395   :  { %v6332_v43 = vpop.eup %6331  ;;  %v1818_v20 = vadd.f32 1.0, %v6330_v27  ;;  %6333 = vpow2.f32 %v5195_v29 }
 0x396   :  { %v1819_v41 = vadd.f32 1.0, %v6332_v43  ;;  %v6151_v43 = vld [vmem:[%s9404_s2 + $0xec] sm:$0xf0] }
 0x397   :  { %6335 = vrcp.f32 %v1818_v20  ;;  %v1832_v8 = vand.u32 2147483648, %v1818_v20  ;;  %v1830_v53 = vand.u32 2147483647, %v1818_v20  ;;  %vm1826_vm4 = vweird.f32 %v1818_v20 }
 0x398   :  { %6337 = vrcp.f32 %v1819_v41  ;;  %v1790_v46 = vpop.f32.mrf.mxu2  ;;  %v1803_v21 = vpop.f32.mrf.mxu3  ;;  %v1847_v14 = vand.u32 2147483648, %v1819_v41  ;;  %v1845_v24 = vand.u32 2147483647, %v1819_v41  ;;  %vm1841_vm5 = vweird.f32 %v1819_v41 }
 0x399   :  { %v1833_v56 = vor.u32 1.1754944e-38, %v1832_v8  ;;  %vm1831_vm8 = vcmp.eq.f32.partialorder %v1830_v53, 8.507059e+37  ;;  %v5449_v46 = vld [vmem:[%s9404_s2 + $0xe8] sm:$0xf]  ;;  %v6152_v21 = vld [vmem:[%s9404_s2 + $0xf4] sm:$0xf0] }
 0x39a   :  { %v1848_v62 = vor.u32 1.1754944e-38, %v1847_v14  ;;  %vm1846_vm9 = vcmp.eq.f32.partialorder %v1845_v24, 8.507059e+37  ;;  %v5427_v8 = vld [vmem:[%s9404_s2 + $0xd0] sm:$0xf0]  ;;  %v5433_v14 = vld [vmem:[%s9404_s2 + $0xc8] sm:$0xf] }
 0x39b   :  { %v6334_v42 = vpop.eup %6333  ;;  %v6146_v24 = vld [vmem:[%s9404_s2 + $0xcc] sm:$0xf] }
 0x39c   :  { %v1820_v13 = vadd.f32 1.0, %v6334_v42 }
 0x39d   :  { %v6336_v23 = vpop.eup %6335 }
 0x39e   :  { %v6338_v36 = vpop.eup %6337  ;;  %v1822_v19 = vmul.f32 %v6336_v23, %v1818_v20  ;;  %6339 = vrcp.f32 %v1820_v13  ;;  %vm1827_vm2 = vweird.f32 %v6336_v23  ;;  %v1862_v17 = vand.u32 2147483648, %v1820_v13  ;;  %v6149_v20 = vld [vmem:[%s9404_s2 + $0xe4] sm:$0xf] }
 0x39f   :  { %v1837_v54 = vmul.f32 %v6338_v36, %v1819_v41  ;;  %6341 = vtanh.f32 %v1808_v51  ;;  %vm1842_vm3 = vweird.f32 %v6338_v36  ;;  %vm1828_vm6 = vmor %vm1826_vm4, %vm1827_vm2  ;;  %vm1856_vm11 = vweird.f32 %v1820_v13  ;;  %v5443_v41 = vld [vmem:[%s9404_s2 + $0xf0] sm:$0xf0]  ;;  %v5451_v51 = vld [vmem:[%s9404_s2 + $0xf8] sm:$0xf0] }
 0x3a0   :  { %v1823_v10 = vsub.f32 1.0, %v1822_v19  ;;  %vm1843_vm7 = vmor %vm1841_vm5, %vm1842_vm3  ;;  %v1860_v26 = vand.u32 2147483647, %v1820_v13  ;;  %v1863_v31 = vor.u32 1.1754944e-38, %v1862_v17  ;;  %v5446_v42 = vor.u32 %v6149_v20, %v5443_v41  ;;  %v5425_v19 = vld [vmem:[%s9404_s2 + $0xc0] sm:$0xf] }
 0x3a1   :  { %v1838_v60 = vsub.f32 1.0, %v1837_v54  ;;  %v6147_v54 = vld [vmem:[%s9404_s2 + $0xcc] sm:$0xf0]  ;;  %v6137_v17 = vld [vmem:[%s9404_s2 + $0x84] sm:$0xf] }
 0x3a2   :  { %v1824_v44 = vmul.f32 %v6336_v23, %v1823_v10  ;;  %vm1861_vm13 = vcmp.eq.f32.partialorder %v1860_v26, 8.507059e+37  ;;  %2400 = vmatpush.bf16.msra.mxu1 %v5446_v42  ;;  %v6145_v10 = vld [vmem:[%s9404_s2 + $0xc4] sm:$0xf]  ;;  %v5377_v20 = vld [vmem:[%s9404_s2 + $0x60] sm:$0xf] }
 0x3a3   :  { %v1839_v61 = vmul.f32 %v6338_v36, %v1838_v60  ;;  %v5426_v60 = vor.u32 %v6147_v54, %v5425_v19  ;;  %v5430_v53 = vor.u32 %v6145_v10, %v5427_v8  ;;  %v6133_v41 = vld [vmem:[%s9404_s2 + $0x64] sm:$0xf]  ;;  %v5387_v10 = vld [vmem:[%s9404_s2 + $0x78] sm:$0xf0] }
 0x3a4   :  { %v6340_v50 = vpop.eup %6339  ;;  %v1825_v30 = vadd.f32 %v6336_v23, %v1824_v44  ;;  %v6148_v44 = vld [vmem:[%s9404_s2 + $0xd4] sm:$0xf0] }
 0x3a5   :  { %v1852_v34 = vmul.f32 %v6340_v50, %v1820_v13  ;;  %v1840_v52 = vadd.f32 %v6338_v36, %v1839_v61  ;;  %v6342_v37 = vpop.eup %6341  ;;  %vm1857_vm10 = vweird.f32 %v6340_v50  ;;  %v5450_v13 = vor.u32 %v6152_v21, %v5449_v46 }
 0x3a6   :  { %v1829_v0 = vsel %vm1828_vm6, %v6336_v23, %v1825_v30  ;;  %vm1858_vm12 = vmor %vm1856_vm11, %vm1857_vm10  ;;  %v6150_v23 = vld [vmem:[%s9404_s2 + $0xec] sm:$0xf]  ;;  %v5434_v61 = vor.u32 %v6148_v44, %v5433_v14  ;;  %2401 = vmatpush.bf16.msra.mxu1 %v5430_v53  ;;  %v163_v46 = vadd.f32 %v6923_v35, %v6869_v3  ;;  %v192_v21 = vadd.f32 %v6941_v49, %v6905_v25  ;;  %v5361_v44 = vld [vmem:[%s9404_s2 + $0x40] sm:$0xf] }
 0x3a7   :  { %v1853_v63 = vsub.f32 1.0, %v1852_v34  ;;  %v1834_v2 = vsel %vm1831_vm8, %v1833_v56, %v1829_v0  ;;  %v1844_v11 = vsel %vm1843_vm7, %v6338_v36, %v1840_v52  ;;  %v5454_v36 = vor.u32 %v6150_v23, %v5451_v51  ;;  %2413 = vmatpush.bf16.msrb.mxu2 %v5450_v13  ;;  %v5409_v34 = vld [vmem:[%s9404_s2 + $0xa0] sm:$0xf]  ;;  %v6143_v56 = vld [vmem:[%s9404_s2 + $0xac] sm:$0xf0] }
 0x3a8   :  { %v1849_v55 = vsel %vm1846_vm9, %v1848_v62, %v1844_v11  ;;  %v1868_v7 = vmul.f32 %v6342_v37, %v1834_v2  ;;  %v6141_v52 = vld [vmem:[%s9404_s2 + $0xa4] sm:$0xf]  ;;  %v5410_v62 = vor.u32 %v6143_v56, %v5409_v34  ;;  %v5411_v0 = vld [vmem:[%s9404_s2 + $0xb0] sm:$0xf0]  ;;  %v5417_v37 = vld [vmem:[%s9404_s2 + $0xa8] sm:$0xf] }
 0x3a9   :  { %v1854_v22 = vmul.f32 %v6340_v50, %v1853_v63  ;;  %v1867_v45 = vmul.f32 %v1849_v55, %v7775_v59  ;;  %v5441_v59 = vld [vmem:[%s9404_s2 + $0xe0] sm:$0xf]  ;;  %2426 = vmatpush.bf16.msrb.mxu3 %v5454_v36  ;;  %v6144_v63 = vld [vmem:[%s9404_s2 + $0xb4] sm:$0xf0]  ;;  %v5414_v2 = vor.u32 %v6141_v52, %v5411_v0  ;;  %v6142_v55 = vld [vmem:[%s9404_s2 + $0xac] sm:$0xf] }
 0x3aa   :  { %v5442_v5 = vor.u32 %v6151_v43, %v5441_v59  ;;  %v5418_v11 = vor.u32 %v6144_v63, %v5417_v37  ;;  %v5403_v59 = vld [vmem:[%s9404_s2 + $0x98] sm:$0xf0]  ;;  %v5379_v13 = vld [vmem:[%s9404_s2 + $0x70] sm:$0xf0]  ;;  %v5385_v23 = vld [vmem:[%s9404_s2 + $0x68] sm:$0xf] }
 0x3ab   :  { %v7975_v12 = vadd.f32 %v1868_v7, %v1867_v45  ;;  %v1855_v33 = vadd.f32 %v6340_v50, %v1854_v22  ;;  %2414 = vmatpush.bf16.msrb.mxu2 %v5434_v61  ;;  %v5419_v7 = vld [vmem:[%s9404_s2 + $0xb8] sm:$0xf0]  ;;  %2402 = vmatpush.bf16.msra.mxu1 %v5414_v2  ;;  %v5393_v45 = vld [vmem:[%s9404_s2 + $0x80] sm:$0xf]  ;;  %v6136_v51 = vld [vmem:[%s9404_s2 + $0x74] sm:$0xf0]  ;;  %v5382_v35 = vor.u32 %v6133_v41, %v5379_v13 }
 0x3ac   :  { %2387 = vmatpush.bf16.msrb.mxu0 %v5442_v5  ;;  %v5422_v22 = vor.u32 %v6142_v55, %v5419_v7  ;;  %v6135_v5 = vld [vmem:[%s9404_s2 + $0x6c] sm:$0xf0]  ;;  %v5386_v54 = vor.u32 %v6136_v51, %v5385_v23  ;;  %v6134_v49 = vld [vmem:[%s9404_s2 + $0x6c] sm:$0xf]  ;;  %v6129_v61 = vld [vmem:[%s9404_s2 + $0x44] sm:$0xf]  ;;  %v221_v55 = vadd.f32 %v6928_v38, %v6891_v15 }
 0x3ad   :  { %6343 = vtanh.f32 %v7975_v12  ;;  %v1859_v29 = vsel %vm1858_vm12, %v6340_v50, %v1855_v33  ;;  %v5435_v50 = vld [vmem:[%s9404_s2 + $0xd8] sm:$0xf0]  ;;  %v6139_v33 = vld [vmem:[%s9404_s2 + $0x8c] sm:$0xf0]  ;;  %v5378_v42 = vor.u32 %v6135_v5, %v5377_v20  ;;  %v5390_v14 = vor.u32 %v6134_v49, %v5387_v10  ;;  %v5363_v34 = vld [vmem:[%s9404_s2 + $0x50] sm:$0xf0] }
 0x3ae   :  { %v1864_v40 = vsel %vm1861_vm13, %v1863_v31, %v1859_v29  ;;  %v5438_v30 = vor.u32 %v6146_v24, %v5435_v50  ;;  %v5394_v26 = vor.u32 %v6139_v33, %v5393_v45  ;;  %v5395_v29 = vld [vmem:[%s9404_s2 + $0x90] sm:$0xf0]  ;;  %v5401_v31 = vld [vmem:[%s9404_s2 + $0x88] sm:$0xf]  ;;  %v6131_v53 = vld [vmem:[%s9404_s2 + $0x4c] sm:$0xf0]  ;;  %v5366_v56 = vor.u32 %v6129_v61, %v5363_v34 }
 0x3af   :  { %2415 = vmatpush.bf16.msrb.mxu2 %v5418_v11  ;;  %v5369_v52 = vld [vmem:[%s9404_s2 + $0x48] sm:$0xf]  ;;  %v6130_v0 = vld [vmem:[%s9404_s2 + $0x4c] sm:$0xf]  ;;  %v5371_v63 = vld [vmem:[%s9404_s2 + $0x58] sm:$0xf0] }
 0x3b0   :  { %2388 = vmatpush.bf16.msrb.mxu0 %v5426_v60  ;;  %2427 = vmatpush.bf16.msrb.mxu3 %v5438_v30  ;;  %v5362_v30 = vor.u32 %v6131_v53, %v5361_v44  ;;  %v5345_v2 = vld [vmem:[%s9404_s2 + $0x20] sm:$0xf]  ;;  %v6127_v11 = vld [vmem:[%s9404_s2 + $0x2c] sm:$0xf0]  ;;  %v5374_v7 = vor.u32 %v6130_v0, %v5371_v63  ;;  %v6125_v45 = vld [vmem:[%s9404_s2 + $0x24] sm:$0xf] }
 0x3b1   :  { %v5347_v33 = vld [vmem:[%s9404_s2 + $0x30] sm:$0xf0]  ;;  %v5329_v5 = vld [vmem:[%s9404_s2] sm:$0xf]  ;;  %v6123_v41 = vld [vmem:[%s9404_s2 + $0xc] sm:$0xf0] }
 0x3b2   :  { %v5350_v38 = vor.u32 %v6125_v45, %v5347_v33  ;;  %v5337_v13 = vld [vmem:[%s9404_s2 + $0x8] sm:$0xf]  ;;  %v6124_v23 = vld [vmem:[%s9404_s2 + $0x14] sm:$0xf0] }
 0x3b3   :  { %v6344_v32 = vpop.eup %6343  ;;  %v5338_v49 = vor.u32 %v6124_v23, %v5337_v13 }
 0x3b4   :  { %v1871_v27 = vmul.f32 %v6344_v32, %v1864_v40  ;;  %2389 = vmatpush.bf16.msrb.mxu0 %v5410_v62  ;;  %2428 = vmatpush.bf16.msrb.mxu3 %v5422_v22  ;;  %v6140_v32 = vld [vmem:[%s9404_s2 + $0x94] sm:$0xf0]  ;;  %v5398_v40 = vor.u32 %v6137_v17, %v5395_v29  ;;  %v5346_v22 = vor.u32 %v6127_v11, %v5345_v2  ;;  %v5353_v17 = vld [vmem:[%s9404_s2 + $0x28] sm:$0xf] }
 0x3b5   :  { %v6132_v62 = vld [vmem:[%s9404_s2 + $0x54] sm:$0xf0] }
 0x3b6   :  { %v1872_v18 = vpack.c.bf16 %v1871_v27, %v1871_v27  ;;  %v5402_v27 = vor.u32 %v6140_v32, %v5401_v31  ;;  %2403 = vmatpush.bf16.msra.mxu1 %v5398_v40  ;;  %v5370_v37 = vor.u32 %v6132_v62, %v5369_v52  ;;  %v6128_v31 = vld [vmem:[%s9404_s2 + $0x34] sm:$0xf0]  ;;  %v6126_v32 = vld [vmem:[%s9404_s2 + $0x2c] sm:$0xf]  ;;  %v5355_v40 = vld [vmem:[%s9404_s2 + $0x38] sm:$0xf0] }
 0x3b7   :  { %v5358_v20 = vor.u32 %v6126_v32, %v5355_v40 }
 0x3b8   :  { %1873 = vst [vmem:[#allocation3 + $0x10] sm:$0xf] %v1872_v18  ;;  %2078 = vmatmul.bf16.vlgmr.msra.gmra.mxu0 %v1872_v18  ;;  %2091 = vmatmul.bf16.vlgmr.msrb.gmra.mxu1 %v1872_v18 }
 0x3b9   :  { %2104 = vmatmul.bf16.vlgmr.msra.gmra.mxu2 %v1872_v18  ;;  %2117 = vmatmul.bf16.vlgmr.msra.gmra.mxu3 %v1872_v18  ;;  %v6138_v18 = vld [vmem:[%s9404_s2 + $0x8c] sm:$0xf] }
 0x3ba   :  { %2390 = vmatpush.bf16.msrb.mxu0 %v5394_v26  ;;  %v5406_v43 = vor.u32 %v6138_v18, %v5403_v59  ;;  %2416 = vmatpush.bf16.msrb.mxu2 %v5402_v27 }
 0x3bb   :  { %2404 = vmatpush.bf16.msra.mxu1 %v5382_v35  ;;  %v5339_v35 = vld [vmem:[%s9404_s2 + $0x18] sm:$0xf0] }
 0x3bc   :  { %2429 = vmatpush.bf16.msrb.mxu3 %v5406_v43  ;;  %v5354_v43 = vor.u32 %v6128_v31, %v5353_v17 }
 0x3be   :  { %2391 = vmatpush.bf16.msrb.mxu0 %v5378_v42  ;;  %2417 = vmatpush.bf16.msrb.mxu2 %v5386_v54  ;;  %v5331_v42 = vld [vmem:[%s9404_s2 + $0x10] sm:$0xf0] }
 0x3bf   :  { %2405 = vmatpush.bf16.msra.mxu1 %v5366_v56 }
 0x3c0   :  { %2430 = vmatpush.bf16.msrb.mxu3 %v5390_v14 }
 0x3c2   :  { %2392 = vmatpush.bf16.msrb.mxu0 %v5362_v30  ;;  %2418 = vmatpush.bf16.msrb.mxu2 %v5370_v37 }
 0x3c3   :  { %2406 = vmatpush.bf16.msra.mxu1 %v5350_v38 }
 0x3c4   :  { %2431 = vmatpush.bf16.msrb.mxu3 %v5374_v7 }
 0x3c6   :  { %2393 = vmatpush.bf16.msrb.mxu0 %v5346_v22  ;;  %2419 = vmatpush.bf16.msrb.mxu2 %v5354_v43 }
 0x3c8   :  { %2432 = vmatpush.bf16.msrb.mxu3 %v5358_v20 }
 0x3ca   :  { %2420 = vmatpush.bf16.msrb.mxu2 %v5338_v49 }
 0x435   :  { %v2079_v36 = vpop.f32.mrf.mxu0  ;;  %v2092_v19 = vpop.f32.mrf.mxu1 }
 0x436   :  { %v2122_v60 = vadd.f32 %v2079_v36, %v163_v46  ;;  %v2123_v8 = vadd.f32 %v2092_v19, %v192_v21  ;;  %v6121_v46 = vld [vmem:[%s9404_s2 + $0x4] sm:$0xf]  ;;  %v5330_v21 = vor.u32 %v6123_v41, %v5329_v5  ;;  %v6122_v19 = vld [vmem:[%s9404_s2 + $0xc] sm:$0xf] }
 0x437   :  { %v5334_v36 = vor.u32 %v6121_v46, %v5331_v42 }
 0x438   :  { %v5324_v24 = vmul.f32 -1.442695, %v2122_v60  ;;  %v5325_v50 = vmul.f32 -1.442695, %v2123_v8  ;;  %v5342_v8 = vor.u32 %v6122_v19, %v5339_v35  ;;  %2394 = vmatpush.bf16.msrb.mxu0 %v5330_v21  ;;  %v6183_v35 = vld [vmem:[%s9404_s2 + $0xec] sm:$0xf0] }
 0x439   :  { %2407 = vmatpush.bf16.msra.mxu1 %v5334_v36 }
 0x43a   :  { %6345 = vpow2.f32 %v5324_v24  ;;  %2433 = vmatpush.bf16.msrb.mxu3 %v5342_v8  ;;  %v250_v24 = vadd.f32 %v6930_v39, %v6893_v16  ;;  %v6184_v8 = vld [vmem:[%s9404_s2 + $0xf4] sm:$0xf0] }
 0x43b   :  { %6347 = vpow2.f32 %v5325_v50 }
 0x43c   :  { %v2105_v26 = vpop.f32.mrf.mxu2  ;;  %v2118_v29 = vpop.f32.mrf.mxu3 }
 0x43d   :  { %v2124_v27 = vadd.f32 %v2105_v26, %v221_v55  ;;  %v2081_v18 = vpop.f32.mrf.mxu0  ;;  %v2094_v59 = vpop.f32.mrf.mxu1  ;;  %v2125_v34 = vadd.f32 %v2118_v29, %v250_v24 }
 0x43f   :  { %v5326_v51 = vmul.f32 -1.442695, %v2124_v27 }
 0x440   :  { %v6346_v54 = vpop.eup %6345 }
 0x441   :  { %v6348_v10 = vpop.eup %6347  ;;  %v2135_v60 = vadd.f32 1.0, %v6346_v54  ;;  %6349 = vpow2.f32 %v5326_v51  ;;  %v6181_v54 = vld [vmem:[%s9404_s2 + $0xe4] sm:$0xf] }
 0x442   :  { %v2136_v14 = vadd.f32 1.0, %v6348_v10  ;;  %v5574_v10 = vld [vmem:[%s9404_s2 + $0xf0] sm:$0xf0] }
 0x443   :  { %6351 = vrcp.f32 %v2135_v60  ;;  %v2149_v63 = vand.u32 2147483648, %v2135_v60  ;;  %v2147_v55 = vand.u32 2147483647, %v2135_v60  ;;  %vm2143_vm0 = vweird.f32 %v2135_v60 }
 0x444   :  { %6353 = vrcp.f32 %v2136_v14  ;;  %v2107_v44 = vpop.f32.mrf.mxu2  ;;  %v2120_v53 = vpop.f32.mrf.mxu3  ;;  %v2164_v2 = vand.u32 2147483648, %v2136_v14  ;;  %v2162_v22 = vand.u32 2147483647, %v2136_v14  ;;  %vm2158_vm1 = vweird.f32 %v2136_v14 }
 0x445   :  { %v2150_v17 = vor.u32 1.1754944e-38, %v2149_v63  ;;  %vm2148_vm4 = vcmp.eq.f32.partialorder %v2147_v55, 8.507059e+37  ;;  %v6182_v53 = vld [vmem:[%s9404_s2 + $0xec] sm:$0xf] }
 0x446   :  { %v2165_v29 = vor.u32 1.1754944e-38, %v2164_v2  ;;  %vm2163_vm5 = vcmp.eq.f32.partialorder %v2162_v22, 8.507059e+37  ;;  %v6178_v2 = vld [vmem:[%s9404_s2 + $0xcc] sm:$0xf]  ;;  %v6175_v22 = vld [vmem:[%s9404_s2 + $0xac] sm:$0xf0] }
 0x447   :  { %v6350_v61 = vpop.eup %6349 }
 0x448   :  { %v2137_v50 = vadd.f32 1.0, %v6350_v61  ;;  %v5582_v61 = vld [vmem:[%s9404_s2 + $0xf8] sm:$0xf0] }
 0x449   :  { %v6352_v30 = vpop.eup %6351  ;;  %v5585_v24 = vor.u32 %v6182_v53, %v5582_v61  ;;  %v5492_v61 = vld [vmem:[%s9404_s2 + $0x40] sm:$0xf] }
 0x44a   :  { %v6354_v56 = vpop.eup %6353  ;;  %v2139_v52 = vmul.f32 %v6352_v30, %v2135_v60  ;;  %6355 = vrcp.f32 %v2137_v50  ;;  %vm2144_vm14 = vweird.f32 %v6352_v30  ;;  %v2179_v46 = vand.u32 2147483648, %v2137_v50  ;;  %v5580_v60 = vld [vmem:[%s9404_s2 + $0xe8] sm:$0xf] }
 0x44b   :  { %v2154_v62 = vmul.f32 %v6354_v56, %v2136_v14  ;;  %6357 = vtanh.f32 %v2125_v34  ;;  %vm2159_vm15 = vweird.f32 %v6354_v56  ;;  %vm2145_vm2 = vmor %vm2143_vm0, %vm2144_vm14  ;;  %vm2173_vm7 = vweird.f32 %v2137_v50  ;;  %2743 = vmatpush.bf16.msra.mxu3 %v5585_v24  ;;  %v6177_v34 = vld [vmem:[%s9404_s2 + $0xc4] sm:$0xf]  ;;  %v6163_v24 = vld [vmem:[%s9404_s2 + $0x4c] sm:$0xf0] }
 0x44c   :  { %v2140_v0 = vsub.f32 1.0, %v2139_v52  ;;  %vm2160_vm3 = vmor %vm2158_vm1, %vm2159_vm15  ;;  %v2177_v21 = vand.u32 2147483647, %v2137_v50  ;;  %v2180_v13 = vor.u32 1.1754944e-38, %v2179_v46  ;;  %v5577_v14 = vor.u32 %v6181_v54, %v5574_v10  ;;  %v5558_v52 = vld [vmem:[%s9404_s2 + $0xd0] sm:$0xf0] }
 0x44d   :  { %v2155_v37 = vsub.f32 1.0, %v2154_v62  ;;  %v5581_v44 = vor.u32 %v6184_v8, %v5580_v60  ;;  %v5564_v62 = vld [vmem:[%s9404_s2 + $0xc8] sm:$0xf]  ;;  %v6172_v46 = vld [vmem:[%s9404_s2 + $0x94] sm:$0xf0] }
 0x44e   :  { %v2141_v11 = vmul.f32 %v6352_v30, %v2140_v0  ;;  %vm2178_vm9 = vcmp.eq.f32.partialorder %v2177_v21, 8.507059e+37  ;;  %2717 = vmatpush.bf16.msrb.mxu1 %v5577_v14  ;;  %v6180_v0 = vld [vmem:[%s9404_s2 + $0xd4] sm:$0xf0]  ;;  %v5510_v54 = vld [vmem:[%s9404_s2 + $0x70] sm:$0xf0] }
 0x44f   :  { %v2156_v7 = vmul.f32 %v6354_v56, %v2155_v37  ;;  %2730 = vmatpush.bf16.msra.mxu2 %v5581_v44  ;;  %v5561_v37 = vor.u32 %v6177_v34, %v5558_v52  ;;  %v5565_v63 = vor.u32 %v6180_v0, %v5564_v62  ;;  %v6168_v10 = vld [vmem:[%s9404_s2 + $0x74] sm:$0xf0]  ;;  %v6166_v14 = vld [vmem:[%s9404_s2 + $0x6c] sm:$0xf]  ;;  %v5518_v44 = vld [vmem:[%s9404_s2 + $0x78] sm:$0xf0] }
 0x450   :  { %v6356_v45 = vpop.eup %6355  ;;  %v2142_v39 = vadd.f32 %v6352_v30, %v2141_v11  ;;  %v5566_v11 = vld [vmem:[%s9404_s2 + $0xd8] sm:$0xf0]  ;;  %v5521_v53 = vor.u32 %v6166_v14, %v5518_v44  ;;  %v5494_v34 = vld [vmem:[%s9404_s2 + $0x50] sm:$0xf0]  ;;  %v6164_v52 = vld [vmem:[%s9404_s2 + $0x54] sm:$0xf0] }
 0x451   :  { %v2169_v33 = vmul.f32 %v6356_v45, %v2137_v50  ;;  %v2157_v26 = vadd.f32 %v6354_v56, %v2156_v7  ;;  %v6358_v31 = vpop.eup %6357  ;;  %vm2174_vm6 = vweird.f32 %v6356_v45  ;;  %v5556_v50 = vld [vmem:[%s9404_s2 + $0xc0] sm:$0xf]  ;;  %v5569_v55 = vor.u32 %v6178_v2, %v5566_v11  ;;  %v6218_v14 = vld [vmem:[%s9406_s4 + $0xec] sm:$0xf] }
 0x452   :  { %v2146_v38 = vsel %vm2145_vm2, %v6352_v30, %v2142_v39  ;;  %vm2175_vm8 = vmor %vm2173_vm7, %vm2174_vm6  ;;  %v6179_v30 = vld [vmem:[%s9404_s2 + $0xcc] sm:$0xf0]  ;;  %2718 = vmatpush.bf16.msrb.mxu1 %v5561_v37  ;;  %v5540_v7 = vld [vmem:[%s9404_s2 + $0xa0] sm:$0xf] }
 0x453   :  { %v2170_v32 = vsub.f32 1.0, %v2169_v33  ;;  %v2151_v40 = vsel %vm2148_vm4, %v2150_v17, %v2146_v38  ;;  %v2161_v27 = vsel %vm2160_vm3, %v6354_v56, %v2157_v26  ;;  %v5557_v56 = vor.u32 %v6179_v30, %v5556_v50  ;;  %2731 = vmatpush.bf16.msra.mxu2 %v5565_v63  ;;  %2744 = vmatpush.bf16.msra.mxu3 %v5569_v55  ;;  %v5542_v33 = vld [vmem:[%s9404_s2 + $0xb0] sm:$0xf0]  ;;  %v5548_v17 = vld [vmem:[%s9404_s2 + $0xa8] sm:$0xf] }
 0x454   :  { %v2166_v18 = vsel %vm2163_vm5, %v2165_v29, %v2161_v27  ;;  %v2185_v59 = vmul.f32 %v6358_v31, %v2151_v40  ;;  %v5541_v39 = vor.u32 %v6175_v22, %v5540_v7  ;;  %v6176_v26 = vld [vmem:[%s9404_s2 + $0xb4] sm:$0xf0]  ;;  %v6174_v31 = vld [vmem:[%s9404_s2 + $0xac] sm:$0xf]  ;;  %v5524_v27 = vld [vmem:[%s9404_s2 + $0x80] sm:$0xf]  ;;  %v5493_v30 = vor.u32 %v6163_v24, %v5492_v61 }
 0x455   :  { %v2171_v43 = vmul.f32 %v6356_v45, %v2170_v32  ;;  %v2184_v20 = vmul.f32 %v2166_v18, %v7975_v12  ;;  %v5572_v12 = vld [vmem:[%s9404_s2 + $0xe0] sm:$0xf]  ;;  %v5549_v38 = vor.u32 %v6176_v26, %v5548_v17  ;;  %v5550_v32 = vld [vmem:[%s9404_s2 + $0xb8] sm:$0xf0]  ;;  %v6171_v18 = vld [vmem:[%s9404_s2 + $0x8c] sm:$0xf0] }
 0x456   :  { %v5573_v49 = vor.u32 %v6183_v35, %v5572_v12  ;;  %v5553_v40 = vor.u32 %v6174_v31, %v5550_v32  ;;  %v6165_v12 = vld [vmem:[%s9404_s2 + $0x64] sm:$0xf]  ;;  %v6162_v37 = vld [vmem:[%s9404_s2 + $0x4c] sm:$0xf]  ;;  %v5502_v63 = vld [vmem:[%s9404_s2 + $0x58] sm:$0xf0] }
 0x457   :  { %v8179_v5 = vadd.f32 %v2185_v59, %v2184_v20  ;;  %v2172_v41 = vadd.f32 %v6356_v45, %v2171_v43  ;;  %2732 = vmatpush.bf16.msra.mxu2 %v5549_v38  ;;  %v6169_v59 = vld [vmem:[%s9404_s2 + $0x84] sm:$0xf]  ;;  %v5525_v43 = vor.u32 %v6171_v18, %v5524_v27  ;;  %v5526_v20 = vld [vmem:[%s9404_s2 + $0x90] sm:$0xf0]  ;;  %v5513_v60 = vor.u32 %v6165_v12, %v5510_v54  ;;  %v5476_v11 = vld [vmem:[%s9404_s2 + $0x20] sm:$0xf] }
 0x458   :  { %2704 = vmatpush.bf16.msra.mxu0 %v5573_v49  ;;  %2745 = vmatpush.bf16.msra.mxu3 %v5553_v40  ;;  %v5529_v21 = vor.u32 %v6169_v59, %v5526_v20  ;;  %v5516_v49 = vld [vmem:[%s9404_s2 + $0x68] sm:$0xf]  ;;  %v6161_v50 = vld [vmem:[%s9404_s2 + $0x44] sm:$0xf]  ;;  %v5505_v2 = vor.u32 %v6162_v37, %v5502_v63  ;;  %v6159_v55 = vld [vmem:[%s9404_s2 + $0x2c] sm:$0xf0] }
 0x459   :  { %6359 = vtanh.f32 %v8179_v5  ;;  %v2176_v42 = vsel %vm2175_vm8, %v6356_v45, %v2172_v41  ;;  %v6173_v45 = vld [vmem:[%s9404_s2 + $0xa4] sm:$0xf]  ;;  %v5532_v41 = vld [vmem:[%s9404_s2 + $0x88] sm:$0xf]  ;;  %v5517_v8 = vor.u32 %v6168_v10, %v5516_v49  ;;  %v5497_v62 = vor.u32 %v6161_v50, %v5494_v34  ;;  %v5486_v38 = vld [vmem:[%s9404_s2 + $0x38] sm:$0xf0] }
 0x45a   :  { %v2181_v51 = vsel %vm2178_vm9, %v2180_v13, %v2176_v42  ;;  %v5545_v29 = vor.u32 %v6173_v45, %v5542_v33  ;;  %v5533_v42 = vor.u32 %v6172_v46, %v5532_v41  ;;  %v6170_v13 = vld [vmem:[%s9404_s2 + $0x8c] sm:$0xf]  ;;  %v6157_v7 = vld [vmem:[%s9404_s2 + $0x24] sm:$0xf]  ;;  %v5477_v22 = vor.u32 %v6159_v55, %v5476_v11  ;;  %v5478_v45 = vld [vmem:[%s9404_s2 + $0x30] sm:$0xf0] }
 0x45b   :  { %v6160_v33 = vld [vmem:[%s9404_s2 + $0x34] sm:$0xf0]  ;;  %v5481_v17 = vor.u32 %v6157_v7, %v5478_v45  ;;  %v5460_v32 = vld [vmem:[%s9404_s2] sm:$0xf]  ;;  %v6155_v40 = vld [vmem:[%s9404_s2 + $0xc] sm:$0xf0] }
 0x45c   :  { %2705 = vmatpush.bf16.msra.mxu0 %v5557_v56  ;;  %2719 = vmatpush.bf16.msrb.mxu1 %v5545_v29  ;;  %v5500_v56 = vld [vmem:[%s9404_s2 + $0x48] sm:$0xf]  ;;  %v6158_v29 = vld [vmem:[%s9404_s2 + $0x2c] sm:$0xf]  ;;  %v6153_v27 = vld [vmem:[%s9404_s2 + $0x4] sm:$0xf]  ;;  %v5461_v18 = vor.u32 %v6155_v40, %v5460_v32 }
 0x45d   :  { %2733 = vmatpush.bf16.msra.mxu2 %v5533_v42  ;;  %v5501_v0 = vor.u32 %v6164_v52, %v5500_v56  ;;  %v5489_v31 = vor.u32 %v6158_v29, %v5486_v38  ;;  %v5462_v59 = vld [vmem:[%s9404_s2 + $0x10] sm:$0xf0]  ;;  %v6156_v20 = vld [vmem:[%s9404_s2 + $0x14] sm:$0xf0]  ;;  %v5470_v42 = vld [vmem:[%s9404_s2 + $0x18] sm:$0xf0] }
 0x45e   :  { %v5465_v41 = vor.u32 %v6153_v27, %v5462_v59  ;;  %v6217_v12 = vld [vmem:[%s9406_s4 + $0xe4] sm:$0xf]  ;;  %v6215_v61 = vld [vmem:[%s9406_s4 + $0xcc] sm:$0xf0]  ;;  %v5705_v52 = vld [vmem:[%s9406_s4 + $0xd0] sm:$0xf0] }
 0x45f   :  { %v6360_v23 = vpop.eup %6359  ;;  %v6213_v56 = vld [vmem:[%s9406_s4 + $0xc4] sm:$0xf]  ;;  %v5713_v11 = vld [vmem:[%s9406_s4 + $0xd8] sm:$0xf0]  ;;  %v5687_v55 = vld [vmem:[%s9406_s4 + $0xa0] sm:$0xf] }
 0x460   :  { %v2188_v36 = vmul.f32 %v6360_v23, %v2181_v51  ;;  %2706 = vmatpush.bf16.msra.mxu0 %v5541_v39  ;;  %v5534_v23 = vld [vmem:[%s9404_s2 + $0x98] sm:$0xf0]  ;;  %2720 = vmatpush.bf16.msrb.mxu1 %v5529_v21  ;;  %v5484_v39 = vld [vmem:[%s9404_s2 + $0x28] sm:$0xf]  ;;  %v6154_v21 = vld [vmem:[%s9404_s2 + $0xc] sm:$0xf]  ;;  %v5708_v37 = vor.u32 %v6213_v56, %v5705_v52 }
 0x461   :  { %v5537_v51 = vor.u32 %v6170_v13, %v5534_v23  ;;  %2734 = vmatpush.bf16.msra.mxu2 %v5517_v8  ;;  %v5485_v26 = vor.u32 %v6160_v33, %v5484_v39  ;;  %v5719_v13 = vld [vmem:[%s9406_s4 + $0xe0] sm:$0xf]  ;;  %v6220_v8 = vld [vmem:[%s9406_s4 + $0xf4] sm:$0xf0]  ;;  %v6209_v45 = vld [vmem:[%s9406_s4 + $0xa4] sm:$0xf] }
 0x462   :  { %v2189_v19 = vpack.c.bf16 %v2188_v36, %v2188_v36  ;;  %v5508_v36 = vld [vmem:[%s9404_s2 + $0x60] sm:$0xf]  ;;  %v5689_v39 = vld [vmem:[%s9406_s4 + $0xb0] sm:$0xf0]  ;;  %v5695_v29 = vld [vmem:[%s9406_s4 + $0xa8] sm:$0xf] }
 0x463   :  { %2746 = vmatpush.bf16.msra.mxu3 %v5537_v51  ;;  %v6212_v38 = vld [vmem:[%s9406_s4 + $0xb4] sm:$0xf0] }
 0x464   :  { %2190 = vst [vmem:[#allocation3 + $0x14] sm:$0xf] %v2189_v19  ;;  %2395 = vmatmul.bf16.vlgmr.msrb.gmra.mxu0 %v2189_v19  ;;  %2408 = vmatmul.bf16.vlgmr.msra.gmra.mxu1 %v2189_v19  ;;  %v5696_v59 = vor.u32 %v6212_v38, %v5695_v29  ;;  %v6204_v56 = vld [vmem:[%s9406_s4 + $0x74] sm:$0xf0] }
 0x465   :  { %2421 = vmatmul.bf16.vlgmr.msrb.gmra.mxu2 %v2189_v19  ;;  %2434 = vmatmul.bf16.vlgmr.msrb.gmra.mxu3 %v2189_v19  ;;  %v6167_v19 = vld [vmem:[%s9404_s2 + $0x6c] sm:$0xf0] }
 0x466   :  { %2707 = vmatpush.bf16.msra.mxu0 %v5525_v43  ;;  %v5509_v35 = vor.u32 %v6167_v19, %v5508_v36  ;;  %2721 = vmatpush.bf16.msrb.mxu1 %v5513_v60  ;;  %v5468_v43 = vld [vmem:[%s9404_s2 + $0x8] sm:$0xf]  ;;  %v5473_v36 = vor.u32 %v6154_v21, %v5470_v42  ;;  %v6219_v19 = vld [vmem:[%s9406_s4 + $0xec] sm:$0xf0]  ;;  %v5673_v21 = vld [vmem:[%s9406_s4 + $0x90] sm:$0xf0] }
 0x467   :  { %2747 = vmatpush.bf16.msra.mxu3 %v5521_v53  ;;  %2735 = vmatpush.bf16.msra.mxu2 %v5501_v0  ;;  %v5469_v46 = vor.u32 %v6156_v20, %v5468_v43  ;;  %v5720_v10 = vor.u32 %v6219_v19, %v5719_v13  ;;  %v5727_v60 = vld [vmem:[%s9406_s4 + $0xe8] sm:$0xf]  ;;  %v5703_v53 = vld [vmem:[%s9406_s4 + $0xc0] sm:$0xf]  ;;  %v6216_v0 = vld [vmem:[%s9406_s4 + $0xd4] sm:$0xf0] }
 0x468   :  { %v5704_v34 = vor.u32 %v6215_v61, %v5703_v53  ;;  %v5697_v43 = vld [vmem:[%s9406_s4 + $0xb8] sm:$0xf0]  ;;  %v5671_v20 = vld [vmem:[%s9406_s4 + $0x80] sm:$0xf]  ;;  %v5679_v42 = vld [vmem:[%s9406_s4 + $0x88] sm:$0xf] }
 0x469   :  { %v6201_v61 = vld [vmem:[%s9406_s4 + $0x64] sm:$0xf] }
 0x46a   :  { %2708 = vmatpush.bf16.msra.mxu0 %v5509_v35  ;;  %2722 = vmatpush.bf16.msrb.mxu1 %v5497_v62  ;;  %v5721_v35 = vld [vmem:[%s9406_s4 + $0xf0] sm:$0xf0]  ;;  %v5711_v62 = vld [vmem:[%s9406_s4 + $0xc8] sm:$0xf] }
 0x46b   :  { %2748 = vmatpush.bf16.msra.mxu3 %v5505_v2  ;;  %2736 = vmatpush.bf16.msra.mxu2 %v5485_v26  ;;  %v5724_v44 = vor.u32 %v6217_v12, %v5721_v35  ;;  %v5712_v63 = vor.u32 %v6216_v0, %v5711_v62  ;;  %v6214_v2 = vld [vmem:[%s9406_s4 + $0xcc] sm:$0xf]  ;;  %v5681_v12 = vld [vmem:[%s9406_s4 + $0x98] sm:$0xf0] }
 0x46c   :  { %v5716_v7 = vor.u32 %v6214_v2, %v5713_v11  ;;  %v5639_v2 = vld [vmem:[%s9406_s4 + $0x40] sm:$0xf] }
 0x46e   :  { %2709 = vmatpush.bf16.msra.mxu0 %v5493_v30  ;;  %2723 = vmatpush.bf16.msrb.mxu1 %v5481_v17 }
 0x46f   :  { %2749 = vmatpush.bf16.msra.mxu3 %v5489_v31  ;;  %2737 = vmatpush.bf16.msra.mxu2 %v5469_v46  ;;  %v6210_v31 = vld [vmem:[%s9406_s4 + $0xac] sm:$0xf]  ;;  %v6205_v46 = vld [vmem:[%s9406_s4 + $0x84] sm:$0xf] }
 0x472   :  { %2710 = vmatpush.bf16.msra.mxu0 %v5477_v22  ;;  %2724 = vmatpush.bf16.msrb.mxu1 %v5465_v41  ;;  %v6211_v22 = vld [vmem:[%s9406_s4 + $0xac] sm:$0xf0] }
 0x473   :  { %2750 = vmatpush.bf16.msra.mxu3 %v5473_v36  ;;  %v5688_v26 = vor.u32 %v6211_v22, %v5687_v55  ;;  %v6207_v41 = vld [vmem:[%s9406_s4 + $0x8c] sm:$0xf0] }
 0x474   :  { %v5672_v19 = vor.u32 %v6207_v41, %v5671_v20 }
 0x476   :  { %2711 = vmatpush.bf16.msra.mxu0 %v5461_v18  ;;  %3088 = vmatpush.bf16.msra.mxu1 %v5724_v44  ;;  %v5692_v18 = vor.u32 %v6209_v45, %v5689_v39  ;;  %v5641_v39 = vld [vmem:[%s9406_s4 + $0x50] sm:$0xf0] }
 0x47a   :  { %3059 = vmatpush.bf16.msrb.mxu0 %v5720_v10  ;;  %3089 = vmatpush.bf16.msra.mxu1 %v5708_v37  ;;  %v6202_v37 = vld [vmem:[%s9406_s4 + $0x6c] sm:$0xf] }
 0x47e   :  { %3060 = vmatpush.bf16.msrb.mxu0 %v5704_v34  ;;  %3090 = vmatpush.bf16.msra.mxu1 %v5692_v18  ;;  %v5663_v34 = vld [vmem:[%s9406_s4 + $0x68] sm:$0xf]  ;;  %v5623_v18 = vld [vmem:[%s9406_s4 + $0x20] sm:$0xf] }
 0x47f   :  { %v5664_v0 = vor.u32 %v6204_v56, %v5663_v34  ;;  %v5615_v34 = vld [vmem:[%s9406_s4 + $0x8] sm:$0xf]  ;;  %v6192_v56 = vld [vmem:[%s9406_s4 + $0x14] sm:$0xf0] }
 0x482   :  { %3061 = vmatpush.bf16.msrb.mxu0 %v5688_v26 }
 0x486   :  { %3062 = vmatpush.bf16.msrb.mxu0 %v5672_v19  ;;  %v6196_v19 = vld [vmem:[%s9406_s4 + $0x34] sm:$0xf0] }
 0x4e1   :  { %v2396_v23 = vpop.f32.mrf.mxu0  ;;  %v2409_v51 = vpop.f32.mrf.mxu1 }
 0x4e2   :  { %v2439_v54 = vadd.f32 %v2396_v23, %v6872_v6  ;;  %v2440_v49 = vadd.f32 %v2409_v51, %v6975_v4  ;;  %v5728_v6 = vor.u32 %v6220_v8, %v5727_v60  ;;  %v5729_v4 = vld [vmem:[%s9406_s4 + $0xf8] sm:$0xf0]  ;;  %v6208_v23 = vld [vmem:[%s9406_s4 + $0x94] sm:$0xf0]  ;;  %v6206_v51 = vld [vmem:[%s9406_s4 + $0x8c] sm:$0xf] }
 0x4e3   :  { %v5732_v30 = vor.u32 %v6218_v14, %v5729_v4  ;;  %v5680_v10 = vor.u32 %v6208_v23, %v5679_v42  ;;  %v5684_v8 = vor.u32 %v6206_v51, %v5681_v12  ;;  %v5655_v14 = vld [vmem:[%s9406_s4 + $0x60] sm:$0xf]  ;;  %v6203_v4 = vld [vmem:[%s9406_s4 + $0x6c] sm:$0xf0] }
 0x4e4   :  { %v5455_v24 = vmul.f32 -1.442695, %v2439_v54  ;;  %v5456_v50 = vmul.f32 -1.442695, %v2440_v49  ;;  %3117 = vmatpush.bf16.msrb.mxu2 %v5728_v6  ;;  %v5676_v49 = vor.u32 %v6205_v46, %v5673_v21  ;;  %v5656_v53 = vor.u32 %v6203_v4, %v5655_v14  ;;  %v6193_v46 = vld [vmem:[%s9406_s4 + $0x24] sm:$0xf] }
 0x4e5   :  { %3146 = vmatpush.bf16.msrb.mxu3 %v5732_v30  ;;  %v5625_v21 = vld [vmem:[%s9406_s4 + $0x30] sm:$0xf0]  ;;  %v5607_v14 = vld [vmem:[%s9406_s4] sm:$0xf]  ;;  %v6191_v4 = vld [vmem:[%s9406_s4 + $0xc] sm:$0xf0] }
 0x4e6   :  { %6361 = vpow2.f32 %v5455_v24  ;;  %3091 = vmatpush.bf16.msra.mxu1 %v5676_v49  ;;  %v5657_v24 = vld [vmem:[%s9406_s4 + $0x70] sm:$0xf0]  ;;  %3063 = vmatpush.bf16.msrb.mxu0 %v5656_v53  ;;  %v6189_v53 = vld [vmem:[%s9406_s4 + $0x4] sm:$0xf] }
 0x4e7   :  { %6363 = vpow2.f32 %v5456_v50  ;;  %v5660_v30 = vor.u32 %v6201_v61, %v5657_v24  ;;  %v5609_v61 = vld [vmem:[%s9406_s4 + $0x10] sm:$0xf0] }
 0x4e8   :  { %v2422_v33 = vpop.f32.mrf.mxu2  ;;  %v2435_v17 = vpop.f32.mrf.mxu3  ;;  %3118 = vmatpush.bf16.msrb.mxu2 %v5712_v63  ;;  %v5665_v63 = vld [vmem:[%s9406_s4 + $0x78] sm:$0xf0] }
 0x4e9   :  { %v2441_v32 = vadd.f32 %v2422_v33, %v6936_v47  ;;  %v2398_v40 = vpop.f32.mrf.mxu0  ;;  %v2411_v27 = vpop.f32.mrf.mxu1  ;;  %3147 = vmatpush.bf16.msrb.mxu3 %v5716_v7  ;;  %v5700_v47 = vor.u32 %v6210_v31, %v5697_v43  ;;  %v2442_v62 = vadd.f32 %v2435_v17, %v6939_v48  ;;  %v5668_v55 = vor.u32 %v6202_v37, %v5665_v63  ;;  %v6199_v48 = vld [vmem:[%s9406_s4 + $0x4c] sm:$0xf0]  ;;  %v6197_v7 = vld [vmem:[%s9406_s4 + $0x44] sm:$0xf]  ;;  %v5647_v33 = vld [vmem:[%s9406_s4 + $0x48] sm:$0xf] }
 0x4ea   :  { %3092 = vmatpush.bf16.msra.mxu1 %v5660_v30  ;;  %v5640_v45 = vor.u32 %v6199_v48, %v5639_v2  ;;  %v6200_v17 = vld [vmem:[%s9406_s4 + $0x54] sm:$0xf0]  ;;  %v6198_v31 = vld [vmem:[%s9406_s4 + $0x4c] sm:$0xf]  ;;  %v5644_v41 = vor.u32 %v6197_v7, %v5641_v39  ;;  %v5608_v30 = vor.u32 %v6191_v4, %v5607_v14  ;;  %v5617_v2 = vld [vmem:[%s9406_s4 + $0x18] sm:$0xf0]  ;;  %v5612_v48 = vor.u32 %v6189_v53, %v5609_v61 }
 0x4eb   :  { %v5457_v13 = vmul.f32 -1.442695, %v2441_v32  ;;  %v5649_v32 = vld [vmem:[%s9406_s4 + $0x58] sm:$0xf0]  ;;  %v5616_v7 = vor.u32 %v6192_v56, %v5615_v34  ;;  %v5855_v14 = vld [vmem:[%s9407_s5 + $0xe8] sm:$0xf] }
 0x4ec   :  { %v6362_v36 = vpop.eup %6361  ;;  %3119 = vmatpush.bf16.msrb.mxu2 %v5696_v59  ;;  %v6195_v59 = vld [vmem:[%s9406_s4 + $0x2c] sm:$0xf0]  ;;  %3064 = vmatpush.bf16.msrb.mxu0 %v5640_v45  ;;  %v5652_v23 = vor.u32 %v6198_v31, %v5649_v32  ;;  %v6250_v53 = vld [vmem:[%s9407_s5 + $0xec] sm:$0xf]  ;;  %v5857_v61 = vld [vmem:[%s9407_s5 + $0xf8] sm:$0xf0] }
 0x4ed   :  { %v6364_v35 = vpop.eup %6363  ;;  %v8473_v54 = vadd.f32 1.0, %v6362_v36  ;;  %6365 = vpow2.f32 %v5457_v13  ;;  %3148 = vmatpush.bf16.msrb.mxu3 %v5700_v47  ;;  %v5648_v47 = vor.u32 %v6200_v17, %v5647_v33  ;;  %v5624_v51 = vor.u32 %v6195_v59, %v5623_v18  ;;  %v5631_v36 = vld [vmem:[%s9406_s4 + $0x28] sm:$0xf]  ;;  %v5831_v34 = vld [vmem:[%s9407_s5 + $0xc0] sm:$0xf] }
 0x4ee   :  { %v8475_v60 = vadd.f32 1.0, %v6364_v35  ;;  %3093 = vmatpush.bf16.msra.mxu1 %v5644_v41  ;;  %v5628_v35 = vor.u32 %v6193_v46, %v5625_v21  ;;  %v5632_v49 = vor.u32 %v6196_v19, %v5631_v36  ;;  %v6185_v41 = vld [vmem:[#allocation3] sm:$0xff]  ;;  %v168_v46 = vadd.f32 %v6880_v9, %v6869_v3  ;;  %v6251_v9 = vld [vmem:[%s9407_s5 + $0xec] sm:$0xf0] }
 0x4ef   :  { %6367 = vrcp.f32 %v8473_v54  ;;  %v2464_v50 = vand.u32 2147483647, %v8473_v54  ;;  %v2466_v38 = vand.u32 2147483648, %v8473_v54  ;;  %vm2460_vm14 = vweird.f32 %v8473_v54  ;;  %v5847_v3 = vld [vmem:[%s9407_s5 + $0xe0] sm:$0xf] }
 0x4f0   :  { %6369 = vrcp.f32 %v8475_v60  ;;  %v2424_v44 = vpop.f32.mrf.mxu2  ;;  %v2437_v6 = vpop.f32.mrf.mxu3  ;;  %3120 = vmatpush.bf16.msrb.mxu2 %v5680_v10  ;;  %v2479_v27 = vand.u32 2147483647, %v8475_v60  ;;  %v2481_v20 = vand.u32 2147483648, %v8475_v60  ;;  %v6194_v10 = vld [vmem:[%s9406_s4 + $0x2c] sm:$0xf]  ;;  %vm2475_vm13 = vweird.f32 %v8475_v60  ;;  %3065 = vmatpush.bf16.msrb.mxu0 %v5624_v51 }
 0x4f1   :  { %3149 = vmatpush.bf16.msrb.mxu3 %v5684_v8  ;;  %vm8555_vm10 = vcmp.eq.f32.partialorder %v2464_v50, 8.507059e+37  ;;  %v5633_v8 = vld [vmem:[%s9406_s4 + $0x38] sm:$0xf0]  ;;  %v197_v21 = vadd.f32 %v7029_v28, %v6905_v25  ;;  %v6249_v25 = vld [vmem:[%s9407_s5 + $0xe4] sm:$0xf] }
 0x4f2   :  { %v5636_v6 = vor.u32 %v6194_v10, %v5633_v8  ;;  %vm2480_vm1 = vcmp.eq.f32.partialorder %v2479_v27, 8.507059e+37  ;;  %3094 = vmatpush.bf16.msra.mxu1 %v5628_v35  ;;  %v6247_v56 = vld [vmem:[%s9407_s5 + $0xcc] sm:$0xf0] }
 0x4f3   :  { %v6366_v52 = vpop.eup %6365 }
 0x4f4   :  { %v8508_v11 = vadd.f32 1.0, %v6366_v52  ;;  %3121 = vmatpush.bf16.msrb.mxu2 %v5664_v0  ;;  %v6190_v52 = vld [vmem:[%s9406_s4 + $0xc] sm:$0xf]  ;;  %v2482_v0 = vor.u32 1.1754944e-38, %v2481_v20  ;;  %3066 = vmatpush.bf16.msrb.mxu0 %v5608_v30 }
 0x4f5   :  { %v8516_v22 = vpop.eup %6367  ;;  %3150 = vmatpush.bf16.msrb.mxu3 %v5668_v55  ;;  %v5620_v17 = vor.u32 %v6190_v52, %v5617_v2  ;;  %v6245_v52 = vld [vmem:[%s9407_s5 + $0xc4] sm:$0xf] }
 0x4f6   :  { %v8527_v26 = vpop.eup %6369  ;;  %v2456_v29 = vmul.f32 %v8516_v22, %v8473_v54  ;;  %6371 = vrcp.f32 %v8508_v11  ;;  %vm2461_vm11 = vweird.f32 %v8516_v22  ;;  %v2467_v54 = vor.u32 1.1754944e-38, %v2466_v38  ;;  %3095 = vmatpush.bf16.msra.mxu1 %v5612_v48  ;;  %v6248_v48 = vld [vmem:[%s9407_s5 + $0xd4] sm:$0xf0] }
 0x4f7   :  { %v2471_v40 = vmul.f32 %v8527_v26, %v8475_v60  ;;  %6373 = vtanh.f32 %v2442_v62  ;;  %vm2476_vm12 = vweird.f32 %v8527_v26  ;;  %vm2462_vm15 = vmor %vm2460_vm14, %vm2461_vm11  ;;  %vm2490_vm3 = vweird.f32 %v8508_v11 }
 0x4f8   :  { %v2457_v43 = vsub.f32 1.0, %v2456_v29  ;;  %3122 = vmatpush.bf16.msrb.mxu2 %v5648_v47  ;;  %vm2477_vm0 = vmor %vm2475_vm13, %vm2476_vm12  ;;  %v6186_v47 = vld [vmem:[#allocation3 + $0x8] sm:$0xff] }
 0x4f9   :  { %v2472_v42 = vsub.f32 1.0, %v2471_v40  ;;  %3151 = vmatpush.bf16.msrb.mxu3 %v5652_v23  ;;  %v2496_v40 = vand.u32 2147483648, %v8508_v11 }
 0x4fa   :  { %v2458_v12 = vmul.f32 %v8516_v22, %v2457_v43 }
 0x4fb   :  { %v2473_v44 = vmul.f32 %v8527_v26, %v2472_v42  ;;  %v2497_v18 = vor.u32 1.1754944e-38, %v2496_v40 }
 0x4fc   :  { %v6372_v24 = vpop.eup %6371  ;;  %v2459_v50 = vadd.f32 %v8516_v22, %v2458_v12  ;;  %3123 = vmatpush.bf16.msrb.mxu2 %v5632_v49  ;;  %v226_v12 = vadd.f32 %v6958_v57, %v6891_v15  ;;  %v8638_v15 = vor.u32 %v6251_v9, %v5847_v3  ;;  %v5849_v57 = vld [vmem:[%s9407_s5 + $0xf0] sm:$0xf0] }
 0x4fd   :  { %v6374_v62 = vpop.eup %6373  ;;  %v2486_v37 = vmul.f32 %v6372_v24, %v8508_v11  ;;  %v2474_v63 = vadd.f32 %v8527_v26, %v2473_v44  ;;  %3152 = vmatpush.bf16.msrb.mxu3 %v5636_v6  ;;  %vm2491_vm2 = vweird.f32 %v6372_v24  ;;  %v6252_v44 = vld [vmem:[%s9407_s5 + $0xf4] sm:$0xf0]  ;;  %v8649_v6 = vor.u32 %v6249_v25, %v5849_v57  ;;  %v5825_v25 = vld [vmem:[%s9407_s5 + $0xb8] sm:$0xf0]  ;;  %v6233_v57 = vld [vmem:[%s9407_s5 + $0x64] sm:$0xf] }
 0x4fe   :  { %v2463_v55 = vsel %vm2462_vm15, %v8516_v22, %v2459_v50  ;;  %vm2492_vm4 = vmor %vm2490_vm3, %vm2491_vm2  ;;  %v8651_v4 = vor.u32 %v6252_v44, %v5855_v14  ;;  %v8660_v50 = vor.u32 %v6250_v53, %v5857_v61 }
 0x4ff   :  { %v2487_v45 = vsub.f32 1.0, %v2486_v37  ;;  %v2468_v39 = vsel %vm8555_vm10, %v2467_v54, %v2463_v55  ;;  %v2478_v33 = vsel %vm2477_vm0, %v8527_v26, %v2474_v63  ;;  %v2494_v26 = vand.u32 2147483647, %v8508_v11  ;;  %v6187_v11 = vld [vmem:[#allocation3 + $0x10] sm:$0xff]  ;;  %v5839_v63 = vld [vmem:[%s9407_s5 + $0xc8] sm:$0xf] }
 0x500   :  { %v2483_v29 = vsel %vm2480_vm1, %v2482_v0, %v2478_v33  ;;  %v2502_v38 = vmul.f32 %v6374_v62, %v2468_v39  ;;  %3124 = vmatpush.bf16.msrb.mxu2 %v5616_v7  ;;  %v8675_v37 = vor.u32 %v6247_v56, %v5831_v34  ;;  %v5833_v54 = vld [vmem:[%s9407_s5 + $0xd0] sm:$0xf0]  ;;  %v6246_v7 = vld [vmem:[%s9407_s5 + $0xcc] sm:$0xf] }
 0x501   :  { %v2488_v60 = vmul.f32 %v6372_v24, %v2487_v45  ;;  %v2501_v31 = vmul.f32 %v2483_v29, %v8179_v5  ;;  %3153 = vmatpush.bf16.msrb.mxu3 %v5620_v17  ;;  %vm2495_vm5 = vcmp.eq.f32.partialorder %v2494_v26, 8.507059e+37  ;;  %v8686_v55 = vor.u32 %v6245_v52, %v5833_v54  ;;  %v5841_v45 = vld [vmem:[%s9407_s5 + $0xd8] sm:$0xf0]  ;;  %v5815_v17 = vld [vmem:[%s9407_s5 + $0xa0] sm:$0xf] }
 0x502   :  { %v5817_v26 = vld [vmem:[%s9407_s5 + $0xb0] sm:$0xf0]  ;;  %v6238_v54 = vld [vmem:[%s9407_s5 + $0x8c] sm:$0xf] }
 0x503   :  { %v8615_v22 = vadd.f32 %v2502_v38, %v2501_v31  ;;  %v2489_v32 = vadd.f32 %v6372_v24, %v2488_v60  ;;  %v8705_v38 = vor.u32 %v6248_v48, %v5839_v63  ;;  %v6243_v60 = vld [vmem:[%s9407_s5 + $0xac] sm:$0xf0]  ;;  %v6241_v31 = vld [vmem:[%s9407_s5 + $0xa4] sm:$0xf]  ;;  %v5809_v48 = vld [vmem:[%s9407_s5 + $0x98] sm:$0xf0] }
 0x505   :  { %6375 = vtanh.f32 %v8615_v22  ;;  %v2493_v27 = vsel %vm2492_vm4, %v6372_v24, %v2489_v32  ;;  %v8713_v32 = vor.u32 %v6246_v7, %v5841_v45  ;;  %v5767_v7 = vld [vmem:[%s9407_s5 + $0x40] sm:$0xf]  ;;  %v6231_v45 = vld [vmem:[%s9407_s5 + $0x4c] sm:$0xf0] }
 0x506   :  { %v2498_v59 = vsel %vm2495_vm5, %v2497_v18, %v2493_v27  ;;  %v5823_v27 = vld [vmem:[%s9407_s5 + $0xa8] sm:$0xf] }
 0x50b   :  { %v6376_v5 = vpop.eup %6375 }
 0x50c   :  { %v2505_v43 = vmul.f32 %v6376_v5, %v2498_v59  ;;  %v255_v5 = vadd.f32 %v6960_v58, %v6893_v16  ;;  %v8725_v59 = vor.u32 %v6243_v60, %v5815_v17  ;;  %v6239_v16 = vld [vmem:[%s9407_s5 + $0x8c] sm:$0xf0]  ;;  %v6229_v60 = vld [vmem:[%s9407_s5 + $0x44] sm:$0xf] }
 0x50e   :  { %v2506_v20 = vpack.c.bf16 %v2505_v43, %v2505_v43  ;;  %v8727_v43 = vor.u32 %v6241_v31, %v5817_v26  ;;  %v5769_v31 = vld [vmem:[%s9407_s5 + $0x50] sm:$0xf0] }
 0x510   :  { %2507 = vst [vmem:[#allocation3 + $0x18] sm:$0xf] %v2506_v20  ;;  %2712 = vmatmul.bf16.vlgmr.msra.gmra.mxu0 %v2506_v20  ;;  %2725 = vmatmul.bf16.vlgmr.msrb.gmra.mxu1 %v2506_v20 }
 0x511   :  { %2738 = vmatmul.bf16.vlgmr.msra.gmra.mxu2 %v2506_v20  ;;  %2751 = vmatmul.bf16.vlgmr.msra.gmra.mxu3 %v2506_v20  ;;  %v6244_v20 = vld [vmem:[%s9407_s5 + $0xb4] sm:$0xf0] }
 0x512   :  { %3403 = vmatpush.bf16.msra.mxu0 %v8638_v15  ;;  %3416 = vmatpush.bf16.msrb.mxu1 %v8649_v6 }
 0x513   :  { %3429 = vmatpush.bf16.msra.mxu2 %v8651_v4  ;;  %3442 = vmatpush.bf16.msra.mxu3 %v8660_v50 }
 0x516   :  { %3404 = vmatpush.bf16.msra.mxu0 %v8675_v37  ;;  %3417 = vmatpush.bf16.msrb.mxu1 %v8686_v55 }
 0x517   :  { %3430 = vmatpush.bf16.msra.mxu2 %v8705_v38  ;;  %3443 = vmatpush.bf16.msra.mxu3 %v8713_v32 }
 0x51a   :  { %3405 = vmatpush.bf16.msra.mxu0 %v8725_v59  ;;  %3418 = vmatpush.bf16.msrb.mxu1 %v8727_v43 }
 0x520   :  { %3067 = vmatmul.bf16.vlgmr.msrb.gmra.mxu0 %v6185_v41  ;;  %3096 = vmatmul.bf16.vlgmr.msra.gmra.mxu1 %v6185_v41 }
 0x521   :  { %3125 = vmatmul.bf16.vlgmr.msrb.gmra.mxu2 %v6185_v41  ;;  %3154 = vmatmul.bf16.vlgmr.msrb.gmra.mxu3 %v6185_v41  ;;  %v5799_v41 = vld [vmem:[%s9407_s5 + $0x80] sm:$0xf] }
 0x530   :  { %3072 = vmatmul.bf16.gmra.mxu0 %v6186_v47  ;;  %3101 = vmatmul.bf16.gmra.mxu1 %v6186_v47 }
 0x531   :  { %3130 = vmatmul.bf16.gmra.mxu2 %v6186_v47  ;;  %3159 = vmatmul.bf16.gmra.mxu3 %v6186_v47 }
 0x540   :  { %3077 = vmatmul.bf16.gmra.mxu0 %v6187_v11  ;;  %3106 = vmatmul.bf16.gmra.mxu1 %v6187_v11 }
 0x541   :  { %3135 = vmatmul.bf16.gmra.mxu2 %v6187_v11  ;;  %3164 = vmatmul.bf16.gmra.mxu3 %v6187_v11  ;;  %v8742_v11 = vor.u32 %v6244_v20, %v5823_v27  ;;  %v5793_v20 = vld [vmem:[%s9407_s5 + $0x78] sm:$0xf0] }
 0x543   :  { %3431 = vmatpush.bf16.msra.mxu2 %v8742_v11 }
 0x58d   :  { %v2713_v42 = vpop.f32.mrf.mxu0  ;;  %v2726_v13 = vpop.f32.mrf.mxu1 }
 0x58e   :  { %v2756_v23 = vadd.f32 %v2713_v42, %v168_v46  ;;  %v2757_v51 = vadd.f32 %v2726_v13, %v197_v21  ;;  %v6237_v46 = vld [vmem:[%s9407_s5 + $0x84] sm:$0xf]  ;;  %v5801_v21 = vld [vmem:[%s9407_s5 + $0x90] sm:$0xf0] }
 0x590   :  { %v5586_v36 = vmul.f32 -1.442695, %v2756_v23  ;;  %v5587_v19 = vmul.f32 -1.442695, %v2757_v51  ;;  %v8755_v23 = vor.u32 %v6239_v16, %v5799_v41  ;;  %v8757_v51 = vor.u32 %v6237_v46, %v5801_v21 }
 0x591   :  { %v8876_v46 = vor.u32 %v6231_v45, %v5767_v7  ;;  %v6221_v45 = vld [vmem:[%s9407_s5 + $0x4] sm:$0xf] }
 0x592   :  { %6377 = vpow2.f32 %v5586_v36  ;;  %v5807_v36 = vld [vmem:[%s9407_s5 + $0x88] sm:$0xf]  ;;  %3406 = vmatpush.bf16.msra.mxu0 %v8755_v23  ;;  %3419 = vmatpush.bf16.msrb.mxu1 %v8757_v51 }
 0x593   :  { %6379 = vpow2.f32 %v5587_v19  ;;  %v6240_v19 = vld [vmem:[%s9407_s5 + $0x94] sm:$0xf0] }
 0x594   :  { %v2739_v35 = vpop.f32.mrf.mxu2  ;;  %v8627_v49 = vpop.f32.mrf.mxu3  ;;  %v8795_v53 = vor.u32 %v6240_v19, %v5807_v36  ;;  %v5751_v19 = vld [vmem:[%s9407_s5 + $0x20] sm:$0xf] }
 0x595   :  { %v2758_v28 = vadd.f32 %v2739_v35, %v226_v12  ;;  %v2715_v10 = vpop.f32.mrf.mxu0  ;;  %v2728_v8 = vpop.f32.mrf.mxu1  ;;  %v2759_v13 = vadd.f32 %v8627_v49, %v255_v5  ;;  %v6242_v12 = vld [vmem:[%s9407_s5 + $0xac] sm:$0xf] }
 0x596   :  { %v5783_v10 = vld [vmem:[%s9407_s5 + $0x60] sm:$0xf]  ;;  %v6235_v8 = vld [vmem:[%s9407_s5 + $0x6c] sm:$0xf0]  ;;  %v8797_v61 = vor.u32 %v6242_v12, %v5825_v25  ;;  %3432 = vmatpush.bf16.msra.mxu2 %v8795_v53  ;;  %v6234_v5 = vld [vmem:[%s9407_s5 + $0x6c] sm:$0xf] }
 0x597   :  { %v5588_v24 = vmul.f32 -1.442695, %v2758_v28  ;;  %v8884_v36 = vor.u32 %v6234_v5, %v5793_v20  ;;  %v6227_v12 = vld [vmem:[%s9407_s5 + $0x2c] sm:$0xf0] }
 0x598   :  { %v6378_v30 = vpop.eup %6377  ;;  %3444 = vmatpush.bf16.msra.mxu3 %v8797_v61  ;;  %v8923_v56 = vor.u32 %v6227_v12, %v5751_v19 }
 0x599   :  { %v6380_v62 = vpop.eup %6379  ;;  %v8673_v0 = vadd.f32 1.0, %v6378_v30  ;;  %6381 = vpow2.f32 %v5588_v24  ;;  %v5785_v24 = vld [vmem:[%s9407_s5 + $0x70] sm:$0xf0]  ;;  %v5791_v30 = vld [vmem:[%s9407_s5 + $0x68] sm:$0xf] }
 0x59a   :  { %v8684_v2 = vadd.f32 1.0, %v6380_v62  ;;  %v6236_v62 = vld [vmem:[%s9407_s5 + $0x74] sm:$0xf0] }
 0x59b   :  { %6383 = vrcp.f32 %v8673_v0  ;;  %v2781_v29 = vand.u32 2147483647, %v8673_v0  ;;  %v2783_v40 = vand.u32 2147483648, %v8673_v0  ;;  %v8835_v17 = vor.u32 %v6236_v62, %v5791_v30 }
 0x59c   :  { %6385 = vrcp.f32 %v8684_v2  ;;  %v2741_v39 = vpop.f32.mrf.mxu2  ;;  %v2754_v33 = vpop.f32.mrf.mxu3  ;;  %v2798_v58 = vand.u32 2147483648, %v8684_v2  ;;  %v2796_v9 = vand.u32 2147483647, %v8684_v2  ;;  %vm2792_vm7 = vweird.f32 %v8684_v2 }
 0x59d   :  { %vm8773_vm6 = vcmp.eq.f32.partialorder %v2781_v29, 8.507059e+37  ;;  %v2784_v44 = vor.u32 1.1754944e-38, %v2783_v40  ;;  %v8833_v33 = vor.u32 %v6233_v57, %v5785_v24  ;;  %v8837_v29 = vor.u32 %v6238_v54, %v5809_v48  ;;  %v5775_v40 = vld [vmem:[%s9407_s5 + $0x48] sm:$0xf]  ;;  %3433 = vmatpush.bf16.msra.mxu2 %v8835_v17  ;;  %v6230_v57 = vld [vmem:[%s9407_s5 + $0x4c] sm:$0xf] }
 0x59e   :  { %v2799_v52 = vor.u32 1.1754944e-38, %v2798_v58  ;;  %vm2777_vm11 = vweird.f32 %v8673_v0  ;;  %vm8870_vm13 = vcmp.eq.f32.partialorder %v2796_v9, 8.507059e+37  ;;  %v5777_v24 = vld [vmem:[%s9407_s5 + $0x58] sm:$0xf0]  ;;  %v5735_v54 = vld [vmem:[%s9407_s5] sm:$0xf] }
 0x59f   :  { %v6382_v18 = vpop.eup %6381  ;;  %3420 = vmatpush.bf16.msrb.mxu1 %v8833_v33  ;;  %3445 = vmatpush.bf16.msra.mxu3 %v8837_v29  ;;  %v8929_v62 = vor.u32 %v6230_v57, %v5777_v24  ;;  %v6222_v58 = vld [vmem:[%s9407_s5 + $0xc] sm:$0xf] }
 0x5a0   :  { %v8740_v47 = vadd.f32 1.0, %v6382_v18  ;;  %v6232_v18 = vld [vmem:[%s9407_s5 + $0x54] sm:$0xf0] }
 0x5a1   :  { %v8750_v42 = vpop.eup %6383 }
 0x5a2   :  { %v8768_v35 = vpop.eup %6385  ;;  %v2773_v49 = vmul.f32 %v8750_v42, %v8673_v0  ;;  %6387 = vrcp.f32 %v8740_v47  ;;  %vm2778_vm10 = vweird.f32 %v8750_v42  ;;  %vm2807_vm15 = vweird.f32 %v8740_v47 }
 0x5a3   :  { %v2788_v28 = vmul.f32 %v8768_v35, %v8684_v2  ;;  %vm2793_vm8 = vweird.f32 %v8768_v35  ;;  %6389 = vtanh.f32 %v2759_v13  ;;  %v8820_v2 = vor.u32 %v6235_v8, %v5783_v10  ;;  %vm8865_vm12 = vmor %vm2777_vm11, %vm2778_vm10  ;;  %v5753_v8 = vld [vmem:[%s9407_s5 + $0x30] sm:$0xf0]  ;;  %3446 = vmatpush.bf16.msra.mxu3 %v8884_v36 }
 0x5a4   :  { %v2774_v14 = vsub.f32 1.0, %v2773_v49  ;;  %vm8805_vm9 = vmor %vm2792_vm7, %vm2793_vm8  ;;  %v8882_v13 = vor.u32 %v6229_v60, %v5769_v31  ;;  %v6225_v49 = vld [vmem:[%s9407_s5 + $0x24] sm:$0xf]  ;;  %v8901_v10 = vor.u32 %v6232_v18, %v5775_v40  ;;  %v5761_v60 = vld [vmem:[%s9407_s5 + $0x38] sm:$0xf0]  ;;  %v2813_v18 = vand.u32 2147483648, %v8740_v47  ;;  %v3155_v57 = vpop.f32.mrf.mxu3 }
 0x5a5   :  { %v2789_v34 = vsub.f32 1.0, %v2788_v28  ;;  %3407 = vmatpush.bf16.msra.mxu0 %v8820_v2  ;;  %v5743_v40 = vld [vmem:[%s9407_s5 + $0x8] sm:$0xf]  ;;  %v2811_v20 = vand.u32 2147483647, %v8740_v47 }
 0x5a6   :  { %v2775_v63 = vmul.f32 %v8750_v42, %v2774_v14  ;;  %3421 = vmatpush.bf16.msrb.mxu1 %v8882_v13  ;;  %3434 = vmatpush.bf16.msra.mxu2 %v8901_v10  ;;  %v2814_v19 = vor.u32 1.1754944e-38, %v2813_v18 }
 0x5a7   :  { %v2790_v39 = vmul.f32 %v8768_v35, %v2789_v34  ;;  %3447 = vmatpush.bf16.msra.mxu3 %v8929_v62  ;;  %vm2812_vm1 = vcmp.eq.f32.partialorder %v2811_v20, 8.507059e+37 }
 0x5a8   :  { %v8848_v26 = vpop.eup %6387  ;;  %v2776_v27 = vadd.f32 %v8750_v42, %v2775_v63  ;;  %v6226_v63 = vld [vmem:[%s9407_s5 + $0x2c] sm:$0xf] }
 0x5a9   :  { %v2803_v41 = vmul.f32 %v8848_v26, %v8740_v47  ;;  %v2791_v0 = vadd.f32 %v8768_v35, %v2790_v39  ;;  %v6390_v9 = vpop.eup %6389  ;;  %3408 = vmatpush.bf16.msra.mxu0 %v8876_v46  ;;  %v5737_v39 = vld [vmem:[%s9407_s5 + $0x10] sm:$0xf0]  ;;  %vm2808_vm14 = vweird.f32 %v8848_v26  ;;  %v8970_v16 = vor.u32 %v6226_v63, %v5761_v60  ;;  %v5745_v47 = vld [vmem:[%s9407_s5 + $0x18] sm:$0xf0] }
 0x5aa   :  { %v2780_v21 = vsel %vm8865_vm12, %v8750_v42, %v2776_v27  ;;  %v6224_v27 = vld [vmem:[%s9407_s5 + $0x14] sm:$0xf0]  ;;  %vm2809_vm0 = vmor %vm2807_vm15, %vm2808_vm14  ;;  %v8985_v12 = vor.u32 %v6222_v58, %v5745_v47 }
 0x5ab   :  { %v2804_v42 = vsub.f32 1.0, %v2803_v41  ;;  %v2785_v25 = vsel %vm8773_vm6, %v2784_v44, %v2780_v21  ;;  %v2795_v28 = vsel %vm8805_vm9, %v8768_v35, %v2791_v0  ;;  %v5759_v35 = vld [vmem:[%s9407_s5 + $0x28] sm:$0xf]  ;;  %v6228_v44 = vld [vmem:[%s9407_s5 + $0x34] sm:$0xf0]  ;;  %v8968_v41 = vor.u32 %v6221_v45, %v5737_v39  ;;  %3448 = vmatpush.bf16.msra.mxu3 %v8970_v16 }
 0x5ac   :  { %v2800_v3 = vsel %vm8870_vm13, %v2799_v52, %v2795_v28  ;;  %v2819_v14 = vmul.f32 %v6390_v9, %v2785_v25  ;;  %v8927_v52 = vor.u32 %v6225_v49, %v5753_v8  ;;  %v8941_v7 = vor.u32 %v6228_v44, %v5759_v35  ;;  %v3097_v28 = vpop.f32.mrf.mxu1  ;;  %v3126_v8 = vpop.f32.mrf.mxu2 }
 0x5ad   :  { %v2805_v30 = vmul.f32 %v8848_v26, %v2804_v42  ;;  %v2818_v34 = vmul.f32 %v2800_v3, %v8615_v22  ;;  %v6223_v22 = vld [vmem:[%s9407_s5 + $0xc] sm:$0xf0]  ;;  %3409 = vmatpush.bf16.msra.mxu0 %v8923_v56  ;;  %v8973_v0 = vor.u32 %v6224_v27, %v5743_v40  ;;  %v9063_v44 = vpop.f32.mrf.mxu3 }
 0x5ae   :  { %v8962_v5 = vor.u32 %v6223_v22, %v5735_v54  ;;  %3422 = vmatpush.bf16.msrb.mxu1 %v8927_v52  ;;  %3435 = vmatpush.bf16.msra.mxu2 %v8941_v7  ;;  %9426 = vst [vmem:[#allocation4_spill] sm:$0xff] %v9063_v44 }
 0x5af   :  { %v2820_v48 = vadd.f32 %v2819_v14, %v2818_v34  ;;  %v2806_v31 = vadd.f32 %v8848_v26, %v2805_v30  ;;  %3449 = vmatpush.bf16.msra.mxu3 %v8985_v12 }
 0x5b1   :  { %6391 = vtanh.f32 %v2820_v48  ;;  %v2810_v21 = vsel %vm2809_vm0, %v8848_v26, %v2806_v31  ;;  %3410 = vmatpush.bf16.msra.mxu0 %v8962_v5 }
 0x5b2   :  { %3423 = vmatpush.bf16.msrb.mxu1 %v8968_v41  ;;  %v2815_v9 = vsel %vm2812_vm1, %v2814_v19, %v2810_v21  ;;  %3436 = vmatpush.bf16.msra.mxu2 %v8973_v0 }
 0x5b3   :  { %3566 = vmatpush.bf16.msrb.mxu3 %v8660_v50 }
 0x5b4   :  { %v9059_v14 = vpop.f32.mrf.mxu1  ;;  %v9061_v35 = vpop.f32.mrf.mxu2 }
 0x5b5   :  { %3527 = vmatpush.bf16.msrb.mxu0 %v8638_v15  ;;  %v9071_v54 = vpop.f32.mrf.mxu3 }
 0x5b6   :  { %3540 = vmatpush.bf16.msra.mxu1 %v8649_v6  ;;  %3553 = vmatpush.bf16.msrb.mxu2 %v8651_v4  ;;  %9430 = vst [vmem:[#allocation8_spill] sm:$0xff] %v9071_v54 }
 0x5b7   :  { %v6392_v49 = vpop.eup %6391  ;;  %3567 = vmatpush.bf16.msrb.mxu3 %v8713_v32 }
 0x5b8   :  { %v2822_v42 = vmul.f32 %v6392_v49, %v2815_v9  ;;  %v2865_v9 = vld [vmem:[%s9408_s6] sm:$0xf] }
 0x5b9   :  { %3528 = vmatpush.bf16.msrb.mxu0 %v8675_v37 }
 0x5ba   :  { %v2823_v26 = vpack.c.bf16 %v2822_v42, %v2822_v42  ;;  %3541 = vmatpush.bf16.msra.mxu1 %v8686_v55  ;;  %3554 = vmatpush.bf16.msrb.mxu2 %v8705_v38 }
 0x5bb   :  { %3568 = vmatpush.bf16.msrb.mxu3 %v8797_v61 }
 0x5bc   :  { %2824 = vst [vmem:[#allocation3 + $0x1c] sm:$0xf] %v2823_v26  ;;  %v9067_v30 = vpop.f32.mrf.mxu1  ;;  %v9069_v34 = vpop.f32.mrf.mxu2 }
 0x5bd   :  { %3529 = vmatpush.bf16.msrb.mxu0 %v8725_v59  ;;  %9428 = vst [vmem:[#allocation6_spill] sm:$0xff] %v9067_v30  ;;  %v9079_v45 = vpop.f32.mrf.mxu3 }
 0x5be   :  { %3542 = vmatpush.bf16.msra.mxu1 %v8727_v43  ;;  %3555 = vmatpush.bf16.msrb.mxu2 %v8742_v11  ;;  %9429 = vst [vmem:[#allocation7_spill] sm:$0xff] %v9069_v34 }
 0x5bf   :  { %3569 = vmatpush.bf16.msrb.mxu3 %v8837_v29  ;;  %9434 = vst [vmem:[#allocation12_spill] sm:$0xff] %v9079_v45 }
 0x5c1   :  { %3530 = vmatpush.bf16.msrb.mxu0 %v8755_v23 }
 0x5c2   :  { %3543 = vmatpush.bf16.msra.mxu1 %v8757_v51  ;;  %3556 = vmatpush.bf16.msrb.mxu2 %v8795_v53 }
 0x5c3   :  { %v6188_v25 = vld [vmem:[#allocation3 + $0x18] sm:$0xff]  ;;  %3570 = vmatpush.bf16.msrb.mxu3 %v8884_v36 }
 0x5c4   :  { %3082 = vmatmul.bf16.gmra.mxu0 %v6188_v25  ;;  %3111 = vmatmul.bf16.gmra.mxu1 %v6188_v25  ;;  %v9075_v63 = vpop.f32.mrf.mxu1  ;;  %v9077_v48 = vpop.f32.mrf.mxu2 }
 0x5c5   :  { %3140 = vmatmul.bf16.gmra.mxu2 %v6188_v25  ;;  %3169 = vmatmul.bf16.gmra.mxu3 %v6188_v25  ;;  %9432 = vst [vmem:[#allocation10_spill] sm:$0xff] %v9075_v63  ;;  %v9087_v40 = vpop.f32.mrf.mxu3  ;;  %v9112_v25 = vperm.slane %v2865_v9, 0 }
 0x5c6   :  { %3531 = vmatpush.bf16.msrb.mxu0 %v8820_v2  ;;  %3544 = vmatpush.bf16.msra.mxu1 %v8833_v33  ;;  %9433 = vst [vmem:[#allocation11_spill] sm:$0xff] %v9077_v48 }
 0x5c7   :  { %3557 = vmatpush.bf16.msrb.mxu2 %v8835_v17  ;;  %3571 = vmatpush.bf16.msrb.mxu3 %v8929_v62  ;;  %9438 = vst [vmem:[#allocation16_spill] sm:$0xff] %v9087_v40 }
 0x5ca   :  { %3532 = vmatpush.bf16.msrb.mxu0 %v8876_v46  ;;  %3545 = vmatpush.bf16.msra.mxu1 %v8882_v13 }
 0x5cb   :  { %3558 = vmatpush.bf16.msrb.mxu2 %v8901_v10  ;;  %3572 = vmatpush.bf16.msrb.mxu3 %v8970_v16 }
 0x5cc   :  { %v9083_v60 = vpop.f32.mrf.mxu1  ;;  %v9085_v31 = vpop.f32.mrf.mxu2 }
 0x5cd   :  { %9436 = vst [vmem:[#allocation14_spill] sm:$0xff] %v9083_v60  ;;  %v9095_v58 = vpop.f32.mrf.mxu3 }
 0x5ce   :  { %3533 = vmatpush.bf16.msrb.mxu0 %v8923_v56  ;;  %3546 = vmatpush.bf16.msra.mxu1 %v8927_v52  ;;  %9437 = vst [vmem:[#allocation15_spill] sm:$0xff] %v9085_v31  ;;  %v9122_v31 = vperm.slane %v2865_v9, 2 }
 0x5cf   :  { %3559 = vmatpush.bf16.msrb.mxu2 %v8941_v7  ;;  %3573 = vmatpush.bf16.msrb.mxu3 %v8985_v12  ;;  %9442 = vst [vmem:[#allocation20_spill] sm:$0xff] %v9095_v58 }
 0x5d0   :  { %v3127_v60 = vadd.f32 %v3126_v8, %v9122_v31 }
 0x5d2   :  { %3534 = vmatpush.bf16.msrb.mxu0 %v8962_v5  ;;  %3547 = vmatpush.bf16.msra.mxu1 %v8968_v41 }
 0x5d3   :  { %3560 = vmatpush.bf16.msrb.mxu2 %v8973_v0 }
 0x5d4   :  { %3411 = vmatmul.bf16.vlgmr.msra.gmra.mxu0 %v6521_v1  ;;  %3424 = vmatmul.bf16.vlgmr.msrb.gmra.mxu1 %v6521_v1  ;;  %v9091_v18 = vpop.f32.mrf.mxu1  ;;  %v9093_v20 = vpop.f32.mrf.mxu2 }
 0x5d5   :  { %3437 = vmatmul.bf16.vlgmr.msra.gmra.mxu2 %v6521_v1  ;;  %3450 = vmatmul.bf16.vlgmr.msra.gmra.mxu3 %v6521_v1  ;;  %v3068_v1 = vpop.f32.mrf.mxu0  ;;  %9440 = vst [vmem:[#allocation18_spill] sm:$0xff] %v9091_v18 }
 0x5d6   :  { %3651 = vmatpush.bf16.msra.mxu0 %v8638_v15  ;;  %3664 = vmatpush.bf16.msrb.mxu1 %v8649_v6  ;;  %9441 = vst [vmem:[#allocation19_spill] sm:$0xff] %v9093_v20  ;;  %v9114_v20 = vperm.slane %v2865_v9, 1 }
 0x5d7   :  { %3677 = vmatpush.bf16.msra.mxu2 %v8651_v4  ;;  %3690 = vmatpush.bf16.msra.mxu3 %v8660_v50 }
 0x5da   :  { %3652 = vmatpush.bf16.msra.mxu0 %v8675_v37  ;;  %3665 = vmatpush.bf16.msrb.mxu1 %v8686_v55 }
 0x5db   :  { %3678 = vmatpush.bf16.msra.mxu2 %v8705_v38  ;;  %3691 = vmatpush.bf16.msra.mxu3 %v8713_v32 }
 0x5dd   :  { %v9057_v3 = vpop.f32.mrf.mxu0 }
 0x5de   :  { %3653 = vmatpush.bf16.msra.mxu0 %v8725_v59  ;;  %3666 = vmatpush.bf16.msrb.mxu1 %v8727_v43 }
 0x5df   :  { %3679 = vmatpush.bf16.msra.mxu2 %v8742_v11  ;;  %3692 = vmatpush.bf16.msra.mxu3 %v8797_v61 }
 0x5e2   :  { %3654 = vmatpush.bf16.msra.mxu0 %v8755_v23  ;;  %3667 = vmatpush.bf16.msrb.mxu1 %v8757_v51 }
 0x5e3   :  { %3680 = vmatpush.bf16.msra.mxu2 %v8795_v53  ;;  %3693 = vmatpush.bf16.msra.mxu3 %v8837_v29 }
 0x5e5   :  { %v9065_v24 = vpop.f32.mrf.mxu0 }
 0x5e6   :  { %3655 = vmatpush.bf16.msra.mxu0 %v8820_v2  ;;  %3668 = vmatpush.bf16.msrb.mxu1 %v8833_v33  ;;  %9427 = vst [vmem:[#allocation5_spill] sm:$0xff] %v9065_v24 }
 0x5e7   :  { %3681 = vmatpush.bf16.msra.mxu2 %v8835_v17  ;;  %3694 = vmatpush.bf16.msra.mxu3 %v8884_v36 }
 0x5ea   :  { %3656 = vmatpush.bf16.msra.mxu0 %v8876_v46  ;;  %3669 = vmatpush.bf16.msrb.mxu1 %v8882_v13 }
 0x5eb   :  { %3682 = vmatpush.bf16.msra.mxu2 %v8901_v10  ;;  %3695 = vmatpush.bf16.msra.mxu3 %v8929_v62 }
 0x5ed   :  { %v9073_v22 = vpop.f32.mrf.mxu0 }
 0x5ee   :  { %3657 = vmatpush.bf16.msra.mxu0 %v8923_v56  ;;  %3670 = vmatpush.bf16.msrb.mxu1 %v8927_v52  ;;  %9431 = vst [vmem:[#allocation9_spill] sm:$0xff] %v9073_v22 }
 0x5ef   :  { %3683 = vmatpush.bf16.msra.mxu2 %v8941_v7  ;;  %3696 = vmatpush.bf16.msra.mxu3 %v8970_v16 }
 0x5f2   :  { %3658 = vmatpush.bf16.msra.mxu0 %v8962_v5  ;;  %3671 = vmatpush.bf16.msrb.mxu1 %v8968_v41 }
 0x5f3   :  { %3684 = vmatpush.bf16.msra.mxu2 %v8973_v0  ;;  %3697 = vmatpush.bf16.msra.mxu3 %v8985_v12 }
 0x5f5   :  { %v9081_v39 = vpop.f32.mrf.mxu0 }
 0x5f6   :  { %9435 = vst [vmem:[#allocation13_spill] sm:$0xff] %v9081_v39 }
 0x5fd   :  { %v9089_v27 = vpop.f32.mrf.mxu0 }
 0x5fe   :  { %9439 = vst [vmem:[#allocation17_spill] sm:$0xff] %v9089_v27 }
 0x641   :  { %v9097_v47 = vpop.f32.mrf.mxu0  ;;  %v9099_v21 = vpop.f32.mrf.mxu1 }
 0x642   :  { %9443 = vst [vmem:[#allocation21_spill] sm:$0xff] %v9097_v47  ;;  %v3069_v47 = vadd.f32 %v3068_v1, %v9112_v25 }
 0x643   :  { %9444 = vst [vmem:[#allocation22_spill] sm:$0xff] %v9099_v21  ;;  %v3098_v21 = vadd.f32 %v3097_v28, %v9114_v20 }
 0x648   :  { %v9101_v19 = vpop.f32.mrf.mxu2  ;;  %v9103_v49 = vpop.f32.mrf.mxu3 }
 0x649   :  { %9445 = vst [vmem:[#allocation23_spill] sm:$0xff] %v9101_v19  ;;  %v9108_v42 = vpop.f32.mrf.mxu0  ;;  %v9110_v26 = vpop.f32.mrf.mxu1 }
 0x64a   :  { %9446 = vst [vmem:[#allocation24_spill] sm:$0xff] %v9103_v49 }
 0x64b   :  { %9447 = vst [vmem:[#allocation25_spill] sm:$0xff] %v9108_v42 }
 0x64c   :  { %9448 = vst [vmem:[#allocation26_spill] sm:$0xff] %v9110_v26 }
 0x650   :  { %v9118_v58 = vpop.f32.mrf.mxu2  ;;  %v9120_v19 = vpop.f32.mrf.mxu3 }
 0x651   :  { %9449 = vst [vmem:[#allocation27_spill] sm:$0xff] %v9118_v58  ;;  %v3412_v49 = vpop.f32.mrf.mxu0  ;;  %v3425_v18 = vpop.f32.mrf.mxu1 }
 0x652   :  { %9450 = vst [vmem:[#allocation28_spill] sm:$0xff] %v9120_v19  ;;  %v3455_v27 = vadd.f32 %v3412_v49, %v3069_v47  ;;  %v3456_v40 = vadd.f32 %v3425_v18, %v3098_v21  ;;  %v9125_v18 = vperm.slane %v2865_v9, 3 }
 0x654   :  { %v5861_v42 = vmul.f32 -1.442695, %v3455_v27  ;;  %v5862_v26 = vmul.f32 -1.442695, %v3456_v40  ;;  %9451 = vst [vmem:[#allocation29_spill] sm:$0xff] %v9125_v18  ;;  %v3156_v8 = vadd.f32 %v3155_v57, %v9125_v18 }
 0x656   :  { %6393 = vpow2.f32 %v5861_v42 }
 0x657   :  { %6395 = vpow2.f32 %v5862_v26 }
 0x658   :  { %v3438_v39 = vpop.f32.mrf.mxu2  ;;  %v3451_v1 = vpop.f32.mrf.mxu3 }
 0x659   :  { %v3457_v45 = vadd.f32 %v3438_v39, %v3127_v60  ;;  %v3414_v28 = vpop.f32.mrf.mxu0  ;;  %v3427_v48 = vpop.f32.mrf.mxu1  ;;  %v3458_v39 = vadd.f32 %v3451_v1, %v3156_v8 }
 0x65b   :  { %v5863_v58 = vmul.f32 -1.442695, %v3457_v45 }
 0x65c   :  { %v6394_v63 = vpop.eup %6393 }
 0x65d   :  { %v6396_v19 = vpop.eup %6395  ;;  %v3468_v22 = vadd.f32 1.0, %v6394_v63  ;;  %6397 = vpow2.f32 %v5863_v58 }
 0x65e   :  { %v3469_v47 = vadd.f32 1.0, %v6396_v19 }
 0x65f   :  { %6399 = vrcp.f32 %v3468_v22  ;;  %v3482_v58 = vand.u32 2147483648, %v3468_v22  ;;  %v3480_v28 = vand.u32 2147483647, %v3468_v22  ;;  %vm3476_vm4 = vweird.f32 %v3468_v22 }
 0x660   :  { %6401 = vrcp.f32 %v3469_v47  ;;  %v3440_v40 = vpop.f32.mrf.mxu2  ;;  %v3453_v27 = vpop.f32.mrf.mxu3  ;;  %v3497_v19 = vand.u32 2147483648, %v3469_v47  ;;  %vm3491_vm5 = vweird.f32 %v3469_v47 }
 0x661   :  { %v3495_v27 = vand.u32 2147483647, %v3469_v47  ;;  %vm3481_vm7 = vcmp.eq.f32.partialorder %v3480_v28, 8.507059e+37 }
 0x662   :  { %v3498_v34 = vor.u32 1.1754944e-38, %v3497_v19 }
 0x663   :  { %v6398_v21 = vpop.eup %6397  ;;  %vm3496_vm9 = vcmp.eq.f32.partialorder %v3495_v27, 8.507059e+37 }
 0x664   :  { %v3470_v49 = vadd.f32 1.0, %v6398_v21  ;;  %v3483_v21 = vor.u32 1.1754944e-38, %v3482_v58 }
 0x665   :  { %v6400_v42 = vpop.eup %6399 }
 0x666   :  { %v6402_v60 = vpop.eup %6401  ;;  %v3472_v48 = vmul.f32 %v6400_v42, %v3468_v22  ;;  %6403 = vrcp.f32 %v3470_v49  ;;  %vm3477_vm2 = vweird.f32 %v6400_v42  ;;  %vm3506_vm11 = vweird.f32 %v3470_v49 }
 0x667   :  { %v3487_v45 = vmul.f32 %v6402_v60, %v3469_v47  ;;  %6405 = vtanh.f32 %v3458_v39  ;;  %vm3492_vm3 = vweird.f32 %v6402_v60  ;;  %vm3478_vm6 = vmor %vm3476_vm4, %vm3477_vm2  ;;  %v3512_v47 = vand.u32 2147483648, %v3470_v49 }
 0x668   :  { %v3473_v26 = vsub.f32 1.0, %v3472_v48  ;;  %vm3493_vm8 = vmor %vm3491_vm5, %vm3492_vm3 }
 0x669   :  { %v3488_v63 = vsub.f32 1.0, %v3487_v45  ;;  %v3513_v19 = vor.u32 1.1754944e-38, %v3512_v47 }
 0x66a   :  { %v3474_v9 = vmul.f32 %v6400_v42, %v3473_v26 }
 0x66b   :  { %v3489_v40 = vmul.f32 %v6402_v60, %v3488_v63 }
 0x66c   :  { %v6404_v54 = vpop.eup %6403  ;;  %v3475_v57 = vadd.f32 %v6400_v42, %v3474_v9 }
 0x66d   :  { %v3502_v1 = vmul.f32 %v6404_v54, %v3470_v49  ;;  %v3490_v8 = vadd.f32 %v6402_v60, %v3489_v40  ;;  %v6406_v39 = vpop.eup %6405  ;;  %vm3507_vm10 = vweird.f32 %v6404_v54 }
 0x66e   :  { %v3479_v48 = vsel %vm3478_vm6, %v6400_v42, %v3475_v57  ;;  %v3510_v42 = vand.u32 2147483647, %v3470_v49  ;;  %vm3508_vm12 = vmor %vm3506_vm11, %vm3507_vm10 }
 0x66f   :  { %v3503_v45 = vsub.f32 1.0, %v3502_v1  ;;  %v3484_v26 = vsel %vm3481_vm7, %v3483_v21, %v3479_v48  ;;  %v3494_v30 = vsel %vm3493_vm8, %v6402_v60, %v3490_v8  ;;  %v3129_v1 = vadd.f32 %v9061_v35, %v9122_v31 }
 0x670   :  { %v3499_v63 = vsel %vm3496_vm9, %v3498_v34, %v3494_v30  ;;  %v3518_v24 = vmul.f32 %v6406_v39, %v3484_v26  ;;  %vm3511_vm13 = vcmp.eq.f32.partialorder %v3510_v42, 8.507059e+37 }
 0x671   :  { %v3504_v44 = vmul.f32 %v6404_v54, %v3503_v45  ;;  %v3517_v18 = vmul.f32 0.0, %v3499_v63 }
 0x673   :  { %v9128_v9 = vadd.f32 %v3518_v24, %v3517_v18  ;;  %v3505_v22 = vadd.f32 %v6404_v54, %v3504_v44  ;;  %v3071_v44 = vadd.f32 %v9057_v3, %v9112_v25  ;;  %v3100_v24 = vadd.f32 %v9059_v14, %v9114_v20 }
 0x675   :  { %6407 = vtanh.f32 %v9128_v9  ;;  %v3509_v58 = vsel %vm3508_vm12, %v6404_v54, %v3505_v22 }
 0x676   :  { %v3514_v60 = vsel %vm3511_vm13, %v3513_v19, %v3509_v58  ;;  %v9452_v19 = vld [vmem:[#allocation29_spill] sm:$0xff] }
 0x67b   :  { %v6408_v28 = vpop.eup %6407 }
 0x67c   :  { %v3521_v40 = vmul.f32 %v6408_v28, %v3514_v60  ;;  %v9453_v28 = vld [vmem:[#allocation4_spill] sm:$0xff] }
 0x67d   :  { %v3158_v35 = vadd.f32 %v9453_v28, %v9452_v19 }
 0x67e   :  { %v3522_v30 = vpack.c.bf16 %v3521_v40, %v3521_v40 }
 0x680   :  { %3535 = vmatmul.bf16.vlgmr.msrb.gmra.mxu0 %v3522_v30  ;;  %3548 = vmatmul.bf16.vlgmr.msra.gmra.mxu1 %v3522_v30 }
 0x681   :  { %3561 = vmatmul.bf16.vlgmr.msrb.gmra.mxu2 %v3522_v30  ;;  %3574 = vmatmul.bf16.vlgmr.msrb.gmra.mxu3 %v3522_v30 }
 0x682   :  { %3775 = vmatpush.bf16.msrb.mxu0 %v8638_v15  ;;  %3788 = vmatpush.bf16.msra.mxu1 %v8649_v6 }
 0x683   :  { %3801 = vmatpush.bf16.msrb.mxu2 %v8651_v4  ;;  %3814 = vmatpush.bf16.msrb.mxu3 %v8660_v50 }
 0x686   :  { %3776 = vmatpush.bf16.msrb.mxu0 %v8675_v37  ;;  %3789 = vmatpush.bf16.msra.mxu1 %v8686_v55 }
 0x687   :  { %3802 = vmatpush.bf16.msrb.mxu2 %v8705_v38  ;;  %3815 = vmatpush.bf16.msrb.mxu3 %v8713_v32 }
 0x68a   :  { %3777 = vmatpush.bf16.msrb.mxu0 %v8725_v59  ;;  %3790 = vmatpush.bf16.msra.mxu1 %v8727_v43 }
 0x68b   :  { %3803 = vmatpush.bf16.msrb.mxu2 %v8742_v11  ;;  %3816 = vmatpush.bf16.msrb.mxu3 %v8797_v61 }
 0x68e   :  { %3778 = vmatpush.bf16.msrb.mxu0 %v8755_v23  ;;  %3791 = vmatpush.bf16.msra.mxu1 %v8757_v51 }
 0x68f   :  { %3804 = vmatpush.bf16.msrb.mxu2 %v8795_v53  ;;  %3817 = vmatpush.bf16.msrb.mxu3 %v8837_v29 }
 0x692   :  { %3779 = vmatpush.bf16.msrb.mxu0 %v8820_v2  ;;  %3792 = vmatpush.bf16.msra.mxu1 %v8833_v33 }
 0x693   :  { %3805 = vmatpush.bf16.msrb.mxu2 %v8835_v17  ;;  %3818 = vmatpush.bf16.msrb.mxu3 %v8884_v36 }
 0x696   :  { %3780 = vmatpush.bf16.msrb.mxu0 %v8876_v46  ;;  %3793 = vmatpush.bf16.msra.mxu1 %v8882_v13 }
 0x697   :  { %3806 = vmatpush.bf16.msrb.mxu2 %v8901_v10  ;;  %3819 = vmatpush.bf16.msrb.mxu3 %v8929_v62 }
 0x69a   :  { %3781 = vmatpush.bf16.msrb.mxu0 %v8923_v56  ;;  %3794 = vmatpush.bf16.msra.mxu1 %v8927_v52 }
 0x69b   :  { %3807 = vmatpush.bf16.msrb.mxu2 %v8941_v7  ;;  %3820 = vmatpush.bf16.msrb.mxu3 %v8970_v16 }
 0x69e   :  { %3782 = vmatpush.bf16.msrb.mxu0 %v8962_v5  ;;  %3795 = vmatpush.bf16.msra.mxu1 %v8968_v41 }
 0x69f   :  { %3808 = vmatpush.bf16.msrb.mxu2 %v8973_v0  ;;  %3821 = vmatpush.bf16.msrb.mxu3 %v8985_v12 }
 0x6fd   :  { %v3536_v34 = vpop.f32.mrf.mxu0  ;;  %v3549_v54 = vpop.f32.mrf.mxu1 }
 0x6fe   :  { %v3579_v18 = vadd.f32 %v3536_v34, %v3071_v44  ;;  %v3580_v49 = vadd.f32 %v3549_v54, %v3100_v24 }
 0x700   :  { %v5864_v27 = vmul.f32 -1.442695, %v3579_v18  ;;  %v5865_v57 = vmul.f32 -1.442695, %v3580_v49 }
 0x702   :  { %6409 = vpow2.f32 %v5864_v27 }
 0x703   :  { %6411 = vpow2.f32 %v5865_v57 }
 0x704   :  { %v3562_v21 = vpop.f32.mrf.mxu2  ;;  %v3575_v8 = vpop.f32.mrf.mxu3 }
 0x705   :  { %v3581_v48 = vadd.f32 %v3562_v21, %v3129_v1  ;;  %v3538_v39 = vpop.f32.mrf.mxu0  ;;  %v3551_v45 = vpop.f32.mrf.mxu1  ;;  %v3582_v30 = vadd.f32 %v3575_v8, %v3158_v35 }
 0x707   :  { %v5866_v3 = vmul.f32 -1.442695, %v3581_v48 }
 0x708   :  { %v6410_v26 = vpop.eup %6409 }
 0x709   :  { %v6412_v63 = vpop.eup %6411  ;;  %v3592_v14 = vadd.f32 1.0, %v6410_v26  ;;  %6413 = vpow2.f32 %v5866_v3 }
 0x70a   :  { %v3593_v22 = vadd.f32 1.0, %v6412_v63 }
 0x70b   :  { %6415 = vrcp.f32 %v3592_v14  ;;  %v3606_v49 = vand.u32 2147483648, %v3592_v14  ;;  %v3604_v1 = vand.u32 2147483647, %v3592_v14  ;;  %vm3600_vm0 = vweird.f32 %v3592_v14 }
 0x70c   :  { %6417 = vrcp.f32 %v3593_v22  ;;  %v3564_v47 = vpop.f32.mrf.mxu2  ;;  %v3577_v42 = vpop.f32.mrf.mxu3  ;;  %v3621_v27 = vand.u32 2147483648, %v3593_v22  ;;  %v3619_v48 = vand.u32 2147483647, %v3593_v22  ;;  %vm3615_vm1 = vweird.f32 %v3593_v22 }
 0x70d   :  { %v3607_v3 = vor.u32 1.1754944e-38, %v3606_v49  ;;  %vm3605_vm4 = vcmp.eq.f32.partialorder %v3604_v1, 8.507059e+37 }
 0x70e   :  { %v3622_v63 = vor.u32 1.1754944e-38, %v3621_v27  ;;  %vm3620_vm5 = vcmp.eq.f32.partialorder %v3619_v48, 8.507059e+37  ;;  %v9455_v48 = vld [vmem:[#allocation6_spill] sm:$0xff] }
 0x70f   :  { %v6414_v58 = vpop.eup %6413 }
 0x710   :  { %v3594_v60 = vadd.f32 1.0, %v6414_v58 }
 0x711   :  { %v6416_v40 = vpop.eup %6415 }
 0x712   :  { %v6418_v44 = vpop.eup %6417  ;;  %v3596_v24 = vmul.f32 %v6416_v40, %v3592_v14  ;;  %6419 = vrcp.f32 %v3594_v60  ;;  %vm3601_vm14 = vweird.f32 %v6416_v40  ;;  %vm3630_vm7 = vweird.f32 %v3594_v60 }
 0x713   :  { %v3611_v34 = vmul.f32 %v6418_v44, %v3593_v22  ;;  %6421 = vtanh.f32 %v3582_v30  ;;  %vm3616_vm15 = vweird.f32 %v6418_v44  ;;  %vm3602_vm2 = vmor %vm3600_vm0, %vm3601_vm14 }
 0x714   :  { %v3597_v54 = vsub.f32 1.0, %v3596_v24  ;;  %vm3617_vm3 = vmor %vm3615_vm1, %vm3616_vm15 }
 0x715   :  { %v3612_v18 = vsub.f32 1.0, %v3611_v34 }
 0x716   :  { %v3598_v57 = vmul.f32 %v6416_v40, %v3597_v54 }
 0x717   :  { %v3613_v21 = vmul.f32 %v6418_v44, %v3612_v18  ;;  %v3636_v18 = vand.u32 2147483648, %v3594_v60 }
 0x718   :  { %v6420_v39 = vpop.eup %6419  ;;  %v3599_v45 = vadd.f32 %v6416_v40, %v3598_v57 }
 0x719   :  { %v3626_v8 = vmul.f32 %v6420_v39, %v3594_v60  ;;  %v3614_v26 = vadd.f32 %v6418_v44, %v3613_v21  ;;  %v6422_v42 = vpop.eup %6421  ;;  %vm3631_vm6 = vweird.f32 %v6420_v39  ;;  %v3637_v27 = vor.u32 1.1754944e-38, %v3636_v18 }
 0x71a   :  { %v3603_v47 = vsel %vm3602_vm2, %v6416_v40, %v3599_v45  ;;  %v3634_v40 = vand.u32 2147483647, %v3594_v60  ;;  %vm3632_vm8 = vmor %vm3630_vm7, %vm3631_vm6 }
 0x71b   :  { %v3627_v58 = vsub.f32 1.0, %v3626_v8  ;;  %v3608_v28 = vsel %vm3605_vm4, %v3607_v3, %v3603_v47  ;;  %v3618_v35 = vsel %vm3617_vm3, %v6418_v44, %v3614_v26 }
 0x71c   :  { %v3623_v30 = vsel %vm3620_vm5, %v3622_v63, %v3618_v35  ;;  %v3642_v24 = vmul.f32 %v6422_v42, %v3608_v28  ;;  %vm3635_vm9 = vcmp.eq.f32.partialorder %v3634_v40, 8.507059e+37  ;;  %v9456_v42 = vld [vmem:[#allocation7_spill] sm:$0xff] }
 0x71d   :  { %v3628_v34 = vmul.f32 %v6420_v39, %v3627_v58  ;;  %v3641_v54 = vmul.f32 %v3623_v30, %v9128_v9  ;;  %v9454_v9 = vld [vmem:[#allocation5_spill] sm:$0xff]  ;;  %v3132_v58 = vadd.f32 %v9456_v42, %v9122_v31 }
 0x71e   :  { %v3074_v60 = vadd.f32 %v9454_v9, %v9112_v25 }
 0x71f   :  { %v9172_v14 = vadd.f32 %v3642_v24, %v3641_v54  ;;  %v3629_v22 = vadd.f32 %v6420_v39, %v3628_v34 }
 0x721   :  { %6423 = vtanh.f32 %v9172_v14  ;;  %v3633_v49 = vsel %vm3632_vm8, %v6420_v39, %v3629_v22  ;;  %v3103_v39 = vadd.f32 %v9455_v48, %v9114_v20 }
 0x722   :  { %v3638_v57 = vsel %vm3635_vm9, %v3637_v27, %v3633_v49 }
 0x727   :  { %v6424_v44 = vpop.eup %6423 }
 0x728   :  { %v3645_v1 = vmul.f32 %v6424_v44, %v3638_v57 }
 0x72a   :  { %v3646_v21 = vpack.c.bf16 %v3645_v1, %v3645_v1  ;;  %v9457_v1 = vld [vmem:[#allocation8_spill] sm:$0xff] }
 0x72c   :  { %3659 = vmatmul.bf16.vlgmr.msra.gmra.mxu0 %v3646_v21  ;;  %3672 = vmatmul.bf16.vlgmr.msrb.gmra.mxu1 %v3646_v21 }
 0x72d   :  { %3685 = vmatmul.bf16.vlgmr.msra.gmra.mxu2 %v3646_v21  ;;  %3698 = vmatmul.bf16.vlgmr.msra.gmra.mxu3 %v3646_v21  ;;  %v3161_v21 = vadd.f32 %v9457_v1, %v9452_v19 }
 0x72e   :  { %3899 = vmatpush.bf16.msra.mxu0 %v8638_v15  ;;  %3912 = vmatpush.bf16.msrb.mxu1 %v8649_v6 }
 0x72f   :  { %3925 = vmatpush.bf16.msra.mxu2 %v8651_v4  ;;  %3938 = vmatpush.bf16.msra.mxu3 %v8660_v50 }
 0x732   :  { %3900 = vmatpush.bf16.msra.mxu0 %v8675_v37  ;;  %3913 = vmatpush.bf16.msrb.mxu1 %v8686_v55 }
 0x733   :  { %3926 = vmatpush.bf16.msra.mxu2 %v8705_v38  ;;  %3939 = vmatpush.bf16.msra.mxu3 %v8713_v32 }
 0x736   :  { %3901 = vmatpush.bf16.msra.mxu0 %v8725_v59  ;;  %3914 = vmatpush.bf16.msrb.mxu1 %v8727_v43 }
 0x737   :  { %3927 = vmatpush.bf16.msra.mxu2 %v8742_v11  ;;  %3940 = vmatpush.bf16.msra.mxu3 %v8797_v61 }
 0x73a   :  { %3902 = vmatpush.bf16.msra.mxu0 %v8755_v23  ;;  %3915 = vmatpush.bf16.msrb.mxu1 %v8757_v51 }
 0x73b   :  { %3928 = vmatpush.bf16.msra.mxu2 %v8795_v53  ;;  %3941 = vmatpush.bf16.msra.mxu3 %v8837_v29 }
 0x73e   :  { %3903 = vmatpush.bf16.msra.mxu0 %v8820_v2  ;;  %3916 = vmatpush.bf16.msrb.mxu1 %v8833_v33 }
 0x73f   :  { %3929 = vmatpush.bf16.msra.mxu2 %v8835_v17  ;;  %3942 = vmatpush.bf16.msra.mxu3 %v8884_v36 }
 0x742   :  { %3904 = vmatpush.bf16.msra.mxu0 %v8876_v46  ;;  %3917 = vmatpush.bf16.msrb.mxu1 %v8882_v13 }
 0x743   :  { %3930 = vmatpush.bf16.msra.mxu2 %v8901_v10  ;;  %3943 = vmatpush.bf16.msra.mxu3 %v8929_v62 }
 0x746   :  { %3905 = vmatpush.bf16.msra.mxu0 %v8923_v56  ;;  %3918 = vmatpush.bf16.msrb.mxu1 %v8927_v52 }
 0x747   :  { %3931 = vmatpush.bf16.msra.mxu2 %v8941_v7  ;;  %3944 = vmatpush.bf16.msra.mxu3 %v8970_v16 }
 0x74a   :  { %3906 = vmatpush.bf16.msra.mxu0 %v8962_v5  ;;  %3919 = vmatpush.bf16.msrb.mxu1 %v8968_v41 }
 0x74b   :  { %3932 = vmatpush.bf16.msra.mxu2 %v8973_v0  ;;  %3945 = vmatpush.bf16.msra.mxu3 %v8985_v12 }
 0x7a9   :  { %v3660_v45 = vpop.f32.mrf.mxu0  ;;  %v3673_v8 = vpop.f32.mrf.mxu1 }
 0x7aa   :  { %v3703_v3 = vadd.f32 %v3660_v45, %v3074_v60  ;;  %v3704_v26 = vadd.f32 %v3673_v8, %v3103_v39 }
 0x7ac   :  { %v5867_v63 = vmul.f32 -1.442695, %v3703_v3  ;;  %v5868_v47 = vmul.f32 -1.442695, %v3704_v26 }
 0x7ae   :  { %6425 = vpow2.f32 %v5867_v63 }
 0x7af   :  { %6427 = vpow2.f32 %v5868_v47 }
 0x7b0   :  { %v3686_v28 = vpop.f32.mrf.mxu2  ;;  %v3699_v35 = vpop.f32.mrf.mxu3 }
 0x7b1   :  { %v3705_v30 = vadd.f32 %v3686_v28, %v3132_v58  ;;  %v3662_v24 = vpop.f32.mrf.mxu0  ;;  %v3675_v34 = vpop.f32.mrf.mxu1  ;;  %v3706_v48 = vadd.f32 %v3699_v35, %v3161_v21 }
 0x7b3   :  { %v5869_v54 = vmul.f32 -1.442695, %v3705_v30 }
 0x7b4   :  { %v6426_v22 = vpop.eup %6425 }
 0x7b5   :  { %v6428_v18 = vpop.eup %6427  ;;  %v3716_v40 = vadd.f32 1.0, %v6426_v22  ;;  %6429 = vpow2.f32 %v5869_v54 }
 0x7b6   :  { %v3717_v49 = vadd.f32 1.0, %v6428_v18 }
 0x7b7   :  { %6431 = vrcp.f32 %v3716_v40  ;;  %v3730_v63 = vand.u32 2147483648, %v3716_v40  ;;  %v3728_v58 = vand.u32 2147483647, %v3716_v40  ;;  %vm3724_vm12 = vweird.f32 %v3716_v40 }
 0x7b8   :  { %6433 = vrcp.f32 %v3717_v49  ;;  %v3688_v27 = vpop.f32.mrf.mxu2  ;;  %v3701_v44 = vpop.f32.mrf.mxu3  ;;  %v3745_v47 = vand.u32 2147483648, %v3717_v49  ;;  %v3743_v30 = vand.u32 2147483647, %v3717_v49  ;;  %vm3739_vm13 = vweird.f32 %v3717_v49 }
 0x7b9   :  { %v3731_v54 = vor.u32 1.1754944e-38, %v3730_v63  ;;  %vm3729_vm0 = vcmp.eq.f32.partialorder %v3728_v58, 8.507059e+37 }
 0x7ba   :  { %v3746_v18 = vor.u32 1.1754944e-38, %v3745_v47  ;;  %vm3744_vm1 = vcmp.eq.f32.partialorder %v3743_v30, 8.507059e+37  ;;  %v9459_v30 = vld [vmem:[#allocation10_spill] sm:$0xff] }
 0x7bb   :  { %v6430_v57 = vpop.eup %6429 }
 0x7bc   :  { %v3718_v9 = vadd.f32 1.0, %v6430_v57 }
 0x7bd   :  { %v6432_v60 = vpop.eup %6431 }
 0x7be   :  { %v6434_v39 = vpop.eup %6433  ;;  %v3720_v45 = vmul.f32 %v6432_v60, %v3716_v40  ;;  %6435 = vrcp.f32 %v3718_v9  ;;  %vm3725_vm10 = vweird.f32 %v6432_v60  ;;  %vm3754_vm3 = vweird.f32 %v3718_v9 }
 0x7bf   :  { %v3735_v8 = vmul.f32 %v6434_v39, %v3717_v49  ;;  %6437 = vtanh.f32 %v3706_v48  ;;  %vm3740_vm11 = vweird.f32 %v6434_v39  ;;  %vm3726_vm14 = vmor %vm3724_vm12, %vm3725_vm10 }
 0x7c0   :  { %v3721_v3 = vsub.f32 1.0, %v3720_v45  ;;  %vm3741_vm15 = vmor %vm3739_vm13, %vm3740_vm11 }
 0x7c1   :  { %v3736_v26 = vsub.f32 1.0, %v3735_v8 }
 0x7c2   :  { %v3722_v42 = vmul.f32 %v6432_v60, %v3721_v3 }
 0x7c3   :  { %v3737_v28 = vmul.f32 %v6434_v39, %v3736_v26  ;;  %v3760_v26 = vand.u32 2147483648, %v3718_v9 }
 0x7c4   :  { %v6436_v24 = vpop.eup %6435  ;;  %v3723_v34 = vadd.f32 %v6432_v60, %v3722_v42 }
 0x7c5   :  { %v3750_v35 = vmul.f32 %v6436_v24, %v3718_v9  ;;  %v3738_v22 = vadd.f32 %v6434_v39, %v3737_v28  ;;  %v6438_v44 = vpop.eup %6437  ;;  %vm3755_vm2 = vweird.f32 %v6436_v24  ;;  %v3761_v47 = vor.u32 1.1754944e-38, %v3760_v26 }
 0x7c6   :  { %v3727_v27 = vsel %vm3726_vm14, %v6432_v60, %v3723_v34  ;;  %v3758_v60 = vand.u32 2147483647, %v3718_v9  ;;  %vm3756_vm4 = vmor %vm3754_vm3, %vm3755_vm2 }
 0x7c7   :  { %v3751_v57 = vsub.f32 1.0, %v3750_v35  ;;  %v3732_v1 = vsel %vm3729_vm0, %v3731_v54, %v3727_v27  ;;  %v3742_v21 = vsel %vm3741_vm15, %v6434_v39, %v3738_v22 }
 0x7c8   :  { %v3747_v48 = vsel %vm3744_vm1, %v3746_v18, %v3742_v21  ;;  %v3766_v45 = vmul.f32 %v6438_v44, %v3732_v1  ;;  %vm3759_vm5 = vcmp.eq.f32.partialorder %v3758_v60, 8.507059e+37  ;;  %v9460_v44 = vld [vmem:[#allocation11_spill] sm:$0xff] }
 0x7c9   :  { %v3752_v8 = vmul.f32 %v6436_v24, %v3751_v57  ;;  %v3765_v3 = vmul.f32 %v3747_v48, %v9172_v14  ;;  %v9458_v14 = vld [vmem:[#allocation9_spill] sm:$0xff]  ;;  %v3134_v57 = vadd.f32 %v9460_v44, %v9122_v31 }
 0x7ca   :  { %v3076_v9 = vadd.f32 %v9458_v14, %v9112_v25 }
 0x7cb   :  { %v9216_v40 = vadd.f32 %v3766_v45, %v3765_v3  ;;  %v3753_v49 = vadd.f32 %v6436_v24, %v3752_v8 }
 0x7cd   :  { %6439 = vtanh.f32 %v9216_v40  ;;  %v3757_v63 = vsel %vm3756_vm4, %v6436_v24, %v3753_v49  ;;  %v3105_v24 = vadd.f32 %v9459_v30, %v9114_v20 }
 0x7ce   :  { %v3762_v42 = vsel %vm3759_vm5, %v3761_v47, %v3757_v63 }
 0x7d3   :  { %v6440_v39 = vpop.eup %6439 }
 0x7d4   :  { %v3769_v58 = vmul.f32 %v6440_v39, %v3762_v42 }
 0x7d6   :  { %v3770_v28 = vpack.c.bf16 %v3769_v58, %v3769_v58  ;;  %v9461_v58 = vld [vmem:[#allocation12_spill] sm:$0xff] }
 0x7d8   :  { %3783 = vmatmul.bf16.vlgmr.msrb.gmra.mxu0 %v3770_v28  ;;  %3796 = vmatmul.bf16.vlgmr.msra.gmra.mxu1 %v3770_v28 }
 0x7d9   :  { %3809 = vmatmul.bf16.vlgmr.msrb.gmra.mxu2 %v3770_v28  ;;  %3822 = vmatmul.bf16.vlgmr.msrb.gmra.mxu3 %v3770_v28  ;;  %v3163_v28 = vadd.f32 %v9461_v58, %v9452_v19 }
 0x7da   :  { %4023 = vmatpush.bf16.msrb.mxu0 %v8638_v15  ;;  %4036 = vmatpush.bf16.msra.mxu1 %v8649_v6 }
 0x7db   :  { %4049 = vmatpush.bf16.msrb.mxu2 %v8651_v4  ;;  %4062 = vmatpush.bf16.msrb.mxu3 %v8660_v50 }
 0x7de   :  { %4024 = vmatpush.bf16.msrb.mxu0 %v8675_v37  ;;  %4037 = vmatpush.bf16.msra.mxu1 %v8686_v55 }
 0x7df   :  { %4050 = vmatpush.bf16.msrb.mxu2 %v8705_v38  ;;  %4063 = vmatpush.bf16.msrb.mxu3 %v8713_v32 }
 0x7e2   :  { %4025 = vmatpush.bf16.msrb.mxu0 %v8725_v59  ;;  %4038 = vmatpush.bf16.msra.mxu1 %v8727_v43 }
 0x7e3   :  { %4051 = vmatpush.bf16.msrb.mxu2 %v8742_v11  ;;  %4064 = vmatpush.bf16.msrb.mxu3 %v8797_v61 }
 0x7e6   :  { %4026 = vmatpush.bf16.msrb.mxu0 %v8755_v23  ;;  %4039 = vmatpush.bf16.msra.mxu1 %v8757_v51 }
 0x7e7   :  { %4052 = vmatpush.bf16.msrb.mxu2 %v8795_v53  ;;  %4065 = vmatpush.bf16.msrb.mxu3 %v8837_v29 }
 0x7ea   :  { %4027 = vmatpush.bf16.msrb.mxu0 %v8820_v2  ;;  %4040 = vmatpush.bf16.msra.mxu1 %v8833_v33 }
 0x7eb   :  { %4053 = vmatpush.bf16.msrb.mxu2 %v8835_v17  ;;  %4066 = vmatpush.bf16.msrb.mxu3 %v8884_v36 }
 0x7ee   :  { %4028 = vmatpush.bf16.msrb.mxu0 %v8876_v46  ;;  %4041 = vmatpush.bf16.msra.mxu1 %v8882_v13 }
 0x7ef   :  { %4054 = vmatpush.bf16.msrb.mxu2 %v8901_v10  ;;  %4067 = vmatpush.bf16.msrb.mxu3 %v8929_v62 }
 0x7f2   :  { %4029 = vmatpush.bf16.msrb.mxu0 %v8923_v56  ;;  %4042 = vmatpush.bf16.msra.mxu1 %v8927_v52 }
 0x7f3   :  { %4055 = vmatpush.bf16.msrb.mxu2 %v8941_v7  ;;  %4068 = vmatpush.bf16.msrb.mxu3 %v8970_v16 }
 0x7f6   :  { %4030 = vmatpush.bf16.msrb.mxu0 %v8962_v5  ;;  %4043 = vmatpush.bf16.msra.mxu1 %v8968_v41 }
 0x7f7   :  { %4056 = vmatpush.bf16.msrb.mxu2 %v8973_v0  ;;  %4069 = vmatpush.bf16.msrb.mxu3 %v8985_v12 }
 0x855   :  { %v3784_v34 = vpop.f32.mrf.mxu0  ;;  %v3797_v35 = vpop.f32.mrf.mxu1 }
 0x856   :  { %v3827_v54 = vadd.f32 %v3784_v34, %v3076_v9  ;;  %v3828_v22 = vadd.f32 %v3797_v35, %v3105_v24 }
 0x858   :  { %v5870_v18 = vmul.f32 -1.442695, %v3827_v54  ;;  %v5871_v27 = vmul.f32 -1.442695, %v3828_v22 }
 0x85a   :  { %6441 = vpow2.f32 %v5870_v18 }
 0x85b   :  { %6443 = vpow2.f32 %v5871_v27 }
 0x85c   :  { %v3810_v1 = vpop.f32.mrf.mxu2  ;;  %v3823_v21 = vpop.f32.mrf.mxu3 }
 0x85d   :  { %v3829_v48 = vadd.f32 %v3810_v1, %v3134_v57  ;;  %v3786_v45 = vpop.f32.mrf.mxu0  ;;  %v3799_v8 = vpop.f32.mrf.mxu1  ;;  %v3830_v30 = vadd.f32 %v3823_v21, %v3163_v28 }
 0x85f   :  { %v5872_v3 = vmul.f32 -1.442695, %v3829_v48 }
 0x860   :  { %v6442_v49 = vpop.eup %6441 }
 0x861   :  { %v6444_v26 = vpop.eup %6443  ;;  %v3840_v60 = vadd.f32 1.0, %v6442_v49  ;;  %6445 = vpow2.f32 %v5872_v3 }
 0x862   :  { %v3841_v63 = vadd.f32 1.0, %v6444_v26 }
 0x863   :  { %6447 = vrcp.f32 %v3840_v60  ;;  %v3854_v18 = vand.u32 2147483648, %v3840_v60  ;;  %v3852_v57 = vand.u32 2147483647, %v3840_v60  ;;  %vm3848_vm8 = vweird.f32 %v3840_v60 }
 0x864   :  { %6449 = vrcp.f32 %v3841_v63  ;;  %v3812_v47 = vpop.f32.mrf.mxu2  ;;  %v3825_v39 = vpop.f32.mrf.mxu3  ;;  %v3869_v27 = vand.u32 2147483648, %v3841_v63  ;;  %v3867_v48 = vand.u32 2147483647, %v3841_v63  ;;  %vm3863_vm9 = vweird.f32 %v3841_v63 }
 0x865   :  { %v3855_v3 = vor.u32 1.1754944e-38, %v3854_v18  ;;  %vm3853_vm12 = vcmp.eq.f32.partialorder %v3852_v57, 8.507059e+37 }
 0x866   :  { %v3870_v26 = vor.u32 1.1754944e-38, %v3869_v27  ;;  %vm3868_vm13 = vcmp.eq.f32.partialorder %v3867_v48, 8.507059e+37  ;;  %v9463_v48 = vld [vmem:[#allocation14_spill] sm:$0xff] }
 0x867   :  { %v6446_v42 = vpop.eup %6445 }
 0x868   :  { %v3842_v14 = vadd.f32 1.0, %v6446_v42 }
 0x869   :  { %v6448_v9 = vpop.eup %6447 }
 0x86a   :  { %v6450_v24 = vpop.eup %6449  ;;  %v3844_v34 = vmul.f32 %v6448_v9, %v3840_v60  ;;  %6451 = vrcp.f32 %v3842_v14  ;;  %vm3849_vm6 = vweird.f32 %v6448_v9  ;;  %vm3878_vm15 = vweird.f32 %v3842_v14 }
 0x86b   :  { %v3859_v35 = vmul.f32 %v6450_v24, %v3841_v63  ;;  %6453 = vtanh.f32 %v3830_v30  ;;  %vm3864_vm7 = vweird.f32 %v6450_v24  ;;  %vm3850_vm10 = vmor %vm3848_vm8, %vm3849_vm6 }
 0x86c   :  { %v3845_v54 = vsub.f32 1.0, %v3844_v34  ;;  %vm3865_vm11 = vmor %vm3863_vm9, %vm3864_vm7 }
 0x86d   :  { %v3860_v22 = vsub.f32 1.0, %v3859_v35 }
 0x86e   :  { %v3846_v44 = vmul.f32 %v6448_v9, %v3845_v54 }
 0x86f   :  { %v3861_v1 = vmul.f32 %v6450_v24, %v3860_v22  ;;  %v3884_v22 = vand.u32 2147483648, %v3842_v14 }
 0x870   :  { %v6452_v45 = vpop.eup %6451  ;;  %v3847_v8 = vadd.f32 %v6448_v9, %v3846_v44 }
 0x871   :  { %v3874_v21 = vmul.f32 %v6452_v45, %v3842_v14  ;;  %v3862_v49 = vadd.f32 %v6450_v24, %v3861_v1  ;;  %v6454_v39 = vpop.eup %6453  ;;  %vm3879_vm14 = vweird.f32 %v6452_v45  ;;  %v3885_v27 = vor.u32 1.1754944e-38, %v3884_v22 }
 0x872   :  { %v3851_v47 = vsel %vm3850_vm10, %v6448_v9, %v3847_v8  ;;  %v3882_v9 = vand.u32 2147483647, %v3842_v14  ;;  %vm3880_vm0 = vmor %vm3878_vm15, %vm3879_vm14 }
 0x873   :  { %v3875_v42 = vsub.f32 1.0, %v3874_v21  ;;  %v3856_v58 = vsel %vm3853_vm12, %v3855_v3, %v3851_v47  ;;  %v3866_v28 = vsel %vm3865_vm11, %v6450_v24, %v3862_v49 }
 0x874   :  { %v3871_v30 = vsel %vm3868_vm13, %v3870_v26, %v3866_v28  ;;  %v3890_v34 = vmul.f32 %v6454_v39, %v3856_v58  ;;  %vm3883_vm1 = vcmp.eq.f32.partialorder %v3882_v9, 8.507059e+37  ;;  %v9464_v39 = vld [vmem:[#allocation15_spill] sm:$0xff] }
 0x875   :  { %v3876_v35 = vmul.f32 %v6452_v45, %v3875_v42  ;;  %v3889_v54 = vmul.f32 %v3871_v30, %v9216_v40  ;;  %v9462_v40 = vld [vmem:[#allocation13_spill] sm:$0xff]  ;;  %v3137_v42 = vadd.f32 %v9464_v39, %v9122_v31 }
 0x876   :  { %v3079_v14 = vadd.f32 %v9462_v40, %v9112_v25 }
 0x877   :  { %v9260_v60 = vadd.f32 %v3890_v34, %v3889_v54  ;;  %v3877_v63 = vadd.f32 %v6452_v45, %v3876_v35 }
 0x879   :  { %6455 = vtanh.f32 %v9260_v60  ;;  %v3881_v18 = vsel %vm3880_vm0, %v6452_v45, %v3877_v63  ;;  %v3108_v45 = vadd.f32 %v9463_v48, %v9114_v20 }
 0x87a   :  { %v3886_v44 = vsel %vm3883_vm1, %v3885_v27, %v3881_v18 }
 0x87f   :  { %v6456_v24 = vpop.eup %6455 }
 0x880   :  { %v3893_v57 = vmul.f32 %v6456_v24, %v3886_v44 }
 0x882   :  { %v3894_v1 = vpack.c.bf16 %v3893_v57, %v3893_v57  ;;  %v9465_v57 = vld [vmem:[#allocation16_spill] sm:$0xff] }
 0x884   :  { %3907 = vmatmul.bf16.vlgmr.msra.gmra.mxu0 %v3894_v1  ;;  %3920 = vmatmul.bf16.vlgmr.msrb.gmra.mxu1 %v3894_v1 }
 0x885   :  { %3933 = vmatmul.bf16.vlgmr.msra.gmra.mxu2 %v3894_v1  ;;  %3946 = vmatmul.bf16.vlgmr.msra.gmra.mxu3 %v3894_v1  ;;  %v3166_v1 = vadd.f32 %v9465_v57, %v9452_v19 }
 0x886   :  { %4147 = vmatpush.bf16.msra.mxu0 %v8638_v15  ;;  %4160 = vmatpush.bf16.msrb.mxu1 %v8649_v6 }
 0x887   :  { %4173 = vmatpush.bf16.msra.mxu2 %v8651_v4  ;;  %4186 = vmatpush.bf16.msra.mxu3 %v8660_v50 }
 0x88a   :  { %4148 = vmatpush.bf16.msra.mxu0 %v8675_v37  ;;  %4161 = vmatpush.bf16.msrb.mxu1 %v8686_v55 }
 0x88b   :  { %4174 = vmatpush.bf16.msra.mxu2 %v8705_v38  ;;  %4187 = vmatpush.bf16.msra.mxu3 %v8713_v32 }
 0x88e   :  { %4149 = vmatpush.bf16.msra.mxu0 %v8725_v59  ;;  %4162 = vmatpush.bf16.msrb.mxu1 %v8727_v43 }
 0x88f   :  { %4175 = vmatpush.bf16.msra.mxu2 %v8742_v11  ;;  %4188 = vmatpush.bf16.msra.mxu3 %v8797_v61 }
 0x892   :  { %4150 = vmatpush.bf16.msra.mxu0 %v8755_v23  ;;  %4163 = vmatpush.bf16.msrb.mxu1 %v8757_v51 }
 0x893   :  { %4176 = vmatpush.bf16.msra.mxu2 %v8795_v53  ;;  %4189 = vmatpush.bf16.msra.mxu3 %v8837_v29 }
 0x896   :  { %4151 = vmatpush.bf16.msra.mxu0 %v8820_v2  ;;  %4164 = vmatpush.bf16.msrb.mxu1 %v8833_v33 }
 0x897   :  { %4177 = vmatpush.bf16.msra.mxu2 %v8835_v17  ;;  %4190 = vmatpush.bf16.msra.mxu3 %v8884_v36 }
 0x89a   :  { %4152 = vmatpush.bf16.msra.mxu0 %v8876_v46  ;;  %4165 = vmatpush.bf16.msrb.mxu1 %v8882_v13 }
 0x89b   :  { %4178 = vmatpush.bf16.msra.mxu2 %v8901_v10  ;;  %4191 = vmatpush.bf16.msra.mxu3 %v8929_v62 }
 0x89e   :  { %4153 = vmatpush.bf16.msra.mxu0 %v8923_v56  ;;  %4166 = vmatpush.bf16.msrb.mxu1 %v8927_v52 }
 0x89f   :  { %4179 = vmatpush.bf16.msra.mxu2 %v8941_v7  ;;  %4192 = vmatpush.bf16.msra.mxu3 %v8970_v16 }
 0x8a2   :  { %4154 = vmatpush.bf16.msra.mxu0 %v8962_v5  ;;  %4167 = vmatpush.bf16.msrb.mxu1 %v8968_v41 }
 0x8a3   :  { %4180 = vmatpush.bf16.msra.mxu2 %v8973_v0  ;;  %4193 = vmatpush.bf16.msra.mxu3 %v8985_v12 }
 0x901   :  { %v3908_v8 = vpop.f32.mrf.mxu0  ;;  %v3921_v21 = vpop.f32.mrf.mxu1 }
 0x902   :  { %v3951_v3 = vadd.f32 %v3908_v8, %v3079_v14  ;;  %v3952_v49 = vadd.f32 %v3921_v21, %v3108_v45 }
 0x904   :  { %v5873_v26 = vmul.f32 -1.442695, %v3951_v3  ;;  %v5874_v47 = vmul.f32 -1.442695, %v3952_v49 }
 0x906   :  { %6457 = vpow2.f32 %v5873_v26 }
 0x907   :  { %6459 = vpow2.f32 %v5874_v47 }
 0x908   :  { %v3934_v58 = vpop.f32.mrf.mxu2  ;;  %v3947_v28 = vpop.f32.mrf.mxu3 }
 0x909   :  { %v3953_v30 = vadd.f32 %v3934_v58, %v3137_v42  ;;  %v3910_v34 = vpop.f32.mrf.mxu0  ;;  %v3923_v35 = vpop.f32.mrf.mxu1  ;;  %v3954_v48 = vadd.f32 %v3947_v28, %v3166_v1 }
 0x90b   :  { %v5875_v54 = vmul.f32 -1.442695, %v3953_v30 }
 0x90c   :  { %v6458_v63 = vpop.eup %6457 }
 0x90d   :  { %v6460_v22 = vpop.eup %6459  ;;  %v3964_v9 = vadd.f32 1.0, %v6458_v63  ;;  %6461 = vpow2.f32 %v5875_v54 }
 0x90e   :  { %v3965_v18 = vadd.f32 1.0, %v6460_v22 }
 0x90f   :  { %6463 = vrcp.f32 %v3964_v9  ;;  %v3978_v26 = vand.u32 2147483648, %v3964_v9  ;;  %v3976_v42 = vand.u32 2147483647, %v3964_v9  ;;  %vm3972_vm4 = vweird.f32 %v3964_v9 }
 0x910   :  { %6465 = vrcp.f32 %v3965_v18  ;;  %v3936_v27 = vpop.f32.mrf.mxu2  ;;  %v3949_v24 = vpop.f32.mrf.mxu3  ;;  %v3993_v47 = vand.u32 2147483648, %v3965_v18  ;;  %v3991_v30 = vand.u32 2147483647, %v3965_v18  ;;  %vm3987_vm5 = vweird.f32 %v3965_v18 }
 0x911   :  { %v3979_v54 = vor.u32 1.1754944e-38, %v3978_v26  ;;  %vm3977_vm8 = vcmp.eq.f32.partialorder %v3976_v42, 8.507059e+37 }
 0x912   :  { %v3994_v22 = vor.u32 1.1754944e-38, %v3993_v47  ;;  %vm3992_vm9 = vcmp.eq.f32.partialorder %v3991_v30, 8.507059e+37 }
 0x913   :  { %v6462_v44 = vpop.eup %6461 }
 0x914   :  { %v3966_v40 = vadd.f32 1.0, %v6462_v44 }
 0x915   :  { %v6464_v14 = vpop.eup %6463 }
 0x916   :  { %v6466_v45 = vpop.eup %6465  ;;  %v3968_v8 = vmul.f32 %v6464_v14, %v3964_v9  ;;  %6467 = vrcp.f32 %v3966_v40  ;;  %vm3973_vm2 = vweird.f32 %v6464_v14  ;;  %vm4002_vm11 = vweird.f32 %v3966_v40 }
 0x917   :  { %v3983_v21 = vmul.f32 %v6466_v45, %v3965_v18  ;;  %6469 = vtanh.f32 %v3954_v48  ;;  %vm3988_vm3 = vweird.f32 %v6466_v45  ;;  %vm3974_vm6 = vmor %vm3972_vm4, %vm3973_vm2 }
 0x918   :  { %v3969_v3 = vsub.f32 1.0, %v3968_v8  ;;  %vm3989_vm7 = vmor %vm3987_vm5, %vm3988_vm3 }
 0x919   :  { %v3984_v49 = vsub.f32 1.0, %v3983_v21 }
 0x91a   :  { %v3970_v39 = vmul.f32 %v6464_v14, %v3969_v3 }
 0x91b   :  { %v3985_v58 = vmul.f32 %v6466_v45, %v3984_v49  ;;  %v4008_v49 = vand.u32 2147483648, %v3966_v40 }
 0x91c   :  { %v6468_v34 = vpop.eup %6467  ;;  %v3971_v35 = vadd.f32 %v6464_v14, %v3970_v39 }
 0x91d   :  { %v3998_v28 = vmul.f32 %v6468_v34, %v3966_v40  ;;  %v3986_v63 = vadd.f32 %v6466_v45, %v3985_v58  ;;  %v6470_v24 = vpop.eup %6469  ;;  %vm4003_vm10 = vweird.f32 %v6468_v34  ;;  %v4009_v47 = vor.u32 1.1754944e-38, %v4008_v49 }
 0x91e   :  { %v3975_v27 = vsel %vm3974_vm6, %v6464_v14, %v3971_v35  ;;  %v4006_v14 = vand.u32 2147483647, %v3966_v40  ;;  %vm4004_vm12 = vmor %vm4002_vm11, %vm4003_vm10 }
 0x91f   :  { %v3999_v44 = vsub.f32 1.0, %v3998_v28  ;;  %v3980_v57 = vsel %vm3977_vm8, %v3979_v54, %v3975_v27  ;;  %v3990_v1 = vsel %vm3989_vm7, %v6466_v45, %v3986_v63 }
 0x920   :  { %v3995_v48 = vsel %vm3992_vm9, %v3994_v22, %v3990_v1  ;;  %v4014_v8 = vmul.f32 %v6470_v24, %v3980_v57  ;;  %vm4007_vm13 = vcmp.eq.f32.partialorder %v4006_v14, 8.507059e+37 }
 0x921   :  { %v4000_v21 = vmul.f32 %v6468_v34, %v3999_v44  ;;  %v4013_v3 = vmul.f32 %v3995_v48, %v9260_v60 }
 0x923   :  { %v9304_v9 = vadd.f32 %v4014_v8, %v4013_v3  ;;  %v4001_v18 = vadd.f32 %v6468_v34, %v4000_v21 }
 0x925   :  { %6471 = vtanh.f32 %v9304_v9  ;;  %v4005_v26 = vsel %vm4004_vm12, %v6468_v34, %v4001_v18 }
 0x926   :  { %v4010_v39 = vsel %vm4007_vm13, %v4009_v47, %v4005_v26 }
 0x92b   :  { %v6472_v45 = vpop.eup %6471 }
 0x92c   :  { %v4017_v42 = vmul.f32 %v6472_v45, %v4010_v39 }
 0x92e   :  { %v4018_v58 = vpack.c.bf16 %v4017_v42, %v4017_v42 }
 0x930   :  { %4031 = vmatmul.bf16.vlgmr.msrb.gmra.mxu0 %v4018_v58  ;;  %4044 = vmatmul.bf16.vlgmr.msra.gmra.mxu1 %v4018_v58 }
 0x931   :  { %4057 = vmatmul.bf16.vlgmr.msrb.gmra.mxu2 %v4018_v58  ;;  %4070 = vmatmul.bf16.vlgmr.msrb.gmra.mxu3 %v4018_v58 }
 0x932   :  { %4271 = vmatpush.bf16.msrb.mxu0 %v8638_v15  ;;  %4284 = vmatpush.bf16.msra.mxu1 %v8649_v6  ;;  %v9466_v15 = vld [vmem:[#allocation17_spill] sm:$0xff] }
 0x933   :  { %4297 = vmatpush.bf16.msrb.mxu2 %v8651_v4  ;;  %4310 = vmatpush.bf16.msrb.mxu3 %v8660_v50  ;;  %v3081_v6 = vadd.f32 %v9466_v15, %v9112_v25  ;;  %v9467_v4 = vld [vmem:[#allocation18_spill] sm:$0xff] }
 0x934   :  { %v3110_v50 = vadd.f32 %v9467_v4, %v9114_v20 }
 0x936   :  { %4272 = vmatpush.bf16.msrb.mxu0 %v8675_v37  ;;  %4285 = vmatpush.bf16.msra.mxu1 %v8686_v55 }
 0x937   :  { %4298 = vmatpush.bf16.msrb.mxu2 %v8705_v38  ;;  %4311 = vmatpush.bf16.msrb.mxu3 %v8713_v32 }
 0x93a   :  { %4273 = vmatpush.bf16.msrb.mxu0 %v8725_v59  ;;  %4286 = vmatpush.bf16.msra.mxu1 %v8727_v43 }
 0x93b   :  { %4299 = vmatpush.bf16.msrb.mxu2 %v8742_v11  ;;  %4312 = vmatpush.bf16.msrb.mxu3 %v8797_v61  ;;  %v9468_v11 = vld [vmem:[#allocation19_spill] sm:$0xff] }
 0x93e   :  { %4274 = vmatpush.bf16.msrb.mxu0 %v8755_v23  ;;  %4287 = vmatpush.bf16.msra.mxu1 %v8757_v51  ;;  %v3139_v23 = vadd.f32 %v9468_v11, %v9122_v31 }
 0x93f   :  { %4300 = vmatpush.bf16.msrb.mxu2 %v8795_v53  ;;  %4313 = vmatpush.bf16.msrb.mxu3 %v8837_v29 }
 0x942   :  { %4275 = vmatpush.bf16.msrb.mxu0 %v8820_v2  ;;  %4288 = vmatpush.bf16.msra.mxu1 %v8833_v33 }
 0x943   :  { %4301 = vmatpush.bf16.msrb.mxu2 %v8835_v17  ;;  %4314 = vmatpush.bf16.msrb.mxu3 %v8884_v36 }
 0x946   :  { %4276 = vmatpush.bf16.msrb.mxu0 %v8876_v46  ;;  %4289 = vmatpush.bf16.msra.mxu1 %v8882_v13 }
 0x947   :  { %4302 = vmatpush.bf16.msrb.mxu2 %v8901_v10  ;;  %4315 = vmatpush.bf16.msrb.mxu3 %v8929_v62  ;;  %v9469_v62 = vld [vmem:[#allocation20_spill] sm:$0xff] }
 0x94a   :  { %4277 = vmatpush.bf16.msrb.mxu0 %v8923_v56  ;;  %4290 = vmatpush.bf16.msra.mxu1 %v8927_v52 }
 0x94b   :  { %4303 = vmatpush.bf16.msrb.mxu2 %v8941_v7  ;;  %4316 = vmatpush.bf16.msrb.mxu3 %v8970_v16  ;;  %v3168_v7 = vadd.f32 %v9469_v62, %v9452_v19 }
 0x94e   :  { %4278 = vmatpush.bf16.msrb.mxu0 %v8962_v5  ;;  %4291 = vmatpush.bf16.msra.mxu1 %v8968_v41 }
 0x94f   :  { %4304 = vmatpush.bf16.msrb.mxu2 %v8973_v0  ;;  %4317 = vmatpush.bf16.msrb.mxu3 %v8985_v12 }
 0x9ad   :  { %v4032_v37 = vpop.f32.mrf.mxu0  ;;  %v4045_v55 = vpop.f32.mrf.mxu1 }
 0x9ae   :  { %v4075_v38 = vadd.f32 %v4032_v37, %v3081_v6  ;;  %v4076_v32 = vadd.f32 %v4045_v55, %v3110_v50 }
 0x9b0   :  { %v5876_v59 = vmul.f32 -1.442695, %v4075_v38  ;;  %v5877_v43 = vmul.f32 -1.442695, %v4076_v32 }
 0x9b2   :  { %6473 = vpow2.f32 %v5876_v59  ;;  %v9471_v59 = vld [vmem:[#allocation22_spill] sm:$0xff] }
 0x9b3   :  { %6475 = vpow2.f32 %v5877_v43  ;;  %v3113_v43 = vadd.f32 %v9471_v59, %v9114_v20 }
 0x9b4   :  { %v4058_v51 = vpop.f32.mrf.mxu2  ;;  %v4071_v53 = vpop.f32.mrf.mxu3 }
 0x9b5   :  { %v4077_v61 = vadd.f32 %v4058_v51, %v3139_v23  ;;  %v4034_v2 = vpop.f32.mrf.mxu0  ;;  %v4047_v33 = vpop.f32.mrf.mxu1  ;;  %v4078_v16 = vadd.f32 %v4071_v53, %v3168_v7 }
 0x9b6   :  { %v9472_v33 = vld [vmem:[#allocation23_spill] sm:$0xff] }
 0x9b7   :  { %v5878_v17 = vmul.f32 -1.442695, %v4077_v61 }
 0x9b8   :  { %v6474_v29 = vpop.eup %6473 }
 0x9b9   :  { %v6476_v46 = vpop.eup %6475  ;;  %v4088_v13 = vadd.f32 1.0, %v6474_v29  ;;  %6477 = vpow2.f32 %v5878_v17  ;;  %v3142_v17 = vadd.f32 %v9472_v33, %v9122_v31  ;;  %v9474_v33 = vld [vmem:[#allocation25_spill] sm:$0xff] }
 0x9ba   :  { %v4089_v36 = vadd.f32 1.0, %v6476_v46 }
 0x9bb   :  { %6479 = vrcp.f32 %v4088_v13  ;;  %v4102_v34 = vand.u32 2147483648, %v4088_v13  ;;  %v4100_v54 = vand.u32 2147483647, %v4088_v13  ;;  %vm4096_vm0 = vweird.f32 %v4088_v13 }
 0x9bc   :  { %6481 = vrcp.f32 %v4089_v36  ;;  %v4060_v10 = vpop.f32.mrf.mxu2  ;;  %v4073_v56 = vpop.f32.mrf.mxu3  ;;  %v4117_v35 = vand.u32 2147483648, %v4089_v36  ;;  %v4115_v22 = vand.u32 2147483647, %v4089_v36  ;;  %vm4111_vm1 = vweird.f32 %v4089_v36 }
 0x9bd   :  { %v4103_v57 = vor.u32 1.1754944e-38, %v4102_v34  ;;  %vm4101_vm4 = vcmp.eq.f32.partialorder %v4100_v54, 8.507059e+37 }
 0x9be   :  { %v4118_v48 = vor.u32 1.1754944e-38, %v4117_v35  ;;  %vm4116_vm5 = vcmp.eq.f32.partialorder %v4115_v22, 8.507059e+37 }
 0x9bf   :  { %v6478_v52 = vpop.eup %6477 }
 0x9c0   :  { %v4090_v5 = vadd.f32 1.0, %v6478_v52 }
 0x9c1   :  { %v6480_v41 = vpop.eup %6479 }
 0x9c2   :  { %v6482_v0 = vpop.eup %6481  ;;  %v4092_v12 = vmul.f32 %v6480_v41, %v4088_v13  ;;  %6483 = vrcp.f32 %v4090_v5  ;;  %vm4097_vm14 = vweird.f32 %v6480_v41  ;;  %v4132_v58 = vand.u32 2147483648, %v4090_v5 }
 0x9c3   :  { %v4107_v60 = vmul.f32 %v6482_v0, %v4089_v36  ;;  %6485 = vtanh.f32 %v4078_v16  ;;  %vm4112_vm15 = vweird.f32 %v6482_v0  ;;  %vm4098_vm2 = vmor %vm4096_vm0, %vm4097_vm14  ;;  %vm4126_vm7 = vweird.f32 %v4090_v5 }
 0x9c4   :  { %v4093_v40 = vsub.f32 1.0, %v4092_v12  ;;  %vm4113_vm3 = vmor %vm4111_vm1, %vm4112_vm15  ;;  %v4130_v15 = vand.u32 2147483647, %v4090_v5  ;;  %v4133_v4 = vor.u32 1.1754944e-38, %v4132_v58  ;;  %v9473_v12 = vld [vmem:[#allocation24_spill] sm:$0xff] }
 0x9c5   :  { %v4108_v30 = vsub.f32 1.0, %v4107_v60  ;;  %v3171_v60 = vadd.f32 %v9473_v12, %v9452_v19 }
 0x9c6   :  { %v4094_v28 = vmul.f32 %v6480_v41, %v4093_v40  ;;  %vm4131_vm9 = vcmp.eq.f32.partialorder %v4130_v15, 8.507059e+37 }
 0x9c7   :  { %v4109_v63 = vmul.f32 %v6482_v0, %v4108_v30 }
 0x9c8   :  { %v6484_v27 = vpop.eup %6483  ;;  %v4095_v24 = vadd.f32 %v6480_v41, %v4094_v28 }
 0x9c9   :  { %v4122_v44 = vmul.f32 %v6484_v27, %v4090_v5  ;;  %v4110_v1 = vadd.f32 %v6482_v0, %v4109_v63  ;;  %v6486_v21 = vpop.eup %6485  ;;  %vm4127_vm6 = vweird.f32 %v6484_v27 }
 0x9ca   :  { %v4099_v8 = vsel %vm4098_vm2, %v6480_v41, %v4095_v24  ;;  %vm4128_vm8 = vmor %vm4126_vm7, %vm4127_vm6 }
 0x9cb   :  { %v4123_v3 = vsub.f32 1.0, %v4122_v44  ;;  %v4104_v18 = vsel %vm4101_vm4, %v4103_v57, %v4099_v8  ;;  %v4114_v49 = vsel %vm4113_vm3, %v6482_v0, %v4110_v1 }
 0x9cc   :  { %v4119_v14 = vsel %vm4116_vm5, %v4118_v48, %v4114_v49  ;;  %v4138_v26 = vmul.f32 %v6486_v21, %v4104_v18 }
 0x9cd   :  { %v4124_v47 = vmul.f32 %v6484_v27, %v4123_v3  ;;  %v4137_v45 = vmul.f32 %v4119_v14, %v9304_v9  ;;  %v9470_v9 = vld [vmem:[#allocation21_spill] sm:$0xff] }
 0x9ce   :  { %v3084_v32 = vadd.f32 %v9470_v9, %v9112_v25 }
 0x9cf   :  { %v9348_v39 = vadd.f32 %v4138_v26, %v4137_v45  ;;  %v4125_v42 = vadd.f32 %v6484_v27, %v4124_v47 }
 0x9d1   :  { %6487 = vtanh.f32 %v9348_v39  ;;  %v4129_v6 = vsel %vm4128_vm8, %v6484_v27, %v4125_v42 }
 0x9d2   :  { %v4134_v37 = vsel %vm4131_vm9, %v4133_v4, %v4129_v6 }
 0x9d7   :  { %v6488_v50 = vpop.eup %6487 }
 0x9d8   :  { %v4141_v55 = vmul.f32 %v6488_v50, %v4134_v37 }
 0x9da   :  { %v4142_v38 = vpack.c.bf16 %v4141_v55, %v4141_v55 }
 0x9dc   :  { %4155 = vmatmul.bf16.vlgmr.msra.gmra.mxu0 %v4142_v38  ;;  %4168 = vmatmul.bf16.vlgmr.msrb.gmra.mxu1 %v4142_v38 }
 0x9dd   :  { %4181 = vmatmul.bf16.vlgmr.msra.gmra.mxu2 %v4142_v38  ;;  %4194 = vmatmul.bf16.vlgmr.msra.gmra.mxu3 %v4142_v38 }
 0xa59   :  { %v4156_v11 = vpop.f32.mrf.mxu0  ;;  %v4169_v23 = vpop.f32.mrf.mxu1 }
 0xa5a   :  { %v4199_v51 = vadd.f32 %v4156_v11, %v3084_v32  ;;  %v4200_v53 = vadd.f32 %v4169_v23, %v3113_v43 }
 0xa5c   :  { %v5879_v61 = vmul.f32 -1.442695, %v4199_v51  ;;  %v5880_v2 = vmul.f32 -1.442695, %v4200_v53  ;;  %v6259_v53 = vld [vmem:[%s9410_s7 + $0x30] sm:$0xff] }
 0xa5e   :  { %6489 = vpow2.f32 %v5879_v61  ;;  %v6258_v61 = vld [vmem:[%s9410_s7 + $0x28] sm:$0xff] }
 0xa5f   :  { %6491 = vpow2.f32 %v5880_v2  ;;  %v6257_v2 = vld [vmem:[%s9410_s7 + $0x20] sm:$0xff] }
 0xa60   :  { %v4182_v29 = vpop.f32.mrf.mxu2  ;;  %v4195_v46 = vpop.f32.mrf.mxu3 }
 0xa61   :  { %v4201_v13 = vadd.f32 %v4182_v29, %v3142_v17  ;;  %v4158_v36 = vpop.f32.mrf.mxu0  ;;  %v4171_v10 = vpop.f32.mrf.mxu1  ;;  %v4202_v34 = vadd.f32 %v4195_v46, %v3171_v60  ;;  %v3086_v17 = vadd.f32 %v9474_v33, %v9112_v25  ;;  %v9475_v29 = vld [vmem:[#allocation26_spill] sm:$0xff]  ;;  %v9476_v25 = vld [vmem:[#allocation27_spill] sm:$0xff] }
 0xa62   :  { %v3115_v46 = vadd.f32 %v9475_v29, %v9114_v20  ;;  %v6254_v20 = vld [vmem:[%s9410_s7 + $0x8] sm:$0xff] }
 0xa63   :  { %v5881_v56 = vmul.f32 -1.442695, %v4201_v13  ;;  %v6256_v13 = vld [vmem:[%s9410_s7 + $0x18] sm:$0xff] }
 0xa64   :  { %v6490_v52 = vpop.eup %6489 }
 0xa65   :  { %v6492_v62 = vpop.eup %6491  ;;  %v4212_v7 = vadd.f32 1.0, %v6490_v52  ;;  %6493 = vpow2.f32 %v5881_v56 }
 0xa66   :  { %v4213_v5 = vadd.f32 1.0, %v6492_v62 }
 0xa67   :  { %6495 = vrcp.f32 %v4212_v7  ;;  %v4226_v27 = vand.u32 2147483648, %v4212_v7  ;;  %v4224_v57 = vand.u32 2147483647, %v4212_v7  ;;  %vm4220_vm12 = vweird.f32 %v4212_v7 }
 0xa68   :  { %6497 = vrcp.f32 %v4213_v5  ;;  %v4184_v41 = vpop.f32.mrf.mxu2  ;;  %v4197_v16 = vpop.f32.mrf.mxu3  ;;  %v4241_v24 = vand.u32 2147483648, %v4213_v5  ;;  %v4239_v48 = vand.u32 2147483647, %v4213_v5  ;;  %vm4235_vm13 = vweird.f32 %v4213_v5 }
 0xa69   :  { %v4227_v18 = vor.u32 1.1754944e-38, %v4226_v27  ;;  %vm4225_vm0 = vcmp.eq.f32.partialorder %v4224_v57, 8.507059e+37  ;;  %v3144_v41 = vadd.f32 %v9476_v25, %v9122_v31 }
 0xa6a   :  { %v4242_v14 = vor.u32 1.1754944e-38, %v4241_v24  ;;  %vm4240_vm1 = vcmp.eq.f32.partialorder %v4239_v48, 8.507059e+37  ;;  %v9477_v24 = vld [vmem:[#allocation28_spill] sm:$0xff] }
 0xa6b   :  { %v6494_v0 = vpop.eup %6493 }
 0xa6c   :  { %v4214_v40 = vadd.f32 1.0, %v6494_v0 }
 0xa6d   :  { %v6496_v30 = vpop.eup %6495 }
 0xa6e   :  { %v6498_v35 = vpop.eup %6497  ;;  %v4216_v28 = vmul.f32 %v6496_v30, %v4212_v7  ;;  %6499 = vrcp.f32 %v4214_v40  ;;  %vm4221_vm10 = vweird.f32 %v6496_v30  ;;  %v4256_v38 = vand.u32 2147483648, %v4214_v40 }
 0xa6f   :  { %v4231_v54 = vmul.f32 %v6498_v35, %v4213_v5  ;;  %6501 = vtanh.f32 %v4202_v34  ;;  %vm4236_vm11 = vweird.f32 %v6498_v35  ;;  %vm4222_vm14 = vmor %vm4220_vm12, %vm4221_vm10  ;;  %vm4250_vm3 = vweird.f32 %v4214_v40  ;;  %v6255_v5 = vld [vmem:[%s9410_s7 + $0x10] sm:$0xff] }
 0xa70   :  { %v4217_v63 = vsub.f32 1.0, %v4216_v28  ;;  %vm4237_vm15 = vmor %vm4235_vm13, %vm4236_vm11  ;;  %v4254_v9 = vand.u32 2147483647, %v4214_v40  ;;  %v4257_v59 = vor.u32 1.1754944e-38, %v4256_v38 }
 0xa71   :  { %v4232_v22 = vsub.f32 1.0, %v4231_v54 }
 0xa72   :  { %v4218_v44 = vmul.f32 %v6496_v30, %v4217_v63  ;;  %vm4255_vm5 = vcmp.eq.f32.partialorder %v4254_v9, 8.507059e+37 }
 0xa73   :  { %v4233_v1 = vmul.f32 %v6498_v35, %v4232_v22 }
 0xa74   :  { %v6500_v8 = vpop.eup %6499  ;;  %v4219_v21 = vadd.f32 %v6496_v30, %v4218_v44  ;;  %v3173_v44 = vadd.f32 %v9477_v24, %v9452_v19 }
 0xa75   :  { %v4246_v3 = vmul.f32 %v6500_v8, %v4214_v40  ;;  %v4234_v49 = vadd.f32 %v6498_v35, %v4233_v1  ;;  %v6502_v47 = vpop.eup %6501  ;;  %vm4251_vm2 = vweird.f32 %v6500_v8 }
 0xa76   :  { %v4223_v26 = vsel %vm4222_vm14, %v6496_v30, %v4219_v21  ;;  %vm4252_vm4 = vmor %vm4250_vm3, %vm4251_vm2  ;;  %v6253_v30 = vld [vmem:[%s9410_s7] sm:$0xff] }
 0xa77   :  { %v4247_v45 = vsub.f32 1.0, %v4246_v3  ;;  %v4228_v42 = vsel %vm4225_vm0, %v4227_v18, %v4223_v26  ;;  %v4238_v58 = vsel %vm4237_vm15, %v6498_v35, %v4234_v49 }
 0xa78   :  { %v4243_v15 = vsel %vm4240_vm1, %v4242_v14, %v4238_v58  ;;  %v4262_v6 = vmul.f32 %v6502_v47, %v4228_v42 }
 0xa79   :  { %v4248_v4 = vmul.f32 %v6500_v8, %v4247_v45  ;;  %v4261_v50 = vmul.f32 %v4243_v15, %v9348_v39  ;;  %v6260_v39 = vld [vmem:[%s9410_s7 + $0x38] sm:$0xff] }
 0xa7a   :  { %4459 = vmatpush.bf16.msra.mxu0 %v6260_v39 }
 0xa7b   :  { %v9360_v37 = vadd.f32 %v4262_v6, %v4261_v50  ;;  %v4249_v55 = vadd.f32 %v6500_v8, %v4248_v4 }
 0xa7d   :  { %6503 = vtanh.f32 %v9360_v37  ;;  %v4253_v32 = vsel %vm4252_vm4, %v6500_v8, %v4249_v55 }
 0xa7e   :  { %v4258_v11 = vsel %vm4255_vm5, %v4257_v59, %v4253_v32  ;;  %4460 = vmatpush.bf16.msra.mxu0 %v6259_v53 }
 0xa82   :  { %4461 = vmatpush.bf16.msra.mxu0 %v6258_v61 }
 0xa83   :  { %v6504_v43 = vpop.eup %6503 }
 0xa84   :  { %v4265_v23 = vmul.f32 %v6504_v43, %v4258_v11 }
 0xa86   :  { %v4266_v51 = vpack.c.bf16 %v4265_v23, %v4265_v23  ;;  %4462 = vmatpush.bf16.msra.mxu0 %v6257_v2 }
 0xa88   :  { %4279 = vmatmul.bf16.vlgmr.msrb.gmra.mxu0 %v4266_v51  ;;  %4292 = vmatmul.bf16.vlgmr.msra.gmra.mxu1 %v4266_v51 }
 0xa89   :  { %4305 = vmatmul.bf16.vlgmr.msrb.gmra.mxu2 %v4266_v51  ;;  %4318 = vmatmul.bf16.vlgmr.msrb.gmra.mxu3 %v4266_v51 }
 0xa8a   :  { %4463 = vmatpush.bf16.msra.mxu0 %v6256_v13 }
 0xa8e   :  { %4464 = vmatpush.bf16.msra.mxu0 %v6255_v5 }
 0xa92   :  { %4465 = vmatpush.bf16.msra.mxu0 %v6254_v20 }
 0xa96   :  { %4466 = vmatpush.bf16.msra.mxu0 %v6253_v30 }
 0xb05   :  { %v4280_v36 = vpop.f32.mrf.mxu0  ;;  %v4293_v10 = vpop.f32.mrf.mxu1 }
 0xb06   :  { %v4323_v56 = vadd.f32 %v4280_v36, %v3086_v17  ;;  %v4324_v52 = vadd.f32 %v4293_v10, %v3115_v46 }
 0xb08   :  { %v5882_v62 = vmul.f32 -1.442695, %v4323_v56  ;;  %v5883_v7 = vmul.f32 -1.442695, %v4324_v52 }
 0xb0a   :  { %6505 = vpow2.f32 %v5882_v62 }
 0xb0b   :  { %6507 = vpow2.f32 %v5883_v7 }
 0xb0c   :  { %v4306_v16 = vpop.f32.mrf.mxu2  ;;  %v4319_v0 = vpop.f32.mrf.mxu3 }
 0xb0d   :  { %v4325_v12 = vadd.f32 %v4306_v16, %v3144_v41  ;;  %v4282_v60 = vpop.f32.mrf.mxu0  ;;  %v4295_v40 = vpop.f32.mrf.mxu1  ;;  %v4326_v48 = vadd.f32 %v4319_v0, %v3173_v44 }
 0xb0f   :  { %v5884_v34 = vmul.f32 -1.442695, %v4325_v12 }
 0xb10   :  { %v6506_v35 = vpop.eup %6505 }
 0xb11   :  { %v6508_v28 = vpop.eup %6507  ;;  %v4336_v54 = vadd.f32 1.0, %v6506_v35  ;;  %6509 = vpow2.f32 %v5884_v34 }
 0xb12   :  { %v4337_v63 = vadd.f32 1.0, %v6508_v28 }
 0xb13   :  { %6511 = vrcp.f32 %v4336_v54  ;;  %v4350_v14 = vand.u32 2147483648, %v4336_v54  ;;  %v4348_v45 = vand.u32 2147483647, %v4336_v54  ;;  %vm4344_vm8 = vweird.f32 %v4336_v54 }
 0xb14   :  { %6513 = vrcp.f32 %v4337_v63  ;;  %v4308_v31 = vpop.f32.mrf.mxu2  ;;  %v4321_v22 = vpop.f32.mrf.mxu3  ;;  %v4365_v26 = vand.u32 2147483648, %v4337_v63  ;;  %v4363_v58 = vand.u32 2147483647, %v4337_v63  ;;  %vm4359_vm9 = vweird.f32 %v4337_v63 }
 0xb15   :  { %v4351_v4 = vor.u32 1.1754944e-38, %v4350_v14  ;;  %vm4349_vm12 = vcmp.eq.f32.partialorder %v4348_v45, 8.507059e+37 }
 0xb16   :  { %v4366_v55 = vor.u32 1.1754944e-38, %v4365_v26  ;;  %vm4364_vm13 = vcmp.eq.f32.partialorder %v4363_v58, 8.507059e+37 }
 0xb17   :  { %v6510_v27 = vpop.eup %6509 }
 0xb18   :  { %v4338_v57 = vadd.f32 1.0, %v6510_v27 }
 0xb19   :  { %v6512_v1 = vpop.eup %6511 }
 0xb1a   :  { %v6514_v8 = vpop.eup %6513  ;;  %v4340_v21 = vmul.f32 %v6512_v1, %v4336_v54  ;;  %6515 = vrcp.f32 %v4338_v57  ;;  %vm4345_vm6 = vweird.f32 %v6512_v1  ;;  %v4380_v2 = vand.u32 2147483648, %v4338_v57 }
 0xb1b   :  { %v4355_v3 = vmul.f32 %v6514_v8, %v4337_v63  ;;  %6517 = vtanh.f32 %v4326_v48  ;;  %vm4360_vm7 = vweird.f32 %v6514_v8  ;;  %vm4346_vm10 = vmor %vm4344_vm8, %vm4345_vm6  ;;  %vm4374_vm15 = vweird.f32 %v4338_v57 }
 0xb1c   :  { %v4341_v18 = vsub.f32 1.0, %v4340_v21  ;;  %vm4361_vm11 = vmor %vm4359_vm9, %vm4360_vm7  ;;  %v4378_v33 = vand.u32 2147483647, %v4338_v57  ;;  %v4381_v29 = vor.u32 1.1754944e-38, %v4380_v2 }
 0xb1d   :  { %v4356_v49 = vsub.f32 1.0, %v4355_v3 }
 0xb1e   :  { %v4342_v47 = vmul.f32 %v6512_v1, %v4341_v18  ;;  %vm4379_vm1 = vcmp.eq.f32.partialorder %v4378_v33, 8.507059e+37 }
 0xb1f   :  { %v4357_v42 = vmul.f32 %v6514_v8, %v4356_v49 }
 0xb20   :  { %v6516_v15 = vpop.eup %6515  ;;  %v4343_v19 = vadd.f32 %v6512_v1, %v4342_v47 }
 0xb21   :  { %v4370_v6 = vmul.f32 %v6516_v15, %v4338_v57  ;;  %v4358_v50 = vadd.f32 %v6514_v8, %v4357_v42  ;;  %v6518_v9 = vpop.eup %6517  ;;  %vm4375_vm14 = vweird.f32 %v6516_v15 }
 0xb22   :  { %v4347_v38 = vsel %vm4346_vm10, %v6512_v1, %v4343_v19  ;;  %vm4376_vm0 = vmor %vm4374_vm15, %vm4375_vm14 }
 0xb23   :  { %v4371_v32 = vsub.f32 1.0, %v4370_v6  ;;  %v4352_v59 = vsel %vm4349_vm12, %v4351_v4, %v4347_v38  ;;  %v4362_v43 = vsel %vm4361_vm11, %v6514_v8, %v4358_v50 }
 0xb24   :  { %v4367_v11 = vsel %vm4364_vm13, %v4366_v55, %v4362_v43  ;;  %v4386_v23 = vmul.f32 %v6518_v9, %v4352_v59 }
 0xb25   :  { %v4372_v51 = vmul.f32 %v6516_v15, %v4371_v32  ;;  %v4385_v39 = vmul.f32 %v4367_v11, %v9360_v37  ;;  %v6264_v37 = vld [vmem:[%s9409_s8] ss:$0 sm:$0xff] }
 0xb27   :  { %v4387_v53 = vadd.f32 %v4386_v23, %v4385_v39  ;;  %v4373_v61 = vadd.f32 %v6516_v15, %v4372_v51 }
 0xb29   :  { %6519 = vtanh.f32 %v4387_v53  ;;  %v4377_v17 = vsel %vm4376_vm0, %v6516_v15, %v4373_v61 }
 0xb2a   :  { %v4382_v13 = vsel %vm4379_vm1, %v4381_v29, %v4377_v17 }
 0xb2f   :  { %v6520_v46 = vpop.eup %6519 }
 0xb30   :  { %v4389_v36 = vmul.f32 %v6520_v46, %v4382_v13 }
 0xb32   :  { %v4390_v10 = vpack.c.bf16 %v4389_v36, %v4389_v36 }
 0xb34   :  { %4467 = vmatmul.bf16.vlgmr.msra.gmra.mxu0 %v4390_v10 }
 0xbb1   :  { %v4468_v56 = vpop.f32.mrf.mxu0 }
 0xbb2   :  { %v4469_v52 = vadd.f32 %v6264_v37, %v4468_v56 }
 0xbb4   :  { %4472 = vst [vmem:[%s9411_s9] sm:$0xff] %v4469_v52 }
 0xbb9   :  { %v4470_v62 = vpop.f32.mrf.mxu0 }

</bundles_post_ra>
